<compile_context>
chip_gen: v5e
topology: v5e:2x2
jax: 0.10.0
libtpu: 0.0.40
codegen_flags: <defaults>
</compile_context>

<pallas_src>
import functools

import jax
import jax.numpy as jnp
from jax.experimental import pallas as pl
from jax.experimental.pallas import tpu as pltpu

_EPS = 1e-5
_LANE = 128
_VMEM_LIMIT = 32 * 1024 * 1024


def _round_up(x, m):
    return (x + m - 1) // m * m


def _pick_tile(m, target=512):
    t = min(m, target)
    for cand in range(t, 7, -1):
        if m % cand == 0 and cand % 8 == 0:
            return cand
    return m


# ---------------------------------------------------------------------------
# Pass A: 3x3 conv (stride 1, pad 1) as 9 shifted matmuls + BN partial stats.
# ---------------------------------------------------------------------------
def _conv_stats_kernel(x_ref, w_ref, y_ref, s_ref, acc_ref, *, H, W):
    # x_ref : (1, H+2, W+2, Cin_p)  bf16  spatially zero-padded image
    # w_ref : (9, Cin_p, TCO)       bf16  weights for this cout tile
    # y_ref : (1, H*W, TCO)         f32   conv output
    # s_ref : (1, 2, TCO)           f32   per-image [sum, sumsq] over H*W
    # acc_ref: (H*W, TCO)           f32   scratch accumulator
    cin = x_ref.shape[-1]
    acc_ref[...] = jnp.zeros_like(acc_ref)
    for kh in range(3):
        for kw in range(3):
            xs = x_ref[0, pl.ds(kh, H), pl.ds(kw, W), :].reshape(H * W, cin)
            acc_ref[...] += jnp.dot(xs, w_ref[3 * kh + kw],
                                    preferred_element_type=jnp.float32)
    acc = acc_ref[...]
    y_ref[0] = acc
    s_ref[0, 0:1, :] = jnp.sum(acc, axis=0, keepdims=True)
    s_ref[0, 1:2, :] = jnp.sum(acc * acc, axis=0, keepdims=True)


def _conv3x3_stats(xp, w, H, W, tco):
    """xp: (N, H+2, W+2, Cin_p) bf16; w: (9, Cin_p, Cout_p) bf16.

    Returns (y, stats): y (N*H*W, Cout_p) f32 conv output, stats (2, Cout_p)
    f32 with row 0 = per-channel sum, row 1 = per-channel sum of squares.
    """
    N = xp.shape[0]
    cin_p = xp.shape[-1]
    cout_p = w.shape[-1]
    hw = H * W
    n_co = cout_p // tco

    flops = 2 * N * hw * 9 * cin_p * cout_p
    bytes_accessed = (n_co * xp.size * 2 + w.size * 2
                      + N * hw * cout_p * 4 + N * 2 * cout_p * 4)

    y, stats_n = pl.pallas_call(
        functools.partial(_conv_stats_kernel, H=H, W=W),
        out_shape=(
            jax.ShapeDtypeStruct((N, hw, cout_p), jnp.float32),
            jax.ShapeDtypeStruct((N, 2, cout_p), jnp.float32),
        ),
        grid=(n_co, N),
        in_specs=[
            pl.BlockSpec((1, H + 2, W + 2, cin_p), lambda co, n: (n, 0, 0, 0)),
            pl.BlockSpec((9, cin_p, tco), lambda co, n: (0, 0, co)),
        ],
        out_specs=(
            pl.BlockSpec((1, hw, tco), lambda co, n: (n, 0, co)),
            pl.BlockSpec((1, 2, tco), lambda co, n: (n, 0, co)),
        ),
        scratch_shapes=[pltpu.VMEM((hw, tco), jnp.float32)],
        compiler_params=pltpu.CompilerParams(
            dimension_semantics=("parallel", "parallel"),
            vmem_limit_bytes=_VMEM_LIMIT),
        cost_estimate=pl.CostEstimate(flops=flops, transcendentals=0,
                                      bytes_accessed=bytes_accessed),
    )(xp, w)

    return y.reshape(N * hw, cout_p), jnp.sum(stats_n, axis=0)


# ---------------------------------------------------------------------------
# Pass B: elementwise BN apply (+ optional residual) + ReLU, tiled over M.
# ---------------------------------------------------------------------------
def _scale_shift_relu_kernel(y_ref, sc_ref, sh_ref, o_ref):
    y = y_ref[...] * sc_ref[...] + sh_ref[...]
    o_ref[...] = jnp.maximum(y, 0.0).astype(o_ref.dtype)


def _scale_shift_add_relu_kernel(y_ref, sc_ref, sh_ref, id_ref, o_ref):
    y = y_ref[...] * sc_ref[...] + sh_ref[...] + id_ref[...]
    o_ref[...] = jnp.maximum(y, 0.0).astype(o_ref.dtype)


def _bn_apply(y2d, scale, shift, identity, out_dtype, tm, tco):
    M, cout_p = y2d.shape
    n_co = cout_p // tco
    n_m = M // tm

    row_spec = pl.BlockSpec((tm, tco), lambda co, i: (i, co))
    vec_spec = pl.BlockSpec((1, tco), lambda co, i: (0, co))

    in_specs = [row_spec, vec_spec, vec_spec]
    args = [y2d, scale, shift]
    if identity is None:
        kernel = _scale_shift_relu_kernel
        n_big = 2
    else:
        kernel = _scale_shift_add_relu_kernel
        in_specs.append(row_spec)
        args.append(identity)
        n_big = 3

    return pl.pallas_call(
        kernel,
        out_shape=jax.ShapeDtypeStruct((M, cout_p), out_dtype),
        grid=(n_co, n_m),
        in_specs=in_specs,
        out_specs=row_spec,
        compiler_params=pltpu.CompilerParams(
            dimension_semantics=("parallel", "parallel"),
            vmem_limit_bytes=_VMEM_LIMIT),
        cost_estimate=pl.CostEstimate(flops=3 * M * cout_p, transcendentals=0,
                                      bytes_accessed=n_big * M * cout_p * 4),
    )(*args)


def _bn_scale_shift(stats, gamma, beta, count):
    # Train-mode BatchNorm: global batch mean / biased variance over N*H*W.
    mean = stats[0:1, :] / count
    var = stats[1:2, :] / count - mean * mean
    scale = gamma * jax.lax.rsqrt(var + _EPS)
    shift = beta - mean * scale
    return scale, shift


# ---------------------------------------------------------------------------
# Wrapper
# ---------------------------------------------------------------------------
def _prep_conv_weight(w, cin_p, cout_p):
    cout, cin = w.shape[0], w.shape[1]
    wm = jnp.transpose(w, (2, 3, 1, 0)).reshape(9, cin, cout)   # (kh*3+kw, ci, co)
    wm = jnp.pad(wm, ((0, 0), (0, cin_p - cin), (0, cout_p - cout)))
    return wm.astype(jnp.bfloat16)


def _prep_bn_param(p, cout_p):
    c = p.shape[0]
    return jnp.pad(p.astype(jnp.float32), (0, cout_p - c)).reshape(1, cout_p)


def basic_block_forward(x_nchw, params):
    """BasicBlock(in_c, out_c, stride=1, downsample=None) forward, train-mode BN."""
    w1, g1, b1, w2, g2, b2 = params   # torch layouts: w (Cout, Cin, 3, 3); g/b (C,)
    N, Cin, H, W = x_nchw.shape
    Cout = w1.shape[0]
    assert Cin == Cout, "identity residual requires in_channel == out_channel"

    cin_p = _round_up(Cin, _LANE)
    cout_p = _round_up(Cout, _LANE)
    tco = min(cout_p, _LANE)
    M = N * H * W
    tm = _pick_tile(M)

    # NHWC, channel-padded (padded channels stay exactly zero end to end).
    x = jnp.transpose(x_nchw, (0, 2, 3, 1)).astype(jnp.float32)
    x_cp = jnp.pad(x, ((0, 0), (0, 0), (0, 0), (0, cin_p - Cin)))

    w1m = _prep_conv_weight(w1, cin_p, cout_p)
    w2m = _prep_conv_weight(w2, cout_p, cout_p)
    g1p, b1p = _prep_bn_param(g1, cout_p), _prep_bn_param(b1, cout_p)
    g2p, b2p = _prep_bn_param(g2, cout_p), _prep_bn_param(b2, cout_p)

    # --- Stage 1: conv1 -> bn1 -> relu ---
    x1p = jnp.pad(x_cp, ((0, 0), (1, 1), (1, 1), (0, 0))).astype(jnp.bfloat16)
    y1, s1 = _conv3x3_stats(x1p, w1m, H, W, tco)
    sc1, sh1 = _bn_scale_shift(s1, g1p, b1p, float(M))
    h1 = _bn_apply(y1, sc1, sh1, None, jnp.bfloat16, tm, tco)  # bf16: conv2 operand

    # --- Stage 2: conv2 -> bn2 -> + identity -> relu ---
    h1p = jnp.pad(h1.reshape(N, H, W, cout_p), ((0, 0), (1, 1), (1, 1), (0, 0)))
    y2, s2 = _conv3x3_stats(h1p, w2m, H, W, tco)
    sc2, sh2 = _bn_scale_shift(s2, g2p, b2p, float(M))
    identity = x_cp.reshape(M, cin_p)            # exact f32 residual
    out2 = _bn_apply(y2, sc2, sh2, identity, jnp.float32, tm, tco)

    out = out2.reshape(N, H, W, cout_p)[..., :Cout]
    return jnp.transpose(out, (0, 3, 1, 2))      # back to NCHW


def init_params(key, in_channel, out_channel):
    k1, k2 = jax.random.split(key)
    std1 = (2.0 / (in_channel * 9)) ** 0.5
    std2 = (2.0 / (out_channel * 9)) ** 0.5
    w1 = jax.random.normal(k1, (out_channel, in_channel, 3, 3), jnp.float32) * std1
    w2 = jax.random.normal(k2, (out_channel, out_channel, 3, 3), jnp.float32) * std2
    g = jnp.ones((out_channel,), jnp.float32)
    b = jnp.zeros((out_channel,), jnp.float32)
    return (w1, g, b, w2, g, b)


def _reference(x_nchw, params):
    # XLA reference with matching bf16 conv operands / f32 accumulation.
    w1, g1, b1, w2, g2, b2 = params

    def conv3x3(x_nhwc, w):
        return jax.lax.conv_general_dilated(
            x_nhwc.astype(jnp.bfloat16),
            jnp.transpose(w, (2, 3, 1, 0)).astype(jnp.bfloat16),
            window_strides=(1, 1), padding=((1, 1), (1, 1)),
            dimension_numbers=("NHWC", "HWIO", "NHWC"),
            preferred_element_type=jnp.float32)

    def bn(y, g, b):
        mean = jnp.mean(y, axis=(0, 1, 2), keepdims=True)
        var = jnp.mean(jnp.square(y - mean), axis=(0, 1, 2), keepdims=True)
        return (y - mean) * jax.lax.rsqrt(var + _EPS) * g + b

    x = jnp.transpose(x_nchw, (0, 2, 3, 1)).astype(jnp.float32)
    h = jnp.maximum(bn(conv3x3(x, w1), g1, b1), 0.0)
    y = bn(conv3x3(h.astype(jnp.bfloat16), w2), g2, b2) + x
    y = jnp.maximum(y, 0.0)
    return jnp.transpose(y, (0, 3, 1, 2))


if __name__ == "__main__":
    key = jax.random.PRNGKey(0)
    kx, kp = jax.random.split(key)

    N, C, H, W = 2, 4, 16, 16   # BasicBlock(in_channel=4, out_channel=4)
    x = jax.random.normal(kx, (N, C, H, W), jnp.float32)
    params = init_params(kp, C, C)

    out = jax.jit(basic_block_forward)(x, params)
    jax.block_until_ready(out)

    assert out.shape == (N, C, H, W)
    assert bool(jnp.all(out >= 0.0))     # final ReLU

    ref = jax.jit(_reference)(x, params)
    err = float(jnp.max(jnp.abs(out - ref)))
    assert bool(jnp.allclose(out, ref, atol=2e-2, rtol=2e-2)), err

    print("KERNEL_OK")
</pallas_src>

<mosaic_0001>
module attributes {stable_mosaic.version = 11 : i64} {
  func.func @_conv_stats_kernel(%arg0: i32, %arg1: i32, %arg2: memref<1x18x18x128xbf16, #tpu.memory_space<vmem>>, %arg3: memref<9x128x128xbf16, #tpu.memory_space<vmem>>, %arg4: memref<1x256x128xf32, #tpu.memory_space<vmem>>, %arg5: memref<1x2x128xf32, #tpu.memory_space<vmem>>, %arg6: memref<256x128xf32, #tpu.memory_space<vmem>>) attributes {dimension_semantics = [#tpu.dimension_semantics<parallel>, #tpu.dimension_semantics<parallel>], iteration_bounds = array<i64: 1, 2>, scalar_prefetch = 0 : i64, scratch_operands = 1 : i64, tpu.core_type = #tpu.core_type<tc>, window_params = [{transform_indices = @transform_0, window_bounds = array<i64: 1, 18, 18, 128>}, {transform_indices = @transform_1, window_bounds = array<i64: 9, 128, 128>}, {transform_indices = @transform_2, window_bounds = array<i64: 1, 256, 128>}, {transform_indices = @transform_3, window_bounds = array<i64: 1, 2, 128>}]} {
    %cst = arith.constant 0.000000e+00 : f32
    %0 = vector.broadcast %cst : f32 to vector<256x128xf32>
    %c0 = arith.constant 0 : index
    %c0_0 = arith.constant 0 : index
    %1 = vector.load %arg6[%c0, %c0_0] : memref<256x128xf32, #tpu.memory_space<vmem>>, vector<256x128xf32>
    tpu.vector_store %arg6[%c0, %c0_0], %0 {strides = array<i32>} : memref<256x128xf32, #tpu.memory_space<vmem>>, vector<256x128xf32>,
    %c0_1 = arith.constant 0 : index
    %c0_2 = arith.constant 0 : index
    %c0_3 = arith.constant 0 : index
    %c0_4 = arith.constant 0 : index
    %2 = vector.load %arg2[%c0_1, %c0_2, %c0_3, %c0_4] : memref<1x18x18x128xbf16, #tpu.memory_space<vmem>>, vector<1x16x16x128xbf16>
    %3 = vector.shape_cast %2 : vector<1x16x16x128xbf16> to vector<16x16x128xbf16>
    %4 = vector.shape_cast %3 : vector<16x16x128xbf16> to vector<256x128xbf16>
    %c0_5 = arith.constant 0 : index
    %c0_6 = arith.constant 0 : index
    %5 = vector.load %arg6[%c0_5, %c0_6] : memref<256x128xf32, #tpu.memory_space<vmem>>, vector<256x128xf32>
    %c0_7 = arith.constant 0 : index
    %c0_8 = arith.constant 0 : index
    %c0_9 = arith.constant 0 : index
    %6 = vector.load %arg3[%c0_7, %c0_8, %c0_9] : memref<9x128x128xbf16, #tpu.memory_space<vmem>>, vector<1x128x128xbf16>
    %7 = vector.shape_cast %6 : vector<1x128x128xbf16> to vector<128x128xbf16>
    %cst_10 = arith.constant dense<0.000000e+00> : vector<256x128xf32>
    %8 = tpu.matmul %4, %7, %cst_10 {dimension_numbers = #tpu.dot_dimension_numbers<[1], [0], [0], [1], [0, 0, 1, 1], [], []>} : vector<256x128xbf16>, vector<128x128xbf16>, vector<256x128xf32> -> vector<256x128xf32>
    %9 = arith.addf %5, %8 : vector<256x128xf32>
    %c0_11 = arith.constant 0 : index
    %c0_12 = arith.constant 0 : index
    %10 = vector.load %arg6[%c0_11, %c0_12] : memref<256x128xf32, #tpu.memory_space<vmem>>, vector<256x128xf32>
    tpu.vector_store %arg6[%c0_11, %c0_12], %9 {strides = array<i32>} : memref<256x128xf32, #tpu.memory_space<vmem>>, vector<256x128xf32>,
    %c0_13 = arith.constant 0 : index
    %c0_14 = arith.constant 0 : index
    %c1 = arith.constant 1 : index
    %c0_15 = arith.constant 0 : index
    %11 = vector.load %arg2[%c0_13, %c0_14, %c1, %c0_15] : memref<1x18x18x128xbf16, #tpu.memory_space<vmem>>, vector<1x16x16x128xbf16>
    %12 = vector.shape_cast %11 : vector<1x16x16x128xbf16> to vector<16x16x128xbf16>
    %13 = vector.shape_cast %12 : vector<16x16x128xbf16> to vector<256x128xbf16>
    %c0_16 = arith.constant 0 : index
    %c0_17 = arith.constant 0 : index
    %14 = vector.load %arg6[%c0_16, %c0_17] : memref<256x128xf32, #tpu.memory_space<vmem>>, vector<256x128xf32>
    %c1_18 = arith.constant 1 : index
    %c0_19 = arith.constant 0 : index
    %c0_20 = arith.constant 0 : index
    %15 = vector.load %arg3[%c1_18, %c0_19, %c0_20] : memref<9x128x128xbf16, #tpu.memory_space<vmem>>, vector<1x128x128xbf16>
    %16 = vector.shape_cast %15 : vector<1x128x128xbf16> to vector<128x128xbf16>
    %cst_21 = arith.constant dense<0.000000e+00> : vector<256x128xf32>
    %17 = tpu.matmul %13, %16, %cst_21 {dimension_numbers = #tpu.dot_dimension_numbers<[1], [0], [0], [1], [0, 0, 1, 1], [], []>} : vector<256x128xbf16>, vector<128x128xbf16>, vector<256x128xf32> -> vector<256x128xf32>
    %18 = arith.addf %14, %17 : vector<256x128xf32>
    %c0_22 = arith.constant 0 : index
    %c0_23 = arith.constant 0 : index
    %19 = vector.load %arg6[%c0_22, %c0_23] : memref<256x128xf32, #tpu.memory_space<vmem>>, vector<256x128xf32>
    tpu.vector_store %arg6[%c0_22, %c0_23], %18 {strides = array<i32>} : memref<256x128xf32, #tpu.memory_space<vmem>>, vector<256x128xf32>,
    %c0_24 = arith.constant 0 : index
    %c0_25 = arith.constant 0 : index
    %c2 = arith.constant 2 : index
    %c0_26 = arith.constant 0 : index
    %20 = vector.load %arg2[%c0_24, %c0_25, %c2, %c0_26] : memref<1x18x18x128xbf16, #tpu.memory_space<vmem>>, vector<1x16x16x128xbf16>
    %21 = vector.shape_cast %20 : vector<1x16x16x128xbf16> to vector<16x16x128xbf16>
    %22 = vector.shape_cast %21 : vector<16x16x128xbf16> to vector<256x128xbf16>
    %c0_27 = arith.constant 0 : index
    %c0_28 = arith.constant 0 : index
    %23 = vector.load %arg6[%c0_27, %c0_28] : memref<256x128xf32, #tpu.memory_space<vmem>>, vector<256x128xf32>
    %c2_29 = arith.constant 2 : index
    %c0_30 = arith.constant 0 : index
    %c0_31 = arith.constant 0 : index
    %24 = vector.load %arg3[%c2_29, %c0_30, %c0_31] : memref<9x128x128xbf16, #tpu.memory_space<vmem>>, vector<1x128x128xbf16>
    %25 = vector.shape_cast %24 : vector<1x128x128xbf16> to vector<128x128xbf16>
    %cst_32 = arith.constant dense<0.000000e+00> : vector<256x128xf32>
    %26 = tpu.matmul %22, %25, %cst_32 {dimension_numbers = #tpu.dot_dimension_numbers<[1], [0], [0], [1], [0, 0, 1, 1], [], []>} : vector<256x128xbf16>, vector<128x128xbf16>, vector<256x128xf32> -> vector<256x128xf32>
    %27 = arith.addf %23, %26 : vector<256x128xf32>
    %c0_33 = arith.constant 0 : index
    %c0_34 = arith.constant 0 : index
    %28 = vector.load %arg6[%c0_33, %c0_34] : memref<256x128xf32, #tpu.memory_space<vmem>>, vector<256x128xf32>
    tpu.vector_store %arg6[%c0_33, %c0_34], %27 {strides = array<i32>} : memref<256x128xf32, #tpu.memory_space<vmem>>, vector<256x128xf32>,
    %c0_35 = arith.constant 0 : index
    %c1_36 = arith.constant 1 : index
    %c0_37 = arith.constant 0 : index
    %c0_38 = arith.constant 0 : index
    %29 = vector.load %arg2[%c0_35, %c1_36, %c0_37, %c0_38] : memref<1x18x18x128xbf16, #tpu.memory_space<vmem>>, vector<1x16x16x128xbf16>
    %30 = vector.shape_cast %29 : vector<1x16x16x128xbf16> to vector<16x16x128xbf16>
    %31 = vector.shape_cast %30 : vector<16x16x128xbf16> to vector<256x128xbf16>
    %c0_39 = arith.constant 0 : index
    %c0_40 = arith.constant 0 : index
    %32 = vector.load %arg6[%c0_39, %c0_40] : memref<256x128xf32, #tpu.memory_space<vmem>>, vector<256x128xf32>
    %c3 = arith.constant 3 : index
    %c0_41 = arith.constant 0 : index
    %c0_42 = arith.constant 0 : index
    %33 = vector.load %arg3[%c3, %c0_41, %c0_42] : memref<9x128x128xbf16, #tpu.memory_space<vmem>>, vector<1x128x128xbf16>
    %34 = vector.shape_cast %33 : vector<1x128x128xbf16> to vector<128x128xbf16>
    %cst_43 = arith.constant dense<0.000000e+00> : vector<256x128xf32>
    %35 = tpu.matmul %31, %34, %cst_43 {dimension_numbers = #tpu.dot_dimension_numbers<[1], [0], [0], [1], [0, 0, 1, 1], [], []>} : vector<256x128xbf16>, vector<128x128xbf16>, vector<256x128xf32> -> vector<256x128xf32>
    %36 = arith.addf %32, %35 : vector<256x128xf32>
    %c0_44 = arith.constant 0 : index
    %c0_45 = arith.constant 0 : index
    %37 = vector.load %arg6[%c0_44, %c0_45] : memref<256x128xf32, #tpu.memory_space<vmem>>, vector<256x128xf32>
    tpu.vector_store %arg6[%c0_44, %c0_45], %36 {strides = array<i32>} : memref<256x128xf32, #tpu.memory_space<vmem>>, vector<256x128xf32>,
    %c0_46 = arith.constant 0 : index
    %c1_47 = arith.constant 1 : index
    %c1_48 = arith.constant 1 : index
    %c0_49 = arith.constant 0 : index
    %38 = vector.load %arg2[%c0_46, %c1_47, %c1_48, %c0_49] : memref<1x18x18x128xbf16, #tpu.memory_space<vmem>>, vector<1x16x16x128xbf16>
    %39 = vector.shape_cast %38 : vector<1x16x16x128xbf16> to vector<16x16x128xbf16>
    %40 = vector.shape_cast %39 : vector<16x16x128xbf16> to vector<256x128xbf16>
    %c0_50 = arith.constant 0 : index
    %c0_51 = arith.constant 0 : index
    %41 = vector.load %arg6[%c0_50, %c0_51] : memref<256x128xf32, #tpu.memory_space<vmem>>, vector<256x128xf32>
    %c4 = arith.constant 4 : index
    %c0_52 = arith.constant 0 : index
    %c0_53 = arith.constant 0 : index
    %42 = vector.load %arg3[%c4, %c0_52, %c0_53] : memref<9x128x128xbf16, #tpu.memory_space<vmem>>, vector<1x128x128xbf16>
    %43 = vector.shape_cast %42 : vector<1x128x128xbf16> to vector<128x128xbf16>
    %cst_54 = arith.constant dense<0.000000e+00> : vector<256x128xf32>
    %44 = tpu.matmul %40, %43, %cst_54 {dimension_numbers = #tpu.dot_dimension_numbers<[1], [0], [0], [1], [0, 0, 1, 1], [], []>} : vector<256x128xbf16>, vector<128x128xbf16>, vector<256x128xf32> -> vector<256x128xf32>
    %45 = arith.addf %41, %44 : vector<256x128xf32>
    %c0_55 = arith.constant 0 : index
    %c0_56 = arith.constant 0 : index
    %46 = vector.load %arg6[%c0_55, %c0_56] : memref<256x128xf32, #tpu.memory_space<vmem>>, vector<256x128xf32>
    tpu.vector_store %arg6[%c0_55, %c0_56], %45 {strides = array<i32>} : memref<256x128xf32, #tpu.memory_space<vmem>>, vector<256x128xf32>,
    %c0_57 = arith.constant 0 : index
    %c1_58 = arith.constant 1 : index
    %c2_59 = arith.constant 2 : index
    %c0_60 = arith.constant 0 : index
    %47 = vector.load %arg2[%c0_57, %c1_58, %c2_59, %c0_60] : memref<1x18x18x128xbf16, #tpu.memory_space<vmem>>, vector<1x16x16x128xbf16>
    %48 = vector.shape_cast %47 : vector<1x16x16x128xbf16> to vector<16x16x128xbf16>
    %49 = vector.shape_cast %48 : vector<16x16x128xbf16> to vector<256x128xbf16>
    %c0_61 = arith.constant 0 : index
    %c0_62 = arith.constant 0 : index
    %50 = vector.load %arg6[%c0_61, %c0_62] : memref<256x128xf32, #tpu.memory_space<vmem>>, vector<256x128xf32>
    %c5 = arith.constant 5 : index
    %c0_63 = arith.constant 0 : index
    %c0_64 = arith.constant 0 : index
    %51 = vector.load %arg3[%c5, %c0_63, %c0_64] : memref<9x128x128xbf16, #tpu.memory_space<vmem>>, vector<1x128x128xbf16>
    %52 = vector.shape_cast %51 : vector<1x128x128xbf16> to vector<128x128xbf16>
    %cst_65 = arith.constant dense<0.000000e+00> : vector<256x128xf32>
    %53 = tpu.matmul %49, %52, %cst_65 {dimension_numbers = #tpu.dot_dimension_numbers<[1], [0], [0], [1], [0, 0, 1, 1], [], []>} : vector<256x128xbf16>, vector<128x128xbf16>, vector<256x128xf32> -> vector<256x128xf32>
    %54 = arith.addf %50, %53 : vector<256x128xf32>
    %c0_66 = arith.constant 0 : index
    %c0_67 = arith.constant 0 : index
    %55 = vector.load %arg6[%c0_66, %c0_67] : memref<256x128xf32, #tpu.memory_space<vmem>>, vector<256x128xf32>
    tpu.vector_store %arg6[%c0_66, %c0_67], %54 {strides = array<i32>} : memref<256x128xf32, #tpu.memory_space<vmem>>, vector<256x128xf32>,
    %c0_68 = arith.constant 0 : index
    %c2_69 = arith.constant 2 : index
    %c0_70 = arith.constant 0 : index
    %c0_71 = arith.constant 0 : index
    %56 = vector.load %arg2[%c0_68, %c2_69, %c0_70, %c0_71] : memref<1x18x18x128xbf16, #tpu.memory_space<vmem>>, vector<1x16x16x128xbf16>
    %57 = vector.shape_cast %56 : vector<1x16x16x128xbf16> to vector<16x16x128xbf16>
    %58 = vector.shape_cast %57 : vector<16x16x128xbf16> to vector<256x128xbf16>
    %c0_72 = arith.constant 0 : index
    %c0_73 = arith.constant 0 : index
    %59 = vector.load %arg6[%c0_72, %c0_73] : memref<256x128xf32, #tpu.memory_space<vmem>>, vector<256x128xf32>
    %c6 = arith.constant 6 : index
    %c0_74 = arith.constant 0 : index
    %c0_75 = arith.constant 0 : index
    %60 = vector.load %arg3[%c6, %c0_74, %c0_75] : memref<9x128x128xbf16, #tpu.memory_space<vmem>>, vector<1x128x128xbf16>
    %61 = vector.shape_cast %60 : vector<1x128x128xbf16> to vector<128x128xbf16>
    %cst_76 = arith.constant dense<0.000000e+00> : vector<256x128xf32>
    %62 = tpu.matmul %58, %61, %cst_76 {dimension_numbers = #tpu.dot_dimension_numbers<[1], [0], [0], [1], [0, 0, 1, 1], [], []>} : vector<256x128xbf16>, vector<128x128xbf16>, vector<256x128xf32> -> vector<256x128xf32>
    %63 = arith.addf %59, %62 : vector<256x128xf32>
    %c0_77 = arith.constant 0 : index
    %c0_78 = arith.constant 0 : index
    %64 = vector.load %arg6[%c0_77, %c0_78] : memref<256x128xf32, #tpu.memory_space<vmem>>, vector<256x128xf32>
    tpu.vector_store %arg6[%c0_77, %c0_78], %63 {strides = array<i32>} : memref<256x128xf32, #tpu.memory_space<vmem>>, vector<256x128xf32>,
    %c0_79 = arith.constant 0 : index
    %c2_80 = arith.constant 2 : index
    %c1_81 = arith.constant 1 : index
    %c0_82 = arith.constant 0 : index
    %65 = vector.load %arg2[%c0_79, %c2_80, %c1_81, %c0_82] : memref<1x18x18x128xbf16, #tpu.memory_space<vmem>>, vector<1x16x16x128xbf16>
    %66 = vector.shape_cast %65 : vector<1x16x16x128xbf16> to vector<16x16x128xbf16>
    %67 = vector.shape_cast %66 : vector<16x16x128xbf16> to vector<256x128xbf16>
    %c0_83 = arith.constant 0 : index
    %c0_84 = arith.constant 0 : index
    %68 = vector.load %arg6[%c0_83, %c0_84] : memref<256x128xf32, #tpu.memory_space<vmem>>, vector<256x128xf32>
    %c7 = arith.constant 7 : index
    %c0_85 = arith.constant 0 : index
    %c0_86 = arith.constant 0 : index
    %69 = vector.load %arg3[%c7, %c0_85, %c0_86] : memref<9x128x128xbf16, #tpu.memory_space<vmem>>, vector<1x128x128xbf16>
    %70 = vector.shape_cast %69 : vector<1x128x128xbf16> to vector<128x128xbf16>
    %cst_87 = arith.constant dense<0.000000e+00> : vector<256x128xf32>
    %71 = tpu.matmul %67, %70, %cst_87 {dimension_numbers = #tpu.dot_dimension_numbers<[1], [0], [0], [1], [0, 0, 1, 1], [], []>} : vector<256x128xbf16>, vector<128x128xbf16>, vector<256x128xf32> -> vector<256x128xf32>
    %72 = arith.addf %68, %71 : vector<256x128xf32>
    %c0_88 = arith.constant 0 : index
    %c0_89 = arith.constant 0 : index
    %73 = vector.load %arg6[%c0_88, %c0_89] : memref<256x128xf32, #tpu.memory_space<vmem>>, vector<256x128xf32>
    tpu.vector_store %arg6[%c0_88, %c0_89], %72 {strides = array<i32>} : memref<256x128xf32, #tpu.memory_space<vmem>>, vector<256x128xf32>,
    %c0_90 = arith.constant 0 : index
    %c2_91 = arith.constant 2 : index
    %c2_92 = arith.constant 2 : index
    %c0_93 = arith.constant 0 : index
    %74 = vector.load %arg2[%c0_90, %c2_91, %c2_92, %c0_93] : memref<1x18x18x128xbf16, #tpu.memory_space<vmem>>, vector<1x16x16x128xbf16>
    %75 = vector.shape_cast %74 : vector<1x16x16x128xbf16> to vector<16x16x128xbf16>
    %76 = vector.shape_cast %75 : vector<16x16x128xbf16> to vector<256x128xbf16>
    %c0_94 = arith.constant 0 : index
    %c0_95 = arith.constant 0 : index
    %77 = vector.load %arg6[%c0_94, %c0_95] : memref<256x128xf32, #tpu.memory_space<vmem>>, vector<256x128xf32>
    %c8 = arith.constant 8 : index
    %c0_96 = arith.constant 0 : index
    %c0_97 = arith.constant 0 : index
    %78 = vector.load %arg3[%c8, %c0_96, %c0_97] : memref<9x128x128xbf16, #tpu.memory_space<vmem>>, vector<1x128x128xbf16>
    %79 = vector.shape_cast %78 : vector<1x128x128xbf16> to vector<128x128xbf16>
    %cst_98 = arith.constant dense<0.000000e+00> : vector<256x128xf32>
    %80 = tpu.matmul %76, %79, %cst_98 {dimension_numbers = #tpu.dot_dimension_numbers<[1], [0], [0], [1], [0, 0, 1, 1], [], []>} : vector<256x128xbf16>, vector<128x128xbf16>, vector<256x128xf32> -> vector<256x128xf32>
    %81 = arith.addf %77, %80 : vector<256x128xf32>
    %c0_99 = arith.constant 0 : index
    %c0_100 = arith.constant 0 : index
    %82 = vector.load %arg6[%c0_99, %c0_100] : memref<256x128xf32, #tpu.memory_space<vmem>>, vector<256x128xf32>
    tpu.vector_store %arg6[%c0_99, %c0_100], %81 {strides = array<i32>} : memref<256x128xf32, #tpu.memory_space<vmem>>, vector<256x128xf32>,
    %c0_101 = arith.constant 0 : index
    %c0_102 = arith.constant 0 : index
    %83 = vector.load %arg6[%c0_101, %c0_102] : memref<256x128xf32, #tpu.memory_space<vmem>>, vector<256x128xf32>
    %c0_103 = arith.constant 0 : index
    %c0_104 = arith.constant 0 : index
    %c0_105 = arith.constant 0 : index
    %84 = vector.load %arg4[%c0_103, %c0_104, %c0_105] : memref<1x256x128xf32, #tpu.memory_space<vmem>>, vector<1x256x128xf32>
    %85 = vector.shape_cast %84 : vector<1x256x128xf32> to vector<256x128xf32>
    %86 = vector.shape_cast %83 : vector<256x128xf32> to vector<1x256x128xf32>
    tpu.vector_store %arg4[%c0_103, %c0_104, %c0_105], %86 {strides = array<i32>} : memref<1x256x128xf32, #tpu.memory_space<vmem>>, vector<1x256x128xf32>,
    %cst_106 = arith.constant dense<0.000000e+00> : vector<128xf32>
    %87 = vector.multi_reduction <add>, %83, %cst_106 [0] : vector<256x128xf32> to vector<128xf32>
    %88 = vector.shape_cast %87 : vector<128xf32> to vector<1x128xf32>
    %c0_107 = arith.constant 0 : index
    %c0_108 = arith.constant 0 : index
    %c0_109 = arith.constant 0 : index
    %89 = vector.load %arg5[%c0_107, %c0_108, %c0_109] : memref<1x2x128xf32, #tpu.memory_space<vmem>>, vector<1x1x128xf32>
    %90 = vector.shape_cast %89 : vector<1x1x128xf32> to vector<1x128xf32>
    %91 = vector.shape_cast %88 : vector<1x128xf32> to vector<1x1x128xf32>
    tpu.vector_store %arg5[%c0_107, %c0_108, %c0_109], %91 {strides = array<i32>} : memref<1x2x128xf32, #tpu.memory_space<vmem>>, vector<1x1x128xf32>,
    %92 = arith.mulf %83, %83 : vector<256x128xf32>
    %cst_110 = arith.constant dense<0.000000e+00> : vector<128xf32>
    %93 = vector.multi_reduction <add>, %92, %cst_110 [0] : vector<256x128xf32> to vector<128xf32>
    %94 = vector.shape_cast %93 : vector<128xf32> to vector<1x128xf32>
    %c0_111 = arith.constant 0 : index
    %c1_112 = arith.constant 1 : index
    %c0_113 = arith.constant 0 : index
    %95 = vector.load %arg5[%c0_111, %c1_112, %c0_113] : memref<1x2x128xf32, #tpu.memory_space<vmem>>, vector<1x1x128xf32>
    %96 = vector.shape_cast %95 : vector<1x1x128xf32> to vector<1x128xf32>
    %97 = vector.shape_cast %94 : vector<1x128xf32> to vector<1x1x128xf32>
    tpu.vector_store %arg5[%c0_111, %c1_112, %c0_113], %97 {strides = array<i32>} : memref<1x2x128xf32, #tpu.memory_space<vmem>>, vector<1x1x128xf32>,
    return
  }
  func.func @transform_0(%arg0: i32, %arg1: i32) -> (i32, i32, i32, i32) {
    %c0_i32 = arith.constant 0 : i32
    %c0_i32_0 = arith.constant 0 : i32
    %c0_i32_1 = arith.constant 0 : i32
    %c0_i32_2 = arith.constant 0 : i32
    return %arg1, %c0_i32, %c0_i32_0, %c0_i32_1 : i32, i32, i32, i32
  }
  func.func @transform_1(%arg0: i32, %arg1: i32) -> (i32, i32, i32) {
    %c0_i32 = arith.constant 0 : i32
    %c0_i32_0 = arith.constant 0 : i32
    %c0_i32_1 = arith.constant 0 : i32
    return %c0_i32, %c0_i32_0, %arg0 : i32, i32, i32
  }
  func.func @transform_2(%arg0: i32, %arg1: i32) -> (i32, i32, i32) {
    %c0_i32 = arith.constant 0 : i32
    %c0_i32_0 = arith.constant 0 : i32
    return %arg1, %c0_i32, %arg0 : i32, i32, i32
  }
  func.func @transform_3(%arg0: i32, %arg1: i32) -> (i32, i32, i32) {
    %c0_i32 = arith.constant 0 : i32
    %c0_i32_0 = arith.constant 0 : i32
    return %arg1, %c0_i32, %arg0 : i32, i32, i32
  }
}

module attributes {stable_mosaic.version = 11 : i64} {
  func.func @_scale_shift_relu_kernel(%arg0: i32, %arg1: i32, %arg2: memref<512x128xf32, #tpu.memory_space<vmem>>, %arg3: memref<1x128xf32, #tpu.memory_space<vmem>>, %arg4: memref<1x128xf32, #tpu.memory_space<vmem>>, %arg5: memref<512x128xbf16, #tpu.memory_space<vmem>>) attributes {dimension_semantics = [#tpu.dimension_semantics<parallel>, #tpu.dimension_semantics<parallel>], iteration_bounds = array<i64: 1, 1>, scalar_prefetch = 0 : i64, scratch_operands = 0 : i64, tpu.core_type = #tpu.core_type<tc>, window_params = [{transform_indices = @transform_0, window_bounds = array<i64: 512, 128>}, {transform_indices = @transform_1, window_bounds = array<i64: 1, 128>}, {transform_indices = @transform_2, window_bounds = array<i64: 1, 128>}, {transform_indices = @transform_3, window_bounds = array<i64: 512, 128>}]} {
    %c0 = arith.constant 0 : index
    %c0_0 = arith.constant 0 : index
    %0 = vector.load %arg2[%c0, %c0_0] : memref<512x128xf32, #tpu.memory_space<vmem>>, vector<512x128xf32>
    %c0_1 = arith.constant 0 : index
    %c0_2 = arith.constant 0 : index
    %1 = vector.load %arg3[%c0_1, %c0_2] : memref<1x128xf32, #tpu.memory_space<vmem>>, vector<1x128xf32>
    %2 = vector.broadcast %1 : vector<1x128xf32> to vector<512x128xf32>
    %3 = arith.mulf %0, %2 : vector<512x128xf32>
    %c0_3 = arith.constant 0 : index
    %c0_4 = arith.constant 0 : index
    %4 = vector.load %arg4[%c0_3, %c0_4] : memref<1x128xf32, #tpu.memory_space<vmem>>, vector<1x128xf32>
    %5 = vector.broadcast %4 : vector<1x128xf32> to vector<512x128xf32>
    %6 = arith.addf %3, %5 : vector<512x128xf32>
    %cst = arith.constant 0.000000e+00 : f32
    %7 = vector.broadcast %cst : f32 to vector<512x128xf32>
    %8 = arith.maximumf %6, %7 : vector<512x128xf32>
    %9 = arith.truncf %8 : vector<512x128xf32> to vector<512x128xbf16>
    %c0_5 = arith.constant 0 : index
    %c0_6 = arith.constant 0 : index
    %10 = vector.load %arg5[%c0_5, %c0_6] : memref<512x128xbf16, #tpu.memory_space<vmem>>, vector<512x128xbf16>
    tpu.vector_store %arg5[%c0_5, %c0_6], %9 {strides = array<i32>} : memref<512x128xbf16, #tpu.memory_space<vmem>>, vector<512x128xbf16>,
    return
  }
  func.func @transform_0(%arg0: i32, %arg1: i32) -> (i32, i32) {
    %c0_i32 = arith.constant 0 : i32
    return %arg1, %arg0 : i32, i32
  }
  func.func @transform_1(%arg0: i32, %arg1: i32) -> (i32, i32) {
    %c0_i32 = arith.constant 0 : i32
    %c0_i32_0 = arith.constant 0 : i32
    return %c0_i32, %arg0 : i32, i32
  }
  func.func @transform_2(%arg0: i32, %arg1: i32) -> (i32, i32) {
    %c0_i32 = arith.constant 0 : i32
    %c0_i32_0 = arith.constant 0 : i32
    return %c0_i32, %arg0 : i32, i32
  }
  func.func @transform_3(%arg0: i32, %arg1: i32) -> (i32, i32) {
    %c0_i32 = arith.constant 0 : i32
    return %arg1, %arg0 : i32, i32
  }
}

module attributes {stable_mosaic.version = 11 : i64} {
  func.func @_scale_shift_add_relu_kernel(%arg0: i32, %arg1: i32, %arg2: memref<512x128xf32, #tpu.memory_space<vmem>>, %arg3: memref<1x128xf32, #tpu.memory_space<vmem>>, %arg4: memref<1x128xf32, #tpu.memory_space<vmem>>, %arg5: memref<512x128xf32, #tpu.memory_space<vmem>>, %arg6: memref<512x128xf32, #tpu.memory_space<vmem>>) attributes {dimension_semantics = [#tpu.dimension_semantics<parallel>, #tpu.dimension_semantics<parallel>], iteration_bounds = array<i64: 1, 1>, scalar_prefetch = 0 : i64, scratch_operands = 0 : i64, tpu.core_type = #tpu.core_type<tc>, window_params = [{transform_indices = @transform_0, window_bounds = array<i64: 512, 128>}, {transform_indices = @transform_1, window_bounds = array<i64: 1, 128>}, {transform_indices = @transform_2, window_bounds = array<i64: 1, 128>}, {transform_indices = @transform_3, window_bounds = array<i64: 512, 128>}, {transform_indices = @transform_4, window_bounds = array<i64: 512, 128>}]} {
    %c0 = arith.constant 0 : index
    %c0_0 = arith.constant 0 : index
    %0 = vector.load %arg2[%c0, %c0_0] : memref<512x128xf32, #tpu.memory_space<vmem>>, vector<512x128xf32>
    %c0_1 = arith.constant 0 : index
    %c0_2 = arith.constant 0 : index
    %1 = vector.load %arg3[%c0_1, %c0_2] : memref<1x128xf32, #tpu.memory_space<vmem>>, vector<1x128xf32>
    %2 = vector.broadcast %1 : vector<1x128xf32> to vector<512x128xf32>
    %3 = arith.mulf %0, %2 : vector<512x128xf32>
    %c0_3 = arith.constant 0 : index
    %c0_4 = arith.constant 0 : index
    %4 = vector.load %arg4[%c0_3, %c0_4] : memref<1x128xf32, #tpu.memory_space<vmem>>, vector<1x128xf32>
    %5 = vector.broadcast %4 : vector<1x128xf32> to vector<512x128xf32>
    %6 = arith.addf %3, %5 : vector<512x128xf32>
    %c0_5 = arith.constant 0 : index
    %c0_6 = arith.constant 0 : index
    %7 = vector.load %arg5[%c0_5, %c0_6] : memref<512x128xf32, #tpu.memory_space<vmem>>, vector<512x128xf32>
    %8 = arith.addf %6, %7 : vector<512x128xf32>
    %cst = arith.constant 0.000000e+00 : f32
    %9 = vector.broadcast %cst : f32 to vector<512x128xf32>
    %10 = arith.maximumf %8, %9 : vector<512x128xf32>
    %c0_7 = arith.constant 0 : index
    %c0_8 = arith.constant 0 : index
    %11 = vector.load %arg6[%c0_7, %c0_8] : memref<512x128xf32, #tpu.memory_space<vmem>>, vector<512x128xf32>
    tpu.vector_store %arg6[%c0_7, %c0_8], %10 {strides = array<i32>} : memref<512x128xf32, #tpu.memory_space<vmem>>, vector<512x128xf32>,
    return
  }
  func.func @transform_0(%arg0: i32, %arg1: i32) -> (i32, i32) {
    %c0_i32 = arith.constant 0 : i32
    return %arg1, %arg0 : i32, i32
  }
  func.func @transform_1(%arg0: i32, %arg1: i32) -> (i32, i32) {
    %c0_i32 = arith.constant 0 : i32
    %c0_i32_0 = arith.constant 0 : i32
    return %c0_i32, %arg0 : i32, i32
  }
  func.func @transform_2(%arg0: i32, %arg1: i32) -> (i32, i32) {
    %c0_i32 = arith.constant 0 : i32
    %c0_i32_0 = arith.constant 0 : i32
    return %c0_i32, %arg0 : i32, i32
  }
  func.func @transform_3(%arg0: i32, %arg1: i32) -> (i32, i32) {
    %c0_i32 = arith.constant 0 : i32
    return %arg1, %arg0 : i32, i32
  }
  func.func @transform_4(%arg0: i32, %arg1: i32) -> (i32, i32) {
    %c0_i32 = arith.constant 0 : i32
    return %arg1, %arg0 : i32, i32
  }
}

</mosaic_0001>

<bundles_post_ra>
// kernel: basic_block_forward.7
= control target key start
LH: loop header
LB: loop body
LE: loop exit
PB: predicated region body
PF: predicated region fallthrough
CT: control target
= control target key end

     0   :  { %s1218_s0 = inlined_call_operand.vmem [shape: f32[512,128], index: 0, kind: input, shape index: {}]   ;;  %s1219_s1 = inlined_call_operand.vmem [shape: f32[1,128], index: 1, kind: input, shape index: {}]   ;;  %s1220_s2 = inlined_call_operand.vmem [shape: f32[1,128], index: 2, kind: input, shape index: {}]   ;;  %s1221_s3 = inlined_call_operand.vmem [shape: f32[512,128], index: 3, kind: input, shape index: {}]   ;;  %s1222_s4 = inlined_call_operand.vmem [shape: f32[512,128], index: 4, kind: output, shape index: {}]  }
   0x1   :  { %v17_v0 = vld [vmem:[%s1218_s0] sm:$0xff]  ;;  %v18_v4 = vld [vmem:[%s1218_s0 + $0x8] sm:$0xff]  ;;  %v19_v5 = vld [vmem:[%s1218_s0 + $0x10] sm:$0xff] }
   0x2   :  { %v510_v1 = vld [vmem:[%s1219_s1] ss:$0 sm:$0xff]  ;;  %v218_v8 = vld [vmem:[%s1221_s3 + $0x8] sm:$0xff]  ;;  %v20_v10 = vld [vmem:[%s1218_s0 + $0x18] sm:$0xff] }
   0x3   :  { %v515_v2 = vld [vmem:[%s1220_s2] ss:$0 sm:$0xff]  ;;  %v85_v3 = vmul.f32 %v510_v1, %v17_v0  ;;  %v86_v7 = vmul.f32 %v510_v1, %v18_v4  ;;  %v87_v9 = vmul.f32 %v510_v1, %v19_v5  ;;  %v219_v12 = vld [vmem:[%s1221_s3 + $0x10] sm:$0xff]  ;;  %v88_v13 = vmul.f32 %v510_v1, %v20_v10  ;;  %v22_v15 = vld [vmem:[%s1218_s0 + $0x28] sm:$0xff] }
   0x4   :  { %v217_v6 = vld [vmem:[%s1221_s3] sm:$0xff]  ;;  %v220_v18 = vld [vmem:[%s1221_s3 + $0x18] sm:$0xff]  ;;  %v90_v20 = vmul.f32 %v510_v1, %v22_v15  ;;  %v23_v21 = vld [vmem:[%s1218_s0 + $0x30] sm:$0xff] }
   0x5   :  { %v153_v11 = vadd.f32 %v515_v2, %v85_v3  ;;  %v21_v14 = vld [vmem:[%s1218_s0 + $0x20] sm:$0xff]  ;;  %v154_v16 = vadd.f32 %v515_v2, %v86_v7  ;;  %v155_v17 = vadd.f32 %v515_v2, %v87_v9  ;;  %v156_v23 = vadd.f32 %v515_v2, %v88_v13  ;;  %v222_v25 = vld [vmem:[%s1221_s3 + $0x28] sm:$0xff]  ;;  %v24_v27 = vld [vmem:[%s1218_s0 + $0x38] sm:$0xff] }
   0x6   :  { %v89_v19 = vmul.f32 %v510_v1, %v21_v14  ;;  %v221_v24 = vld [vmem:[%s1221_s3 + $0x20] sm:$0xff]  ;;  %v91_v26 = vmul.f32 %v510_v1, %v23_v21  ;;  %v158_v31 = vadd.f32 %v515_v2, %v90_v20  ;;  %v223_v32 = vld [vmem:[%s1221_s3 + $0x30] sm:$0xff]  ;;  %v92_v37 = vmul.f32 %v510_v1, %v24_v27  ;;  %v26_v38 = vld [vmem:[%s1218_s0 + $0x48] sm:$0xff] }
   0x7   :  { %v281_v22 = vadd.f32 %v217_v6, %v153_v11  ;;  %v282_v28 = vadd.f32 %v218_v8, %v154_v16  ;;  %v283_v29 = vadd.f32 %v219_v12, %v155_v17  ;;  %v25_v33 = vld [vmem:[%s1218_s0 + $0x40] sm:$0xff]  ;;  %v284_v35 = vadd.f32 %v220_v18, %v156_v23  ;;  %v27_v39 = vld [vmem:[%s1218_s0 + $0x50] sm:$0xff]  ;;  %v224_v44 = vld [vmem:[%s1221_s3 + $0x38] sm:$0xff] }
   0x8   :  { %v157_v30 = vadd.f32 %v515_v2, %v89_v19  ;;  %v159_v36 = vadd.f32 %v515_v2, %v91_v26  ;;  %v286_v43 = vadd.f32 %v222_v25, %v158_v31  ;;  %v28_v45 = vld [vmem:[%s1218_s0 + $0x58] sm:$0xff]  ;;  %v160_v48 = vadd.f32 %v515_v2, %v92_v37  ;;  %v29_v50 = vld [vmem:[%s1218_s0 + $0x60] sm:$0xff]  ;;  %v30_v51 = vld [vmem:[%s1218_s0 + $0x68] sm:$0xff] }
   0x9   :  { %v345_v34 = vmax.f32 %v281_v22, 0.0  ;;  %v346_v40 = vmax.f32 %v282_v28, 0.0  ;;  %v347_v41 = vmax.f32 %v283_v29, 0.0  ;;  %v348_v46 = vmax.f32 %v284_v35, 0.0  ;;  %v225_v54 = vld [vmem:[%s1221_s3 + $0x40] sm:$0xff]  ;;  %v31_v57 = vld [vmem:[%s1218_s0 + $0x70] sm:$0xff] }
   0xa   :  { %v285_v42 = vadd.f32 %v221_v24, %v157_v30  ;;  %v287_v47 = vadd.f32 %v223_v32, %v159_v36  ;;  %v93_v49 = vmul.f32 %v510_v1, %v25_v33  ;;  %v350_v53 = vmax.f32 %v286_v43, 0.0  ;;  %v226_v61 = vld [vmem:[%s1221_s3 + $0x48] sm:$0xff]  ;;  %v227_v62 = vld [vmem:[%s1221_s3 + $0x50] sm:$0xff]  ;;  %v228_v4 = vld [vmem:[%s1221_s3 + $0x58] sm:$0xff] }
   0xb   :  { %409 = vst [vmem:[%s1222_s4] sm:$0xff] %v345_v34  ;;  %v94_v55 = vmul.f32 %v510_v1, %v26_v38  ;;  %v95_v56 = vmul.f32 %v510_v1, %v27_v39  ;;  %v288_v59 = vadd.f32 %v224_v44, %v160_v48  ;;  %v96_v63 = vmul.f32 %v510_v1, %v28_v45  ;;  %v32_v7 = vld [vmem:[%s1218_s0 + $0x78] sm:$0xff]  ;;  %v229_v11 = vld [vmem:[%s1221_s3 + $0x60] sm:$0xff]  ;;  %v230_v12 = vld [vmem:[%s1221_s3 + $0x68] sm:$0xff] }
   0xc   :  { %410 = vst [vmem:[%s1222_s4 + $0x8] sm:$0xff] %v346_v40  ;;  %v349_v52 = vmax.f32 %v285_v42, 0.0  ;;  %v351_v58 = vmax.f32 %v287_v47, 0.0  ;;  %v161_v60 = vadd.f32 %v515_v2, %v93_v49  ;;  %v97_v5 = vmul.f32 %v510_v1, %v29_v50  ;;  %v231_v18 = vld [vmem:[%s1221_s3 + $0x70] sm:$0xff]  ;;  %v33_v19 = vld [vmem:[%s1218_s0 + $0x80] sm:$0xff]  ;;  %v34_v24 = vld [vmem:[%s1218_s0 + $0x88] sm:$0xff] }
   0xd   :  { %411 = vst [vmem:[%s1222_s4 + $0x10] sm:$0xff] %v347_v41  ;;  %v162_v0 = vadd.f32 %v515_v2, %v94_v55  ;;  %v163_v3 = vadd.f32 %v515_v2, %v95_v56  ;;  %v98_v6 = vmul.f32 %v510_v1, %v30_v51  ;;  %v352_v8 = vmax.f32 %v288_v59, 0.0  ;;  %v35_v25 = vld [vmem:[%s1218_s0 + $0x90] sm:$0xff]  ;;  %v232_v30 = vld [vmem:[%s1221_s3 + $0x78] sm:$0xff]  ;;  %v37_v36 = vld [vmem:[%s1218_s0 + $0xa0] sm:$0xff] }
   0xe   :  { %412 = vst [vmem:[%s1222_s4 + $0x18] sm:$0xff] %v348_v46  ;;  %v289_v9 = vadd.f32 %v225_v54, %v161_v60  ;;  %v164_v10 = vadd.f32 %v515_v2, %v96_v63  ;;  %v99_v13 = vmul.f32 %v510_v1, %v31_v57  ;;  %v165_v16 = vadd.f32 %v515_v2, %v97_v5  ;;  %v36_v31 = vld [vmem:[%s1218_s0 + $0x98] sm:$0xff]  ;;  %v38_v37 = vld [vmem:[%s1218_s0 + $0xa8] sm:$0xff]  ;;  %v233_v40 = vld [vmem:[%s1221_s3 + $0x80] sm:$0xff] }
   0xf   :  { %413 = vst [vmem:[%s1222_s4 + $0x20] sm:$0xff] %v349_v52  ;;  %v290_v14 = vadd.f32 %v226_v61, %v162_v0  ;;  %v291_v15 = vadd.f32 %v227_v62, %v163_v3  ;;  %v166_v17 = vadd.f32 %v515_v2, %v98_v6  ;;  %v100_v23 = vmul.f32 %v510_v1, %v32_v7  ;;  %v39_v43 = vld [vmem:[%s1218_s0 + $0xb0] sm:$0xff]  ;;  %v234_v47 = vld [vmem:[%s1221_s3 + $0x88] sm:$0xff]  ;;  %v236_v52 = vld [vmem:[%s1221_s3 + $0x98] sm:$0xff] }
  0x10   :  { %414 = vst [vmem:[%s1222_s4 + $0x28] sm:$0xff] %v350_v53  ;;  %v353_v20 = vmax.f32 %v289_v9, 0.0  ;;  %v292_v21 = vadd.f32 %v228_v4, %v164_v10  ;;  %v167_v22 = vadd.f32 %v515_v2, %v99_v13  ;;  %v293_v28 = vadd.f32 %v229_v11, %v165_v16  ;;  %v235_v48 = vld [vmem:[%s1221_s3 + $0x90] sm:$0xff]  ;;  %v40_v55 = vld [vmem:[%s1218_s0 + $0xb8] sm:$0xff]  ;;  %v237_v59 = vld [vmem:[%s1221_s3 + $0xa0] sm:$0xff] }
  0x11   :  { %415 = vst [vmem:[%s1222_s4 + $0x30] sm:$0xff] %v351_v58  ;;  %v354_v26 = vmax.f32 %v290_v14, 0.0  ;;  %v355_v27 = vmax.f32 %v291_v15, 0.0  ;;  %v294_v29 = vadd.f32 %v230_v12, %v166_v17  ;;  %v168_v34 = vadd.f32 %v515_v2, %v100_v23  ;;  %v238_v60 = vld [vmem:[%s1221_s3 + $0xa8] sm:$0xff]  ;;  %v239_v4 = vld [vmem:[%s1221_s3 + $0xb0] sm:$0xff]  ;;  %v41_v5 = vld [vmem:[%s1218_s0 + $0xc0] sm:$0xff] }
  0x12   :  { %416 = vst [vmem:[%s1222_s4 + $0x38] sm:$0xff] %v352_v8  ;;  %v356_v32 = vmax.f32 %v292_v21, 0.0  ;;  %v295_v33 = vadd.f32 %v231_v18, %v167_v22  ;;  %v101_v35 = vmul.f32 %v510_v1, %v33_v19  ;;  %v357_v38 = vmax.f32 %v293_v28, 0.0  ;;  %v42_v10 = vld [vmem:[%s1218_s0 + $0xc8] sm:$0xff]  ;;  %v43_v11 = vld [vmem:[%s1218_s0 + $0xd0] sm:$0xff]  ;;  %v240_v16 = vld [vmem:[%s1221_s3 + $0xb8] sm:$0xff] }
  0x13   :  { %417 = vst [vmem:[%s1222_s4 + $0x40] sm:$0xff] %v353_v20  ;;  %v358_v39 = vmax.f32 %v294_v29, 0.0  ;;  %v102_v41 = vmul.f32 %v510_v1, %v34_v24  ;;  %v103_v42 = vmul.f32 %v510_v1, %v35_v25  ;;  %v296_v45 = vadd.f32 %v232_v30, %v168_v34  ;;  %v44_v17 = vld [vmem:[%s1218_s0 + $0xd8] sm:$0xff]  ;;  %v45_v22 = vld [vmem:[%s1218_s0 + $0xe0] sm:$0xff]  ;;  %v46_v23 = vld [vmem:[%s1218_s0 + $0xe8] sm:$0xff] }
  0x14   :  { %418 = vst [vmem:[%s1222_s4 + $0x48] sm:$0xff] %v354_v26  ;;  %v359_v44 = vmax.f32 %v295_v33, 0.0  ;;  %v169_v46 = vadd.f32 %v515_v2, %v101_v35  ;;  %v104_v49 = vmul.f32 %v510_v1, %v36_v31  ;;  %v105_v53 = vmul.f32 %v510_v1, %v37_v36  ;;  %v241_v26 = vld [vmem:[%s1221_s3 + $0xc0] sm:$0xff]  ;;  %v47_v29 = vld [vmem:[%s1218_s0 + $0xf0] sm:$0xff]  ;;  %v242_v33 = vld [vmem:[%s1221_s3 + $0xc8] sm:$0xff] }
  0x15   :  { %419 = vst [vmem:[%s1222_s4 + $0x50] sm:$0xff] %v355_v27  ;;  %v170_v50 = vadd.f32 %v515_v2, %v102_v41  ;;  %v171_v51 = vadd.f32 %v515_v2, %v103_v42  ;;  %v106_v54 = vmul.f32 %v510_v1, %v38_v37  ;;  %v360_v56 = vmax.f32 %v296_v45, 0.0  ;;  %v243_v34 = vld [vmem:[%s1221_s3 + $0xd0] sm:$0xff]  ;;  %v48_v41 = vld [vmem:[%s1218_s0 + $0xf8] sm:$0xff]  ;;  %v245_v45 = vld [vmem:[%s1221_s3 + $0xe0] sm:$0xff] }
  0x16   :  { %420 = vst [vmem:[%s1222_s4 + $0x58] sm:$0xff] %v356_v32  ;;  %v297_v57 = vadd.f32 %v233_v40, %v169_v46  ;;  %v172_v58 = vadd.f32 %v515_v2, %v104_v49  ;;  %v107_v61 = vmul.f32 %v510_v1, %v39_v43  ;;  %v173_v0 = vadd.f32 %v515_v2, %v105_v53  ;;  %v246_v46 = vld [vmem:[%s1221_s3 + $0xe8] sm:$0xff]  ;;  %v49_v53 = vld [vmem:[%s1218_s0 + $0x100] sm:$0xff] }
  0x17   :  { %421 = vst [vmem:[%s1222_s4 + $0x60] sm:$0xff] %v357_v38  ;;  %v298_v62 = vadd.f32 %v234_v47, %v170_v50  ;;  %v299_v63 = vadd.f32 %v235_v48, %v171_v51  ;;  %v174_v3 = vadd.f32 %v515_v2, %v106_v54  ;;  %v108_v9 = vmul.f32 %v510_v1, %v40_v55  ;;  %v244_v38 = vld [vmem:[%s1221_s3 + $0xd8] sm:$0xff] }
  0x18   :  { %422 = vst [vmem:[%s1222_s4 + $0x68] sm:$0xff] %v358_v39  ;;  %v361_v6 = vmax.f32 %v297_v57, 0.0  ;;  %v300_v7 = vadd.f32 %v236_v52, %v172_v58  ;;  %v175_v8 = vadd.f32 %v515_v2, %v107_v61  ;;  %v301_v14 = vadd.f32 %v237_v59, %v173_v0  ;;  %v247_v52 = vld [vmem:[%s1221_s3 + $0xf0] sm:$0xff]  ;;  %v50_v58 = vld [vmem:[%s1218_s0 + $0x108] sm:$0xff]  ;;  %v248_v0 = vld [vmem:[%s1221_s3 + $0xf8] sm:$0xff] }
  0x19   :  { %423 = vst [vmem:[%s1222_s4 + $0x70] sm:$0xff] %v359_v44  ;;  %v362_v12 = vmax.f32 %v298_v62, 0.0  ;;  %v363_v13 = vmax.f32 %v299_v63, 0.0  ;;  %v302_v15 = vadd.f32 %v238_v60, %v174_v3  ;;  %v176_v20 = vadd.f32 %v515_v2, %v108_v9  ;;  %v51_v59 = vld [vmem:[%s1218_s0 + $0x110] sm:$0xff]  ;;  %v52_v3 = vld [vmem:[%s1218_s0 + $0x118] sm:$0xff]  ;;  %v54_v9 = vld [vmem:[%s1218_s0 + $0x128] sm:$0xff] }
  0x1a   :  { %424 = vst [vmem:[%s1222_s4 + $0x78] sm:$0xff] %v360_v56  ;;  %v364_v18 = vmax.f32 %v300_v7, 0.0  ;;  %v303_v19 = vadd.f32 %v239_v4, %v175_v8  ;;  %v109_v21 = vmul.f32 %v510_v1, %v41_v5  ;;  %v365_v24 = vmax.f32 %v301_v14, 0.0  ;;  %v53_v8 = vld [vmem:[%s1218_s0 + $0x120] sm:$0xff] }
  0x1b   :  { %425 = vst [vmem:[%s1222_s4 + $0x80] sm:$0xff] %v361_v6  ;;  %v366_v25 = vmax.f32 %v302_v15, 0.0  ;;  %v110_v27 = vmul.f32 %v510_v1, %v42_v10  ;;  %v111_v28 = vmul.f32 %v510_v1, %v43_v11  ;;  %v304_v31 = vadd.f32 %v240_v16, %v176_v20  ;;  %v55_v15 = vld [vmem:[%s1218_s0 + $0x130] sm:$0xff] }
  0x1c   :  { %426 = vst [vmem:[%s1222_s4 + $0x88] sm:$0xff] %v362_v12  ;;  %v367_v30 = vmax.f32 %v303_v19, 0.0  ;;  %v177_v32 = vadd.f32 %v515_v2, %v109_v21  ;;  %v112_v35 = vmul.f32 %v510_v1, %v44_v17  ;;  %v113_v39 = vmul.f32 %v510_v1, %v45_v22  ;;  %v249_v12 = vld [vmem:[%s1221_s3 + $0x100] sm:$0xff]  ;;  %v250_v19 = vld [vmem:[%s1221_s3 + $0x108] sm:$0xff]  ;;  %v251_v20 = vld [vmem:[%s1221_s3 + $0x110] sm:$0xff] }
  0x1d   :  { %427 = vst [vmem:[%s1222_s4 + $0x90] sm:$0xff] %v363_v13  ;;  %v178_v36 = vadd.f32 %v515_v2, %v110_v27  ;;  %v179_v37 = vadd.f32 %v515_v2, %v111_v28  ;;  %v114_v40 = vmul.f32 %v510_v1, %v46_v23  ;;  %v368_v42 = vmax.f32 %v304_v31, 0.0  ;;  %v56_v27 = vld [vmem:[%s1218_s0 + $0x138] sm:$0xff]  ;;  %v253_v31 = vld [vmem:[%s1221_s3 + $0x120] sm:$0xff] }
  0x1e   :  { %428 = vst [vmem:[%s1222_s4 + $0x98] sm:$0xff] %v364_v18  ;;  %v305_v43 = vadd.f32 %v241_v26, %v177_v32  ;;  %v180_v44 = vadd.f32 %v515_v2, %v112_v35  ;;  %v115_v47 = vmul.f32 %v510_v1, %v47_v29  ;;  %v181_v50 = vadd.f32 %v515_v2, %v113_v39  ;;  %v254_v32 = vld [vmem:[%s1221_s3 + $0x128] sm:$0xff]  ;;  %v57_v39 = vld [vmem:[%s1218_s0 + $0x140] sm:$0xff] }
  0x1f   :  { %429 = vst [vmem:[%s1222_s4 + $0xa0] sm:$0xff] %v365_v24  ;;  %v306_v48 = vadd.f32 %v242_v33, %v178_v36  ;;  %v307_v49 = vadd.f32 %v243_v34, %v179_v37  ;;  %v182_v51 = vadd.f32 %v515_v2, %v114_v40  ;;  %v116_v57 = vmul.f32 %v510_v1, %v48_v41  ;;  %v252_v24 = vld [vmem:[%s1221_s3 + $0x118] sm:$0xff] }
  0x20   :  { %430 = vst [vmem:[%s1222_s4 + $0xa8] sm:$0xff] %v366_v25  ;;  %v369_v54 = vmax.f32 %v305_v43, 0.0  ;;  %v308_v55 = vadd.f32 %v244_v38, %v180_v44  ;;  %v183_v56 = vadd.f32 %v515_v2, %v115_v47  ;;  %v309_v62 = vadd.f32 %v245_v45, %v181_v50  ;;  %v255_v38 = vld [vmem:[%s1221_s3 + $0x130] sm:$0xff]  ;;  %v58_v44 = vld [vmem:[%s1218_s0 + $0x148] sm:$0xff]  ;;  %v256_v50 = vld [vmem:[%s1221_s3 + $0x138] sm:$0xff] }
  0x21   :  { %431 = vst [vmem:[%s1222_s4 + $0xb0] sm:$0xff] %v367_v30  ;;  %v370_v60 = vmax.f32 %v306_v48, 0.0  ;;  %v371_v61 = vmax.f32 %v307_v49, 0.0  ;;  %v310_v63 = vadd.f32 %v246_v46, %v182_v51  ;;  %v184_v6 = vadd.f32 %v515_v2, %v116_v57  ;;  %v59_v45 = vld [vmem:[%s1218_s0 + $0x150] sm:$0xff]  ;;  %v60_v51 = vld [vmem:[%s1218_s0 + $0x158] sm:$0xff]  ;;  %v62_v57 = vld [vmem:[%s1218_s0 + $0x168] sm:$0xff] }
  0x22   :  { %432 = vst [vmem:[%s1222_s4 + $0xb8] sm:$0xff] %v368_v42  ;;  %v372_v4 = vmax.f32 %v308_v55, 0.0  ;;  %v311_v5 = vadd.f32 %v247_v52, %v183_v56  ;;  %v117_v7 = vmul.f32 %v510_v1, %v49_v53  ;;  %v373_v10 = vmax.f32 %v309_v62, 0.0  ;;  %v61_v56 = vld [vmem:[%s1218_s0 + $0x160] sm:$0xff] }
  0x23   :  { %433 = vst [vmem:[%s1222_s4 + $0xc0] sm:$0xff] %v369_v54  ;;  %v374_v11 = vmax.f32 %v310_v63, 0.0  ;;  %v118_v13 = vmul.f32 %v510_v1, %v50_v58  ;;  %v119_v14 = vmul.f32 %v510_v1, %v51_v59  ;;  %v312_v17 = vadd.f32 %v248_v0, %v184_v6  ;;  %v63_v63 = vld [vmem:[%s1218_s0 + $0x170] sm:$0xff] }
  0x24   :  { %434 = vst [vmem:[%s1222_s4 + $0xc8] sm:$0xff] %v370_v60  ;;  %v375_v16 = vmax.f32 %v311_v5, 0.0  ;;  %v185_v18 = vadd.f32 %v515_v2, %v117_v7  ;;  %v120_v21 = vmul.f32 %v510_v1, %v52_v3  ;;  %v121_v25 = vmul.f32 %v510_v1, %v53_v8  ;;  %v257_v60 = vld [vmem:[%s1221_s3 + $0x140] sm:$0xff]  ;;  %v258_v5 = vld [vmem:[%s1221_s3 + $0x148] sm:$0xff]  ;;  %v259_v6 = vld [vmem:[%s1221_s3 + $0x150] sm:$0xff] }
  0x25   :  { %435 = vst [vmem:[%s1222_s4 + $0xd0] sm:$0xff] %v371_v61  ;;  %v186_v22 = vadd.f32 %v515_v2, %v118_v13  ;;  %v187_v23 = vadd.f32 %v515_v2, %v119_v14  ;;  %v122_v26 = vmul.f32 %v510_v1, %v54_v9  ;;  %v376_v28 = vmax.f32 %v312_v17, 0.0  ;;  %v64_v13 = vld [vmem:[%s1218_s0 + $0x178] sm:$0xff]  ;;  %v261_v17 = vld [vmem:[%s1221_s3 + $0x160] sm:$0xff] }
  0x26   :  { %436 = vst [vmem:[%s1222_s4 + $0xd8] sm:$0xff] %v372_v4  ;;  %v313_v29 = vadd.f32 %v249_v12, %v185_v18  ;;  %v188_v30 = vadd.f32 %v515_v2, %v120_v21  ;;  %v123_v33 = vmul.f32 %v510_v1, %v55_v15  ;;  %v189_v36 = vadd.f32 %v515_v2, %v121_v25  ;;  %v262_v18 = vld [vmem:[%s1221_s3 + $0x168] sm:$0xff]  ;;  %v65_v25 = vld [vmem:[%s1218_s0 + $0x180] sm:$0xff] }
  0x27   :  { %437 = vst [vmem:[%s1222_s4 + $0xe0] sm:$0xff] %v373_v10  ;;  %v314_v34 = vadd.f32 %v250_v19, %v186_v22  ;;  %v315_v35 = vadd.f32 %v251_v20, %v187_v23  ;;  %v190_v37 = vadd.f32 %v515_v2, %v122_v26  ;;  %v124_v43 = vmul.f32 %v510_v1, %v56_v27  ;;  %v260_v10 = vld [vmem:[%s1221_s3 + $0x158] sm:$0xff] }
  0x28   :  { %438 = vst [vmem:[%s1222_s4 + $0xe8] sm:$0xff] %v374_v11  ;;  %v377_v40 = vmax.f32 %v313_v29, 0.0  ;;  %v316_v41 = vadd.f32 %v252_v24, %v188_v30  ;;  %v191_v42 = vadd.f32 %v515_v2, %v123_v33  ;;  %v317_v48 = vadd.f32 %v253_v31, %v189_v36  ;;  %v263_v24 = vld [vmem:[%s1221_s3 + $0x170] sm:$0xff]  ;;  %v66_v30 = vld [vmem:[%s1218_s0 + $0x188] sm:$0xff]  ;;  %v264_v36 = vld [vmem:[%s1221_s3 + $0x178] sm:$0xff] }
  0x29   :  { %439 = vst [vmem:[%s1222_s4 + $0xf0] sm:$0xff] %v375_v16  ;;  %v378_v46 = vmax.f32 %v314_v34, 0.0  ;;  %v379_v47 = vmax.f32 %v315_v35, 0.0  ;;  %v318_v49 = vadd.f32 %v254_v32, %v190_v37  ;;  %v192_v54 = vadd.f32 %v515_v2, %v124_v43  ;;  %v67_v31 = vld [vmem:[%s1218_s0 + $0x190] sm:$0xff]  ;;  %v68_v37 = vld [vmem:[%s1218_s0 + $0x198] sm:$0xff]  ;;  %v70_v43 = vld [vmem:[%s1218_s0 + $0x1a8] sm:$0xff] }
  0x2a   :  { %440 = vst [vmem:[%s1222_s4 + $0xf8] sm:$0xff] %v376_v28  ;;  %v380_v52 = vmax.f32 %v316_v41, 0.0  ;;  %v319_v53 = vadd.f32 %v255_v38, %v191_v42  ;;  %v125_v55 = vmul.f32 %v510_v1, %v57_v39  ;;  %v381_v58 = vmax.f32 %v317_v48, 0.0  ;;  %v69_v42 = vld [vmem:[%s1218_s0 + $0x1a0] sm:$0xff] }
  0x2b   :  { %441 = vst [vmem:[%s1222_s4 + $0x100] sm:$0xff] %v377_v40  ;;  %v382_v59 = vmax.f32 %v318_v49, 0.0  ;;  %v126_v61 = vmul.f32 %v510_v1, %v58_v44  ;;  %v127_v62 = vmul.f32 %v510_v1, %v59_v45  ;;  %v320_v3 = vadd.f32 %v256_v50, %v192_v54  ;;  %v71_v49 = vld [vmem:[%s1218_s0 + $0x1b0] sm:$0xff] }
  0x2c   :  { %442 = vst [vmem:[%s1222_s4 + $0x108] sm:$0xff] %v378_v46  ;;  %v383_v0 = vmax.f32 %v319_v53, 0.0  ;;  %v193_v4 = vadd.f32 %v515_v2, %v125_v55  ;;  %v128_v7 = vmul.f32 %v510_v1, %v60_v51  ;;  %v129_v11 = vmul.f32 %v510_v1, %v61_v56  ;;  %v265_v46 = vld [vmem:[%s1221_s3 + $0x180] sm:$0xff]  ;;  %v266_v53 = vld [vmem:[%s1221_s3 + $0x188] sm:$0xff]  ;;  %v267_v54 = vld [vmem:[%s1221_s3 + $0x190] sm:$0xff] }
  0x2d   :  { %443 = vst [vmem:[%s1222_s4 + $0x110] sm:$0xff] %v379_v47  ;;  %v194_v8 = vadd.f32 %v515_v2, %v126_v61  ;;  %v195_v9 = vadd.f32 %v515_v2, %v127_v62  ;;  %v130_v12 = vmul.f32 %v510_v1, %v62_v57  ;;  %v384_v14 = vmax.f32 %v320_v3, 0.0  ;;  %v72_v61 = vld [vmem:[%s1218_s0 + $0x1b8] sm:$0xff]  ;;  %v269_v3 = vld [vmem:[%s1221_s3 + $0x1a0] sm:$0xff] }
  0x2e   :  { %444 = vst [vmem:[%s1222_s4 + $0x118] sm:$0xff] %v380_v52  ;;  %v321_v15 = vadd.f32 %v257_v60, %v193_v4  ;;  %v196_v16 = vadd.f32 %v515_v2, %v128_v7  ;;  %v131_v19 = vmul.f32 %v510_v1, %v63_v63  ;;  %v197_v22 = vadd.f32 %v515_v2, %v129_v11  ;;  %v270_v4 = vld [vmem:[%s1221_s3 + $0x1a8] sm:$0xff]  ;;  %v73_v11 = vld [vmem:[%s1218_s0 + $0x1c0] sm:$0xff] }
  0x2f   :  { %445 = vst [vmem:[%s1222_s4 + $0x120] sm:$0xff] %v381_v58  ;;  %v322_v20 = vadd.f32 %v258_v5, %v194_v8  ;;  %v323_v21 = vadd.f32 %v259_v6, %v195_v9  ;;  %v198_v23 = vadd.f32 %v515_v2, %v130_v12  ;;  %v132_v29 = vmul.f32 %v510_v1, %v64_v13  ;;  %v268_v58 = vld [vmem:[%s1221_s3 + $0x198] sm:$0xff] }
  0x30   :  { %446 = vst [vmem:[%s1222_s4 + $0x128] sm:$0xff] %v382_v59  ;;  %v385_v26 = vmax.f32 %v321_v15, 0.0  ;;  %v324_v27 = vadd.f32 %v260_v10, %v196_v16  ;;  %v199_v28 = vadd.f32 %v515_v2, %v131_v19  ;;  %v325_v34 = vadd.f32 %v261_v17, %v197_v22  ;;  %v271_v10 = vld [vmem:[%s1221_s3 + $0x1b0] sm:$0xff]  ;;  %v74_v16 = vld [vmem:[%s1218_s0 + $0x1c8] sm:$0xff]  ;;  %v272_v22 = vld [vmem:[%s1221_s3 + $0x1b8] sm:$0xff] }
  0x31   :  { %447 = vst [vmem:[%s1222_s4 + $0x130] sm:$0xff] %v383_v0  ;;  %v386_v32 = vmax.f32 %v322_v20, 0.0  ;;  %v387_v33 = vmax.f32 %v323_v21, 0.0  ;;  %v326_v35 = vadd.f32 %v262_v18, %v198_v23  ;;  %v200_v40 = vadd.f32 %v515_v2, %v132_v29  ;;  %v75_v17 = vld [vmem:[%s1218_s0 + $0x1d0] sm:$0xff]  ;;  %v76_v23 = vld [vmem:[%s1218_s0 + $0x1d8] sm:$0xff]  ;;  %v78_v29 = vld [vmem:[%s1218_s0 + $0x1e8] sm:$0xff] }
  0x32   :  { %448 = vst [vmem:[%s1222_s4 + $0x138] sm:$0xff] %v384_v14  ;;  %v388_v38 = vmax.f32 %v324_v27, 0.0  ;;  %v327_v39 = vadd.f32 %v263_v24, %v199_v28  ;;  %v133_v41 = vmul.f32 %v510_v1, %v65_v25  ;;  %v389_v44 = vmax.f32 %v325_v34, 0.0  ;;  %v77_v28 = vld [vmem:[%s1218_s0 + $0x1e0] sm:$0xff] }
  0x33   :  { %449 = vst [vmem:[%s1222_s4 + $0x140] sm:$0xff] %v385_v26  ;;  %v390_v45 = vmax.f32 %v326_v35, 0.0  ;;  %v134_v47 = vmul.f32 %v510_v1, %v66_v30  ;;  %v135_v48 = vmul.f32 %v510_v1, %v67_v31  ;;  %v328_v51 = vadd.f32 %v264_v36, %v200_v40  ;;  %v79_v35 = vld [vmem:[%s1218_s0 + $0x1f0] sm:$0xff] }
  0x34   :  { %450 = vst [vmem:[%s1222_s4 + $0x148] sm:$0xff] %v386_v32  ;;  %v391_v50 = vmax.f32 %v327_v39, 0.0  ;;  %v201_v52 = vadd.f32 %v515_v2, %v133_v41  ;;  %v136_v55 = vmul.f32 %v510_v1, %v68_v37  ;;  %v137_v59 = vmul.f32 %v510_v1, %v69_v42  ;;  %v273_v32 = vld [vmem:[%s1221_s3 + $0x1c0] sm:$0xff]  ;;  %v274_v39 = vld [vmem:[%s1221_s3 + $0x1c8] sm:$0xff]  ;;  %v275_v40 = vld [vmem:[%s1221_s3 + $0x1d0] sm:$0xff] }
  0x35   :  { %451 = vst [vmem:[%s1222_s4 + $0x150] sm:$0xff] %v387_v33  ;;  %v202_v56 = vadd.f32 %v515_v2, %v134_v47  ;;  %v203_v57 = vadd.f32 %v515_v2, %v135_v48  ;;  %v138_v60 = vmul.f32 %v510_v1, %v70_v43  ;;  %v392_v62 = vmax.f32 %v328_v51, 0.0  ;;  %v80_v47 = vld [vmem:[%s1218_s0 + $0x1f8] sm:$0xff]  ;;  %v277_v51 = vld [vmem:[%s1221_s3 + $0x1e0] sm:$0xff] }
  0x36   :  { %452 = vst [vmem:[%s1222_s4 + $0x158] sm:$0xff] %v388_v38  ;;  %v329_v63 = vadd.f32 %v265_v46, %v201_v52  ;;  %v204_v0 = vadd.f32 %v515_v2, %v136_v55  ;;  %v139_v5 = vmul.f32 %v510_v1, %v71_v49  ;;  %v205_v8 = vadd.f32 %v515_v2, %v137_v59  ;;  %v278_v52 = vld [vmem:[%s1221_s3 + $0x1e8] sm:$0xff] }
  0x37   :  { %453 = vst [vmem:[%s1222_s4 + $0x160] sm:$0xff] %v389_v44  ;;  %v330_v6 = vadd.f32 %v266_v53, %v202_v56  ;;  %v331_v7 = vadd.f32 %v267_v54, %v203_v57  ;;  %v206_v9 = vadd.f32 %v515_v2, %v138_v60  ;;  %v140_v15 = vmul.f32 %v510_v1, %v72_v61  ;;  %v276_v44 = vld [vmem:[%s1221_s3 + $0x1d8] sm:$0xff] }
  0x38   :  { %454 = vst [vmem:[%s1222_s4 + $0x168] sm:$0xff] %v390_v45  ;;  %v393_v12 = vmax.f32 %v329_v63, 0.0  ;;  %v332_v13 = vadd.f32 %v268_v58, %v204_v0  ;;  %v207_v14 = vadd.f32 %v515_v2, %v139_v5  ;;  %v333_v20 = vadd.f32 %v269_v3, %v205_v8  ;;  %v279_v58 = vld [vmem:[%s1221_s3 + $0x1f0] sm:$0xff]  ;;  %v280_v5 = vld [vmem:[%s1221_s3 + $0x1f8] sm:$0xff] }
  0x39   :  { %455 = vst [vmem:[%s1222_s4 + $0x170] sm:$0xff] %v391_v50  ;;  %v394_v18 = vmax.f32 %v330_v6, 0.0  ;;  %v395_v19 = vmax.f32 %v331_v7, 0.0  ;;  %v334_v21 = vadd.f32 %v270_v4, %v206_v9  ;;  %v208_v26 = vadd.f32 %v515_v2, %v140_v15 }
  0x3a   :  { %456 = vst [vmem:[%s1222_s4 + $0x178] sm:$0xff] %v392_v62  ;;  %v396_v24 = vmax.f32 %v332_v13, 0.0  ;;  %v335_v25 = vadd.f32 %v271_v10, %v207_v14  ;;  %v141_v27 = vmul.f32 %v510_v1, %v73_v11  ;;  %v397_v30 = vmax.f32 %v333_v20, 0.0 }
  0x3b   :  { %457 = vst [vmem:[%s1222_s4 + $0x180] sm:$0xff] %v393_v12  ;;  %v398_v31 = vmax.f32 %v334_v21, 0.0  ;;  %v142_v33 = vmul.f32 %v510_v1, %v74_v16  ;;  %v143_v34 = vmul.f32 %v510_v1, %v75_v17  ;;  %v336_v37 = vadd.f32 %v272_v22, %v208_v26 }
  0x3c   :  { %458 = vst [vmem:[%s1222_s4 + $0x188] sm:$0xff] %v394_v18  ;;  %v399_v36 = vmax.f32 %v335_v25, 0.0  ;;  %v209_v38 = vadd.f32 %v515_v2, %v141_v27  ;;  %v144_v41 = vmul.f32 %v510_v1, %v76_v23  ;;  %v145_v45 = vmul.f32 %v510_v1, %v77_v28 }
  0x3d   :  { %459 = vst [vmem:[%s1222_s4 + $0x190] sm:$0xff] %v395_v19  ;;  %v210_v42 = vadd.f32 %v515_v2, %v142_v33  ;;  %v211_v43 = vadd.f32 %v515_v2, %v143_v34  ;;  %v146_v46 = vmul.f32 %v510_v1, %v78_v29  ;;  %v400_v48 = vmax.f32 %v336_v37, 0.0 }
  0x3e   :  { %460 = vst [vmem:[%s1222_s4 + $0x198] sm:$0xff] %v396_v24  ;;  %v337_v49 = vadd.f32 %v273_v32, %v209_v38  ;;  %v212_v50 = vadd.f32 %v515_v2, %v144_v41  ;;  %v147_v53 = vmul.f32 %v510_v1, %v79_v35  ;;  %v213_v56 = vadd.f32 %v515_v2, %v145_v45 }
  0x3f   :  { %461 = vst [vmem:[%s1222_s4 + $0x1a0] sm:$0xff] %v397_v30  ;;  %v338_v54 = vadd.f32 %v274_v39, %v210_v42  ;;  %v339_v55 = vadd.f32 %v275_v40, %v211_v43  ;;  %v214_v57 = vadd.f32 %v515_v2, %v146_v46  ;;  %v148_v62 = vmul.f32 %v510_v1, %v80_v47 }
  0x40   :  { %462 = vst [vmem:[%s1222_s4 + $0x1a8] sm:$0xff] %v398_v31  ;;  %v401_v59 = vmax.f32 %v337_v49, 0.0  ;;  %v340_v60 = vadd.f32 %v276_v44, %v212_v50  ;;  %v215_v61 = vadd.f32 %v515_v2, %v147_v53  ;;  %v341_v3 = vadd.f32 %v277_v51, %v213_v56 }
  0x41   :  { %463 = vst [vmem:[%s1222_s4 + $0x1b0] sm:$0xff] %v399_v36  ;;  %v402_v63 = vmax.f32 %v338_v54, 0.0  ;;  %v403_v0 = vmax.f32 %v339_v55, 0.0  ;;  %v342_v4 = vadd.f32 %v278_v52, %v214_v57  ;;  %v216_v1 = vadd.f32 %v515_v2, %v148_v62 }
  0x42   :  { %464 = vst [vmem:[%s1222_s4 + $0x1b8] sm:$0xff] %v400_v48  ;;  %v404_v6 = vmax.f32 %v340_v60, 0.0  ;;  %v343_v7 = vadd.f32 %v279_v58, %v215_v61  ;;  %v405_v8 = vmax.f32 %v341_v3, 0.0 }
  0x43   :  { %465 = vst [vmem:[%s1222_s4 + $0x1c0] sm:$0xff] %v401_v59  ;;  %v406_v9 = vmax.f32 %v342_v4, 0.0  ;;  %v344_v11 = vadd.f32 %v280_v5, %v216_v1 }
  0x44   :  { %466 = vst [vmem:[%s1222_s4 + $0x1c8] sm:$0xff] %v402_v63  ;;  %v407_v10 = vmax.f32 %v343_v7, 0.0 }
  0x45   :  { %467 = vst [vmem:[%s1222_s4 + $0x1d0] sm:$0xff] %v403_v0  ;;  %v408_v2 = vmax.f32 %v344_v11, 0.0 }
  0x46   :  { %468 = vst [vmem:[%s1222_s4 + $0x1d8] sm:$0xff] %v404_v6 }
  0x47   :  { %469 = vst [vmem:[%s1222_s4 + $0x1e0] sm:$0xff] %v405_v8 }
  0x48   :  { %470 = vst [vmem:[%s1222_s4 + $0x1e8] sm:$0xff] %v406_v9 }
  0x49   :  { %471 = vst [vmem:[%s1222_s4 + $0x1f0] sm:$0xff] %v407_v10 }
  0x4a   :  { %472 = vst [vmem:[%s1222_s4 + $0x1f8] sm:$0xff] %v408_v2 }

// kernel: basic_block_forward.5
= control target key start
LH: loop header
LB: loop body
LE: loop exit
PB: predicated region body
PF: predicated region fallthrough
CT: control target
= control target key end

     0   :  { %s1049_s0 = inlined_call_operand.vmem [shape: f32[512,128], index: 0, kind: input, shape index: {}]   ;;  %s1050_s1 = inlined_call_operand.vmem [shape: f32[1,128], index: 1, kind: input, shape index: {}]   ;;  %s1051_s2 = inlined_call_operand.vmem [shape: f32[1,128], index: 2, kind: input, shape index: {}]   ;;  %s1052_s3 = inlined_call_operand.vmem [shape: bf16[512,128], index: 3, kind: output, shape index: {}]  }
   0x1   :  { %v14_v0 = vld [vmem:[%s1049_s0] sm:$0xff]  ;;  %v15_v1 = vld [vmem:[%s1049_s0 + $0x8] sm:$0xff]  ;;  %v16_v4 = vld [vmem:[%s1049_s0 + $0x10] sm:$0xff] }
   0x2   :  { %v632_v2 = vld [vmem:[%s1050_s1] ss:$0 sm:$0xff]  ;;  %v17_v5 = vld [vmem:[%s1049_s0 + $0x18] sm:$0xff]  ;;  %v19_v11 = vld [vmem:[%s1049_s0 + $0x28] sm:$0xff] }
   0x3   :  { %v637_v3 = vld [vmem:[%s1051_s2] ss:$0 sm:$0xff]  ;;  %v82_v7 = vmul.f32 %v632_v2, %v14_v0  ;;  %v83_v8 = vmul.f32 %v632_v2, %v15_v1  ;;  %v84_v9 = vmul.f32 %v632_v2, %v16_v4  ;;  %v85_v10 = vmul.f32 %v632_v2, %v17_v5  ;;  %v20_v12 = vld [vmem:[%s1049_s0 + $0x30] sm:$0xff]  ;;  %v21_v13 = vld [vmem:[%s1049_s0 + $0x38] sm:$0xff] }
   0x4   :  { %v18_v6 = vld [vmem:[%s1049_s0 + $0x20] sm:$0xff]  ;;  %v87_v15 = vmul.f32 %v632_v2, %v19_v11  ;;  %v88_v16 = vmul.f32 %v632_v2, %v20_v12  ;;  %v89_v17 = vmul.f32 %v632_v2, %v21_v13  ;;  %v23_v27 = vld [vmem:[%s1049_s0 + $0x48] sm:$0xff]  ;;  %v24_v32 = vld [vmem:[%s1049_s0 + $0x50] sm:$0xff] }
   0x5   :  { %v86_v14 = vmul.f32 %v632_v2, %v18_v6  ;;  %v150_v18 = vadd.f32 %v637_v3, %v82_v7  ;;  %v151_v19 = vadd.f32 %v637_v3, %v83_v8  ;;  %v152_v20 = vadd.f32 %v637_v3, %v84_v9  ;;  %v22_v26 = vld [vmem:[%s1049_s0 + $0x40] sm:$0xff]  ;;  %v25_v33 = vld [vmem:[%s1049_s0 + $0x58] sm:$0xff]  ;;  %v27_v39 = vld [vmem:[%s1049_s0 + $0x68] sm:$0xff] }
   0x6   :  { %v153_v21 = vadd.f32 %v637_v3, %v85_v10  ;;  %v155_v23 = vadd.f32 %v637_v3, %v87_v15  ;;  %v156_v24 = vadd.f32 %v637_v3, %v88_v16  ;;  %v157_v25 = vadd.f32 %v637_v3, %v89_v17  ;;  %v26_v38 = vld [vmem:[%s1049_s0 + $0x60] sm:$0xff]  ;;  %v28_v44 = vld [vmem:[%s1049_s0 + $0x70] sm:$0xff]  ;;  %v29_v45 = vld [vmem:[%s1049_s0 + $0x78] sm:$0xff] }
   0x7   :  { %v154_v22 = vadd.f32 %v637_v3, %v86_v14  ;;  %v214_v28 = vmax.f32 %v150_v18, 0.0  ;;  %v215_v29 = vmax.f32 %v151_v19, 0.0  ;;  %v216_v30 = vmax.f32 %v152_v20, 0.0  ;;  %v30_v58 = vld [vmem:[%s1049_s0 + $0x80] sm:$0xff]  ;;  %v31_v63 = vld [vmem:[%s1049_s0 + $0x88] sm:$0xff]  ;;  %v32_v6 = vld [vmem:[%s1049_s0 + $0x90] sm:$0xff] }
   0x8   :  { %v217_v31 = vmax.f32 %v153_v21, 0.0  ;;  %v219_v35 = vmax.f32 %v155_v23, 0.0  ;;  %v220_v36 = vmax.f32 %v156_v24, 0.0  ;;  %v221_v37 = vmax.f32 %v157_v25, 0.0  ;;  %v33_v7 = vld [vmem:[%s1049_s0 + $0x98] sm:$0xff]  ;;  %v34_v12 = vld [vmem:[%s1049_s0 + $0xa0] sm:$0xff] }
   0x9   :  { %v218_v34 = vmax.f32 %v154_v22, 0.0  ;;  %v413_v40 = vpack.c.bf16 %v215_v29, %v214_v28  ;;  %v90_v42 = vmul.f32 %v632_v2, %v22_v26  ;;  %v91_v43 = vmul.f32 %v632_v2, %v23_v27  ;;  %v35_v13 = vld [vmem:[%s1049_s0 + $0xa8] sm:$0xff]  ;;  %v36_v18 = vld [vmem:[%s1049_s0 + $0xb0] sm:$0xff]  ;;  %v37_v23 = vld [vmem:[%s1049_s0 + $0xb8] sm:$0xff] }
   0xa   :  { %v418_v41 = vpack.c.bf16 %v217_v31, %v216_v30  ;;  %v428_v47 = vpack.c.bf16 %v221_v37, %v220_v36  ;;  %v92_v48 = vmul.f32 %v632_v2, %v24_v32  ;;  %v93_v49 = vmul.f32 %v632_v2, %v25_v33  ;;  %v38_v28 = vld [vmem:[%s1049_s0 + $0xc0] sm:$0xff]  ;;  %v39_v37 = vld [vmem:[%s1049_s0 + $0xc8] sm:$0xff] }
   0xb   :  { %v423_v46 = vpack.c.bf16 %v219_v35, %v218_v34  ;;  %414 = vst [vmem:[%s1052_s3] sm:$0xff] %v413_v40   ;;  %v158_v50 = vadd.f32 %v637_v3, %v90_v42  ;;  %v159_v51 = vadd.f32 %v637_v3, %v91_v43  ;;  %v94_v52 = vmul.f32 %v632_v2, %v26_v38  ;;  %v40_v42 = vld [vmem:[%s1049_s0 + $0xd0] sm:$0xff]  ;;  %v41_v43 = vld [vmem:[%s1049_s0 + $0xd8] sm:$0xff] }
   0xc   :  { %v95_v53 = vmul.f32 %v632_v2, %v27_v39  ;;  %570 = vst [vmem:[%s1052_s3 + $0x8] sm:$0xff] %v418_v41   ;;  %v160_v54 = vadd.f32 %v637_v3, %v92_v48  ;;  %v161_v55 = vadd.f32 %v637_v3, %v93_v49  ;;  %v96_v56 = vmul.f32 %v632_v2, %v28_v44  ;;  %v42_v48 = vld [vmem:[%s1049_s0 + $0xe0] sm:$0xff]  ;;  %v43_v49 = vld [vmem:[%s1049_s0 + $0xe8] sm:$0xff] }
   0xd   :  { %v97_v57 = vmul.f32 %v632_v2, %v29_v45  ;;  %571 = vst [vmem:[%s1052_s3 + $0x10] sm:$0xff] %v423_v46   ;;  %v222_v59 = vmax.f32 %v158_v50, 0.0  ;;  %v223_v60 = vmax.f32 %v159_v51, 0.0  ;;  %v162_v61 = vadd.f32 %v637_v3, %v94_v52 }
   0xe   :  { %v163_v62 = vadd.f32 %v637_v3, %v95_v53  ;;  %572 = vst [vmem:[%s1052_s3 + $0x18] sm:$0xff] %v428_v47   ;;  %v224_v0 = vmax.f32 %v160_v54, 0.0  ;;  %v225_v1 = vmax.f32 %v161_v55, 0.0  ;;  %v164_v4 = vadd.f32 %v637_v3, %v96_v56  ;;  %v44_v54 = vld [vmem:[%s1049_s0 + $0xf0] sm:$0xff] }
   0xf   :  { %v165_v5 = vadd.f32 %v637_v3, %v97_v57  ;;  %v433_v8 = vpack.c.bf16 %v223_v60, %v222_v59  ;;  %v226_v9 = vmax.f32 %v162_v61, 0.0  ;;  %v98_v11 = vmul.f32 %v632_v2, %v30_v58  ;;  %v45_v59 = vld [vmem:[%s1049_s0 + $0xf8] sm:$0xff] }
  0x10   :  { %v227_v10 = vmax.f32 %v163_v62, 0.0  ;;  %v438_v14 = vpack.c.bf16 %v225_v1, %v224_v0  ;;  %v228_v15 = vmax.f32 %v164_v4, 0.0  ;;  %v99_v17 = vmul.f32 %v632_v2, %v31_v63  ;;  %v46_v0 = vld [vmem:[%s1049_s0 + $0x100] sm:$0xff] }
  0x11   :  { %v229_v16 = vmax.f32 %v165_v5, 0.0  ;;  %573 = vst [vmem:[%s1052_s3 + $0x20] sm:$0xff] %v433_v8   ;;  %v166_v20 = vadd.f32 %v637_v3, %v98_v11  ;;  %v100_v21 = vmul.f32 %v632_v2, %v32_v6  ;;  %v101_v22 = vmul.f32 %v632_v2, %v33_v7  ;;  %v47_v11 = vld [vmem:[%s1049_s0 + $0x108] sm:$0xff] }
  0x12   :  { %v443_v19 = vpack.c.bf16 %v227_v10, %v226_v9  ;;  %574 = vst [vmem:[%s1052_s3 + $0x28] sm:$0xff] %v438_v14   ;;  %v167_v25 = vadd.f32 %v637_v3, %v99_v17  ;;  %v102_v26 = vmul.f32 %v632_v2, %v34_v12  ;;  %v103_v27 = vmul.f32 %v632_v2, %v35_v13  ;;  %v49_v17 = vld [vmem:[%s1049_s0 + $0x118] sm:$0xff] }
  0x13   :  { %v448_v24 = vpack.c.bf16 %v229_v16, %v228_v15  ;;  %v230_v29 = vmax.f32 %v166_v20, 0.0  ;;  %v168_v30 = vadd.f32 %v637_v3, %v100_v21  ;;  %v169_v31 = vadd.f32 %v637_v3, %v101_v22  ;;  %v48_v16 = vld [vmem:[%s1049_s0 + $0x110] sm:$0xff]  ;;  %v50_v22 = vld [vmem:[%s1049_s0 + $0x120] sm:$0xff] }
  0x14   :  { %575 = vst [vmem:[%s1052_s3 + $0x30] sm:$0xff] %v443_v19   ;;  %v104_v32 = vmul.f32 %v632_v2, %v36_v18  ;;  %v231_v33 = vmax.f32 %v167_v25, 0.0  ;;  %v170_v34 = vadd.f32 %v637_v3, %v102_v26  ;;  %v171_v35 = vadd.f32 %v637_v3, %v103_v27 }
  0x15   :  { %576 = vst [vmem:[%s1052_s3 + $0x38] sm:$0xff] %v448_v24   ;;  %v105_v36 = vmul.f32 %v632_v2, %v37_v23  ;;  %v232_v38 = vmax.f32 %v168_v30, 0.0  ;;  %v233_v39 = vmax.f32 %v169_v31, 0.0  ;;  %v106_v41 = vmul.f32 %v632_v2, %v38_v28  ;;  %v51_v23 = vld [vmem:[%s1049_s0 + $0x128] sm:$0xff]  ;;  %v52_v28 = vld [vmem:[%s1049_s0 + $0x130] sm:$0xff] }
  0x16   :  { %v172_v40 = vadd.f32 %v637_v3, %v104_v32  ;;  %v453_v44 = vpack.c.bf16 %v231_v33, %v230_v29  ;;  %v234_v45 = vmax.f32 %v170_v34, 0.0  ;;  %v235_v46 = vmax.f32 %v171_v35, 0.0  ;;  %v53_v33 = vld [vmem:[%s1049_s0 + $0x138] sm:$0xff] }
  0x17   :  { %v173_v47 = vadd.f32 %v637_v3, %v105_v36  ;;  %v458_v50 = vpack.c.bf16 %v233_v39, %v232_v38  ;;  %v107_v52 = vmul.f32 %v632_v2, %v39_v37  ;;  %v174_v53 = vadd.f32 %v637_v3, %v106_v41  ;;  %v54_v38 = vld [vmem:[%s1049_s0 + $0x140] sm:$0xff] }
  0x18   :  { %v236_v51 = vmax.f32 %v172_v40, 0.0  ;;  %577 = vst [vmem:[%s1052_s3 + $0x40] sm:$0xff] %v453_v44   ;;  %v463_v55 = vpack.c.bf16 %v235_v46, %v234_v45  ;;  %v108_v57 = vmul.f32 %v632_v2, %v40_v42  ;;  %v109_v58 = vmul.f32 %v632_v2, %v41_v43 }
  0x19   :  { %v237_v56 = vmax.f32 %v173_v47, 0.0  ;;  %578 = vst [vmem:[%s1052_s3 + $0x48] sm:$0xff] %v458_v50   ;;  %v175_v60 = vadd.f32 %v637_v3, %v107_v52  ;;  %v238_v61 = vmax.f32 %v174_v53, 0.0  ;;  %v110_v62 = vmul.f32 %v632_v2, %v42_v48  ;;  %v55_v47 = vld [vmem:[%s1049_s0 + $0x148] sm:$0xff]  ;;  %v56_v52 = vld [vmem:[%s1049_s0 + $0x150] sm:$0xff]  ;;  %v57_v53 = vld [vmem:[%s1049_s0 + $0x158] sm:$0xff] }
  0x1a   :  { %v111_v63 = vmul.f32 %v632_v2, %v43_v49  ;;  %579 = vst [vmem:[%s1052_s3 + $0x50] sm:$0xff] %v463_v55   ;;  %v176_v4 = vadd.f32 %v637_v3, %v108_v57  ;;  %v177_v5 = vadd.f32 %v637_v3, %v109_v58  ;;  %v112_v6 = vmul.f32 %v632_v2, %v44_v54  ;;  %v58_v58 = vld [vmem:[%s1049_s0 + $0x160] sm:$0xff] }
  0x1b   :  { %v468_v1 = vpack.c.bf16 %v237_v56, %v236_v51  ;;  %v239_v7 = vmax.f32 %v175_v60, 0.0  ;;  %v178_v8 = vadd.f32 %v637_v3, %v110_v62  ;;  %v113_v10 = vmul.f32 %v632_v2, %v45_v59  ;;  %v59_v59 = vld [vmem:[%s1049_s0 + $0x168] sm:$0xff] }
  0x1c   :  { %v179_v9 = vadd.f32 %v637_v3, %v111_v63  ;;  %v240_v12 = vmax.f32 %v176_v4, 0.0  ;;  %v241_v13 = vmax.f32 %v177_v5, 0.0  ;;  %v180_v14 = vadd.f32 %v637_v3, %v112_v6 }
  0x1d   :  { %580 = vst [vmem:[%s1052_s3 + $0x58] sm:$0xff] %v468_v1   ;;  %v114_v15 = vmul.f32 %v632_v2, %v46_v0  ;;  %v473_v18 = vpack.c.bf16 %v239_v7, %v238_v61  ;;  %v242_v19 = vmax.f32 %v178_v8, 0.0  ;;  %v181_v21 = vadd.f32 %v637_v3, %v113_v10  ;;  %v60_v0 = vld [vmem:[%s1049_s0 + $0x170] sm:$0xff]  ;;  %v61_v7 = vld [vmem:[%s1049_s0 + $0x178] sm:$0xff] }
  0x1e   :  { %v243_v20 = vmax.f32 %v179_v9, 0.0  ;;  %v478_v24 = vpack.c.bf16 %v241_v13, %v240_v12  ;;  %v244_v25 = vmax.f32 %v180_v14, 0.0  ;;  %v115_v26 = vmul.f32 %v632_v2, %v47_v11  ;;  %v62_v12 = vld [vmem:[%s1049_s0 + $0x180] sm:$0xff] }
  0x1f   :  { %v182_v27 = vadd.f32 %v637_v3, %v114_v15  ;;  %581 = vst [vmem:[%s1052_s3 + $0x60] sm:$0xff] %v473_v18   ;;  %v245_v30 = vmax.f32 %v181_v21, 0.0  ;;  %v116_v31 = vmul.f32 %v632_v2, %v48_v16  ;;  %v117_v32 = vmul.f32 %v632_v2, %v49_v17  ;;  %v63_v21 = vld [vmem:[%s1049_s0 + $0x188] sm:$0xff] }
  0x20   :  { %v483_v29 = vpack.c.bf16 %v243_v20, %v242_v19  ;;  %582 = vst [vmem:[%s1052_s3 + $0x68] sm:$0xff] %v478_v24   ;;  %v183_v34 = vadd.f32 %v637_v3, %v115_v26  ;;  %v118_v36 = vmul.f32 %v632_v2, %v50_v22  ;;  %v119_v37 = vmul.f32 %v632_v2, %v51_v23  ;;  %v64_v26 = vld [vmem:[%s1049_s0 + $0x190] sm:$0xff] }
  0x21   :  { %v246_v35 = vmax.f32 %v182_v27, 0.0  ;;  %v488_v39 = vpack.c.bf16 %v245_v30, %v244_v25  ;;  %v184_v40 = vadd.f32 %v637_v3, %v116_v31  ;;  %v185_v41 = vadd.f32 %v637_v3, %v117_v32  ;;  %v65_v27 = vld [vmem:[%s1049_s0 + $0x198] sm:$0xff]  ;;  %v66_v32 = vld [vmem:[%s1049_s0 + $0x1a0] sm:$0xff] }
  0x22   :  { %583 = vst [vmem:[%s1052_s3 + $0x70] sm:$0xff] %v483_v29   ;;  %v120_v42 = vmul.f32 %v632_v2, %v52_v28  ;;  %v247_v43 = vmax.f32 %v183_v34, 0.0  ;;  %v186_v44 = vadd.f32 %v637_v3, %v118_v36  ;;  %v187_v45 = vadd.f32 %v637_v3, %v119_v37 }
  0x23   :  { %v121_v46 = vmul.f32 %v632_v2, %v53_v33  ;;  %584 = vst [vmem:[%s1052_s3 + $0x78] sm:$0xff] %v488_v39   ;;  %v248_v48 = vmax.f32 %v184_v40, 0.0  ;;  %v249_v49 = vmax.f32 %v185_v41, 0.0  ;;  %v122_v51 = vmul.f32 %v632_v2, %v54_v38  ;;  %v67_v33 = vld [vmem:[%s1049_s0 + $0x1a8] sm:$0xff]  ;;  %v68_v38 = vld [vmem:[%s1049_s0 + $0x1b0] sm:$0xff] }
  0x24   :  { %v188_v50 = vadd.f32 %v637_v3, %v120_v42  ;;  %v493_v54 = vpack.c.bf16 %v247_v43, %v246_v35  ;;  %v250_v55 = vmax.f32 %v186_v44, 0.0  ;;  %v251_v56 = vmax.f32 %v187_v45, 0.0  ;;  %v69_v43 = vld [vmem:[%s1049_s0 + $0x1b8] sm:$0xff] }
  0x25   :  { %v189_v57 = vadd.f32 %v637_v3, %v121_v46  ;;  %v498_v60 = vpack.c.bf16 %v249_v49, %v248_v48  ;;  %v123_v62 = vmul.f32 %v632_v2, %v55_v47  ;;  %v190_v63 = vadd.f32 %v637_v3, %v122_v51  ;;  %v70_v48 = vld [vmem:[%s1049_s0 + $0x1c0] sm:$0xff] }
  0x26   :  { %v252_v61 = vmax.f32 %v188_v50, 0.0  ;;  %585 = vst [vmem:[%s1052_s3 + $0x80] sm:$0xff] %v493_v54   ;;  %v503_v1 = vpack.c.bf16 %v251_v56, %v250_v55  ;;  %v124_v5 = vmul.f32 %v632_v2, %v56_v52  ;;  %v125_v6 = vmul.f32 %v632_v2, %v57_v53 }
  0x27   :  { %v253_v4 = vmax.f32 %v189_v57, 0.0  ;;  %586 = vst [vmem:[%s1052_s3 + $0x88] sm:$0xff] %v498_v60   ;;  %v191_v8 = vadd.f32 %v637_v3, %v123_v62  ;;  %v254_v9 = vmax.f32 %v190_v63, 0.0  ;;  %v126_v10 = vmul.f32 %v632_v2, %v58_v58  ;;  %v71_v57 = vld [vmem:[%s1049_s0 + $0x1c8] sm:$0xff]  ;;  %v72_v62 = vld [vmem:[%s1049_s0 + $0x1d0] sm:$0xff]  ;;  %v73_v63 = vld [vmem:[%s1049_s0 + $0x1d8] sm:$0xff] }
  0x28   :  { %v127_v11 = vmul.f32 %v632_v2, %v59_v59  ;;  %587 = vst [vmem:[%s1052_s3 + $0x90] sm:$0xff] %v503_v1   ;;  %v192_v14 = vadd.f32 %v637_v3, %v124_v5  ;;  %v193_v15 = vadd.f32 %v637_v3, %v125_v6  ;;  %v128_v16 = vmul.f32 %v632_v2, %v60_v0  ;;  %v74_v6 = vld [vmem:[%s1049_s0 + $0x1e0] sm:$0xff] }
  0x29   :  { %v508_v13 = vpack.c.bf16 %v253_v4, %v252_v61  ;;  %v255_v17 = vmax.f32 %v191_v8, 0.0  ;;  %v194_v18 = vadd.f32 %v637_v3, %v126_v10  ;;  %v129_v20 = vmul.f32 %v632_v2, %v61_v7  ;;  %v75_v7 = vld [vmem:[%s1049_s0 + $0x1e8] sm:$0xff] }
  0x2a   :  { %v195_v19 = vadd.f32 %v637_v3, %v127_v11  ;;  %v256_v22 = vmax.f32 %v192_v14, 0.0  ;;  %v257_v23 = vmax.f32 %v193_v15, 0.0  ;;  %v196_v24 = vadd.f32 %v637_v3, %v128_v16 }
  0x2b   :  { %588 = vst [vmem:[%s1052_s3 + $0x98] sm:$0xff] %v508_v13   ;;  %v130_v25 = vmul.f32 %v632_v2, %v62_v12  ;;  %v513_v28 = vpack.c.bf16 %v255_v17, %v254_v9  ;;  %v258_v29 = vmax.f32 %v194_v18, 0.0  ;;  %v197_v31 = vadd.f32 %v637_v3, %v129_v20  ;;  %v76_v12 = vld [vmem:[%s1049_s0 + $0x1f0] sm:$0xff]  ;;  %v77_v17 = vld [vmem:[%s1049_s0 + $0x1f8] sm:$0xff] }
  0x2c   :  { %v259_v30 = vmax.f32 %v195_v19, 0.0  ;;  %v518_v34 = vpack.c.bf16 %v257_v23, %v256_v22  ;;  %v260_v35 = vmax.f32 %v196_v24, 0.0  ;;  %v131_v36 = vmul.f32 %v632_v2, %v63_v21 }
  0x2d   :  { %v198_v37 = vadd.f32 %v637_v3, %v130_v25  ;;  %589 = vst [vmem:[%s1052_s3 + $0xa0] sm:$0xff] %v513_v28   ;;  %v261_v40 = vmax.f32 %v197_v31, 0.0  ;;  %v132_v41 = vmul.f32 %v632_v2, %v64_v26  ;;  %v133_v42 = vmul.f32 %v632_v2, %v65_v27 }
  0x2e   :  { %v523_v39 = vpack.c.bf16 %v259_v30, %v258_v29  ;;  %590 = vst [vmem:[%s1052_s3 + $0xa8] sm:$0xff] %v518_v34   ;;  %v199_v44 = vadd.f32 %v637_v3, %v131_v36  ;;  %v134_v46 = vmul.f32 %v632_v2, %v66_v32  ;;  %v135_v47 = vmul.f32 %v632_v2, %v67_v33 }
  0x2f   :  { %v262_v45 = vmax.f32 %v198_v37, 0.0  ;;  %v528_v49 = vpack.c.bf16 %v261_v40, %v260_v35  ;;  %v200_v50 = vadd.f32 %v637_v3, %v132_v41  ;;  %v201_v51 = vadd.f32 %v637_v3, %v133_v42 }
  0x30   :  { %591 = vst [vmem:[%s1052_s3 + $0xb0] sm:$0xff] %v523_v39   ;;  %v136_v52 = vmul.f32 %v632_v2, %v68_v38  ;;  %v263_v53 = vmax.f32 %v199_v44, 0.0  ;;  %v202_v54 = vadd.f32 %v637_v3, %v134_v46  ;;  %v203_v55 = vadd.f32 %v637_v3, %v135_v47 }
  0x31   :  { %v137_v56 = vmul.f32 %v632_v2, %v69_v43  ;;  %592 = vst [vmem:[%s1052_s3 + $0xb8] sm:$0xff] %v528_v49   ;;  %v264_v58 = vmax.f32 %v200_v50, 0.0  ;;  %v265_v59 = vmax.f32 %v201_v51, 0.0  ;;  %v138_v61 = vmul.f32 %v632_v2, %v70_v48 }
  0x32   :  { %v204_v60 = vadd.f32 %v637_v3, %v136_v52  ;;  %v533_v0 = vpack.c.bf16 %v263_v53, %v262_v45  ;;  %v266_v1 = vmax.f32 %v202_v54, 0.0  ;;  %v267_v4 = vmax.f32 %v203_v55, 0.0 }
  0x33   :  { %v205_v5 = vadd.f32 %v637_v3, %v137_v56  ;;  %v538_v8 = vpack.c.bf16 %v265_v59, %v264_v58  ;;  %v139_v10 = vmul.f32 %v632_v2, %v71_v57  ;;  %v206_v11 = vadd.f32 %v637_v3, %v138_v61 }
  0x34   :  { %v268_v9 = vmax.f32 %v204_v60, 0.0  ;;  %593 = vst [vmem:[%s1052_s3 + $0xc0] sm:$0xff] %v533_v0   ;;  %v543_v13 = vpack.c.bf16 %v267_v4, %v266_v1  ;;  %v140_v15 = vmul.f32 %v632_v2, %v72_v62  ;;  %v141_v16 = vmul.f32 %v632_v2, %v73_v63 }
  0x35   :  { %v269_v14 = vmax.f32 %v205_v5, 0.0  ;;  %594 = vst [vmem:[%s1052_s3 + $0xc8] sm:$0xff] %v538_v8   ;;  %v207_v18 = vadd.f32 %v637_v3, %v139_v10  ;;  %v270_v19 = vmax.f32 %v206_v11, 0.0  ;;  %v142_v20 = vmul.f32 %v632_v2, %v74_v6 }
  0x36   :  { %v143_v21 = vmul.f32 %v632_v2, %v75_v7  ;;  %595 = vst [vmem:[%s1052_s3 + $0xd0] sm:$0xff] %v543_v13   ;;  %v208_v23 = vadd.f32 %v637_v3, %v140_v15  ;;  %v209_v24 = vadd.f32 %v637_v3, %v141_v16  ;;  %v144_v25 = vmul.f32 %v632_v2, %v76_v12 }
  0x37   :  { %v548_v22 = vpack.c.bf16 %v269_v14, %v268_v9  ;;  %v271_v26 = vmax.f32 %v207_v18, 0.0  ;;  %v210_v27 = vadd.f32 %v637_v3, %v142_v20  ;;  %v145_v29 = vmul.f32 %v632_v2, %v77_v17 }
  0x38   :  { %v211_v28 = vadd.f32 %v637_v3, %v143_v21  ;;  %v272_v30 = vmax.f32 %v208_v23, 0.0  ;;  %v273_v31 = vmax.f32 %v209_v24, 0.0  ;;  %v212_v32 = vadd.f32 %v637_v3, %v144_v25 }
  0x39   :  { %596 = vst [vmem:[%s1052_s3 + $0xd8] sm:$0xff] %v548_v22   ;;  %v553_v33 = vpack.c.bf16 %v271_v26, %v270_v19  ;;  %v274_v34 = vmax.f32 %v210_v27, 0.0  ;;  %v213_v36 = vadd.f32 %v637_v3, %v145_v29 }
  0x3a   :  { %v275_v35 = vmax.f32 %v211_v28, 0.0  ;;  %v558_v37 = vpack.c.bf16 %v273_v31, %v272_v30  ;;  %v276_v38 = vmax.f32 %v212_v32, 0.0 }
  0x3b   :  { %597 = vst [vmem:[%s1052_s3 + $0xe0] sm:$0xff] %v553_v33   ;;  %v277_v39 = vmax.f32 %v213_v36, 0.0 }
  0x3c   :  { %v563_v2 = vpack.c.bf16 %v275_v35, %v274_v34  ;;  %598 = vst [vmem:[%s1052_s3 + $0xe8] sm:$0xff] %v558_v37  }
  0x3d   :  { %v568_v40 = vpack.c.bf16 %v277_v39, %v276_v38 }
  0x3e   :  { %599 = vst [vmem:[%s1052_s3 + $0xf0] sm:$0xff] %v563_v2  }
  0x3f   :  { %600 = vst [vmem:[%s1052_s3 + $0xf8] sm:$0xff] %v568_v40  }

// kernel: basic_block_forward.4
= control target key start
LH: loop header
LB: loop body
LE: loop exit
PB: predicated region body
PF: predicated region fallthrough
CT: control target
= control target key end

     0   :  { %s6648_s12 = smov 0   ;;  %s6650_s13 = smov 0   ;;  %s8061_s0 = inlined_call_operand.vmem [shape: bf16[2,18,18,128], index: 0, kind: input, shape index: {}]   ;;  %s8062_s1 = inlined_call_operand.vmem [shape: bf16[9,128,128], index: 1, kind: input, shape index: {}]   ;;  %s8063_s2 = inlined_call_operand.vmem [shape: f32[2,256,128], index: 2, kind: output, shape index: {0}]   ;;  %s8064_s3 = inlined_call_operand.vmem [shape: f32[2,2,128], index: 3, kind: output, shape index: {1}]  }
   0x1   :  { %s6652_s14 = smov 0  }
   0x2 LB: > { %s23_s15 = sadd.s32 1, %s6622_s13  ;;  %p5515_p0 = scmp.ge.s32.totalorder %s6626_s14, 1  ;;  %s6626_s14 = sphi %s6652_s14, %s14_s14   ;;  %s6622_s13 = sphi %s6650_s13, %s8084_s13   ;;  %s6618_s12 = sphi %s6648_s12, %s8083_s12  }
   0x3   : > { %p24_p1 = scmp.ge.s32.totalorder %s23_s15, 2  ;;  %p165_p2 = scmp.lt.s32.totalorder %s6626_s14, 3 }
   0x5   : > { %s8086_s15 = smov (%p24_p1, %s23_s15), 0  ;;  %p166_p3 = pnand %p5515_p0, %p165_p2 }
   0x7   : > { %169 = sbr.rel (%p166_p3) target bundleno = 767 (0x2ff), region = 28 }
   0xc   : > { %v6458_v0 = vld [vmem:[%s8062_s1 + $0x38] sm:$0xff]  ;;  %v6457_v1 = vld [vmem:[%s8062_s1 + $0x30] sm:$0xff]  ;;  %v6456_v2 = vld [vmem:[%s8062_s1 + $0x28] sm:$0xff]  ;;  %p203_p4 = scmp.lt.s32.totalorder %s6618_s12, 1  ;;  %vm684_vm0 = vsmask.f32 3328 }
   0xd   : > { %6555 = vmatpush.bf16.msra.mxu1 %v6458_v0  ;;  %6556 = vmatpush.bf16.msra.mxu2 %v6458_v0  ;;  %v6455_v3 = vld [vmem:[%s8062_s1 + $0x20] sm:$0xff]  ;;  %v6454_v4 = vld [vmem:[%s8062_s1 + $0x18] sm:$0xff]  ;;  %v6453_v5 = vld [vmem:[%s8062_s1 + $0x10] sm:$0xff]  ;;  %vm685_vm1 = vsmask.f32 7440  ;;  %vm1481_vm2 = vcmask 1042432  }
   0xe   : > { %6557 = vmatpush.bf16.msra.mxu3 %v6458_v0  ;;  %483 = vmatpush.bf16.msra.mxu0 %v6458_v0  ;;  %s8088_s12 = smov (!%p203_p4, %s6618_s12), 1  ;;  %v6452_v6 = vld [vmem:[%s8062_s1 + $0x8] sm:$0xff]  ;;  %v6451_v7 = vld [vmem:[%s8062_s1] sm:$0xff]  ;;  %v6474_v8 = vld [vmem:[%s8062_s1 + $0xb8] sm:$0xff]  ;;  %vm1482_vm3 = vcmask 1046532  }
   0xf   : > { %s6579_s30 = smul.u32 216, %s8088_s12  ;;  %v6498_v9 = vld [vmem:[%s8062_s1 + $0xf8] sm:$0xff]  ;;  %v6473_v16 = vld [vmem:[%s8062_s1 + $0xb0] sm:$0xff]  ;;  %v6472_v20 = vld [vmem:[%s8062_s1 + $0xa8] sm:$0xff]  ;;  %s6434_s4 = sshll.u32 %s8088_s12, 8 }
  0x10   : > { %v6466_v14 = vld [vmem:[%s8062_s1 + $0x78] sm:$0xff]  ;;  %v6497_v17 = vld [vmem:[%s8062_s1 + $0xf0] sm:$0xff]  ;;  %v6496_v21 = vld [vmem:[%s8062_s1 + $0xe8] sm:$0xff]  ;;  %s7832_s7 = scalar_lea.vmem %s8063_s2, %s6434_s4 }
  0x11   : > { %6558 = vmatpush.bf16.msra.mxu1 %v6457_v1  ;;  %6559 = vmatpush.bf16.msra.mxu2 %v6457_v1  ;;  %s6700_s8 = scalar_lea.vmem %s8061_s0, %s6579_s30  ;;  %v6506_v15 = vld [vmem:[%s8062_s1 + $0x138] sm:$0xff]  ;;  %v6465_v18 = vld [vmem:[%s8062_s1 + $0x70] sm:$0xff]  ;;  %v6464_v22 = vld [vmem:[%s8062_s1 + $0x68] sm:$0xff] }
  0x12   : > { %6560 = vmatpush.bf16.msra.mxu3 %v6457_v1  ;;  %484 = vmatpush.bf16.msra.mxu0 %v6457_v1  ;;  %v6439_v10 = vld [vmem:[%s6700_s8 + $0x30] sm:$0xff]  ;;  %v6443_v11 = vld [vmem:[%s6700_s8 + $0x60] sm:$0xff]  ;;  %v6504_v23 = vld [vmem:[%s8062_s1 + $0x128] sm:$0xff] }
  0x13   : > { %v6447_v12 = vld [vmem:[%s6700_s8 + $0x90] sm:$0xff]  ;;  %v6435_v13 = vld [vmem:[%s6700_s8] sm:$0xff]  ;;  %v6470_v28 = vld [vmem:[%s8062_s1 + $0x98] sm:$0xff] }
  0x14   : > { %v6505_v19 = vld [vmem:[%s8062_s1 + $0x130] sm:$0xff]  ;;  %v6471_v24 = vld [vmem:[%s8062_s1 + $0xa0] sm:$0xff]  ;;  %v6494_v29 = vld [vmem:[%s8062_s1 + $0xd8] sm:$0xff] }
  0x15   : > { %6561 = vmatpush.bf16.msra.mxu1 %v6456_v2  ;;  %6562 = vmatpush.bf16.msra.mxu2 %v6456_v2  ;;  %v6495_v25 = vld [vmem:[%s8062_s1 + $0xe0] sm:$0xff]  ;;  %v6444_v31 = vld [vmem:[%s6700_s8 + $0x6c] sm:$0xff]  ;;  %v6462_v34 = vld [vmem:[%s8062_s1 + $0x58] sm:$0xff] }
  0x16   : > { %6563 = vmatpush.bf16.msra.mxu3 %v6456_v2  ;;  %485 = vmatpush.bf16.msra.mxu0 %v6456_v2  ;;  %v6463_v26 = vld [vmem:[%s8062_s1 + $0x60] sm:$0xff]  ;;  %v6436_v33 = vld [vmem:[%s6700_s8 + $0xc] sm:$0xff]  ;;  %v6502_v35 = vld [vmem:[%s8062_s1 + $0x118] sm:$0xff] }
  0x17   : > { %v6503_v27 = vld [vmem:[%s8062_s1 + $0x120] sm:$0xff]  ;;  %v6469_v36 = vld [vmem:[%s8062_s1 + $0x90] sm:$0xff]  ;;  %v6468_v40 = vld [vmem:[%s8062_s1 + $0x88] sm:$0xff] }
  0x18   : > { %v6440_v30 = vld [vmem:[%s6700_s8 + $0x3c] sm:$0xff]  ;;  %v6493_v37 = vld [vmem:[%s8062_s1 + $0xd0] sm:$0xff]  ;;  %v6492_v41 = vld [vmem:[%s8062_s1 + $0xc8] sm:$0xff] }
  0x19   : > { %6564 = vmatpush.bf16.msra.mxu1 %v6455_v3  ;;  %6565 = vmatpush.bf16.msra.mxu2 %v6455_v3  ;;  %v6448_v32 = vld [vmem:[%s6700_s8 + $0x9c] sm:$0xff]  ;;  %v6461_v38 = vld [vmem:[%s8062_s1 + $0x50] sm:$0xff]  ;;  %v6460_v42 = vld [vmem:[%s8062_s1 + $0x48] sm:$0xff] }
  0x1a   : > { %6566 = vmatpush.bf16.msra.mxu3 %v6455_v3  ;;  %486 = vmatpush.bf16.msra.mxu0 %v6455_v3  ;;  %v6501_v39 = vld [vmem:[%s8062_s1 + $0x110] sm:$0xff]  ;;  %v6500_v43 = vld [vmem:[%s8062_s1 + $0x108] sm:$0xff]  ;;  %v6467_v44 = vld [vmem:[%s8062_s1 + $0x80] sm:$0xff] }
  0x1b   : > { %v6491_v45 = vld [vmem:[%s8062_s1 + $0xc0] sm:$0xff]  ;;  %v6441_v48 = vld [vmem:[%s6700_s8 + $0x48] sm:$0xff]  ;;  %v6445_v49 = vld [vmem:[%s6700_s8 + $0x78] sm:$0xff] }
  0x1c   : > { %v6459_v46 = vld [vmem:[%s8062_s1 + $0x40] sm:$0xff]  ;;  %v6449_v50 = vld [vmem:[%s6700_s8 + $0xa8] sm:$0xff]  ;;  %v6437_v51 = vld [vmem:[%s6700_s8 + $0x18] sm:$0xff] }
  0x1d   : > { %6567 = vmatpush.bf16.msra.mxu1 %v6454_v4  ;;  %6568 = vmatpush.bf16.msra.mxu2 %v6454_v4  ;;  %v6499_v47 = vld [vmem:[%s8062_s1 + $0x100] sm:$0xff]  ;;  %v6538_v54 = vld [vmem:[%s8062_s1 + $0x1b8] sm:$0xff]  ;;  %v5872_v57 = vld [vmem:[%s6700_s8 + $0xc] sm:$0xf] }
  0x1e   : > { %6569 = vmatpush.bf16.msra.mxu3 %v6454_v4  ;;  %487 = vmatpush.bf16.msra.mxu0 %v6454_v4  ;;  %v636_v52 = vld [vmem:[%s6700_s8] sm:$0xf]  ;;  %v637_v53 = vld [vmem:[%s6700_s8 + $0x4] sm:$0xf]  ;;  %v6546_v55 = vld [vmem:[%s8062_s1 + $0x1f8] sm:$0xff]  ;;  %v2338_v0 = vshrl.u32 %v5872_v57, 16 }
  0x1f   : > { %v6514_v56 = vld [vmem:[%s8062_s1 + $0x178] sm:$0xff]  ;;  %v5873_v58 = vld [vmem:[%s6700_s8 + $0x10] sm:$0xf]  ;;  %v688_v60 = vshrl.u32 %v636_v52, 16  ;;  %v691_v61 = vshll.u32 %v636_v52, 16  ;;  %v697_v62 = vshll.u32 %v637_v53, 16  ;;  %vm6844_vm4 = vmor %vm684_vm0, %vm685_vm1 }
  0x20   : > { %v6554_v59 = vld [vmem:[%s8062_s1 + $0x238] sm:$0xff]  ;;  %v701_v63 = vshrl.u32 %v637_v53, 16  ;;  %v2341_v1 = vshll.u32 %v5872_v57, 16  ;;  %v2347_v2 = vshll.u32 %v5873_v58, 16  ;;  %v2351_v3 = vshrl.u32 %v5873_v58, 16  ;;  %vm6851_vm5 = vmor %vm1481_vm2, %vm1482_vm3 }
  0x21   : > { %6570 = vmatpush.bf16.msra.mxu1 %v6453_v5  ;;  %6571 = vmatpush.bf16.msra.mxu2 %v6453_v5  ;;  %v638_v4 = vld [vmem:[%s6700_s8 + $0x8] sm:$0x1]  ;;  %v641_v57 = vld [vmem:[%s6700_s8 + $0x14] sm:$0x1] }
  0x22   : > { %6572 = vmatpush.bf16.msra.mxu3 %v6453_v5  ;;  %488 = vmatpush.bf16.msra.mxu0 %v6453_v5  ;;  %v690_v5 = vrot.slane %v688_v60, 4 }
  0x25   : > { %6573 = vmatpush.bf16.msra.mxu1 %v6452_v6  ;;  %6574 = vmatpush.bf16.msra.mxu2 %v6452_v6 }
  0x26   : > { %6575 = vmatpush.bf16.msra.mxu3 %v6452_v6  ;;  %489 = vmatpush.bf16.msra.mxu0 %v6452_v6  ;;  %v693_v6 = vrot.slane %v691_v61, 5 }
  0x29   : > { %6576 = vmatpush.bf16.msra.mxu1 %v6451_v7  ;;  %6577 = vmatpush.bf16.msra.mxu2 %v6451_v7 }
  0x2a   : > { %6578 = vmatpush.bf16.msra.mxu3 %v6451_v7  ;;  %490 = vmatpush.bf16.msra.mxu0 %v6451_v7  ;;  %v6827_v7 = vrot.slane %v697_v62, 5  ;;  %v1389_v62 = vld [vmem:[%s6700_s8 + $0x10] sm:$0xf] }
  0x2c   : > { %511 = vmatmul.bf16.vlgmr.msra.gmra.mxu1 %v6439_v10  ;;  %531 = vmatmul.bf16.vlgmr.msra.gmra.mxu2 %v6443_v11  ;;  %v2340_v10 = vrot.slane %v2338_v0, 4  ;;  %v2343_v11 = vrot.slane %v2341_v1, 5 }
  0x2d   : > { %1757 = vmatpush.bf16.msrb.mxu2 %v6474_v8  ;;  %551 = vmatmul.bf16.vlgmr.msra.gmra.mxu3 %v6447_v12  ;;  %v703_v8 = vrot.slane %v701_v63, 4  ;;  %v6830_v12 = vrot.slane %v2347_v2, 5 }
  0x2e   : > { %2136 = vmatpush.bf16.msrb.mxu3 %v6498_v9  ;;  %491 = vmatmul.bf16.vlgmr.msra.gmra.mxu0 %v6435_v13  ;;  %v1386_v9 = vld [vmem:[%s6700_s8 + $0x4] sm:$0xf]  ;;  %v2353_v13 = vrot.slane %v2351_v3, 4 }
  0x2f   : > { %1232 = vmatpush.bf16.msrb.mxu1 %v6466_v14  ;;  %2882 = vmatpush.bf16.msrb.mxu0 %v6506_v15  ;;  %v707_v14 = vshll.u32 %v638_v4, 16  ;;  %v5874_v15 = vld [vmem:[%s6700_s8 + $0x14] sm:$0x1] }
  0x31   : > { %1758 = vmatpush.bf16.msrb.mxu2 %v6473_v16  ;;  %v1486_v16 = vrot.slane %v1386_v9, 5 }
  0x32   : > { %2137 = vmatpush.bf16.msrb.mxu3 %v6497_v17  ;;  %v6442_v17 = vld [vmem:[%s6700_s8 + $0x54] sm:$0xff] }
  0x33   : > { %1233 = vmatpush.bf16.msrb.mxu1 %v6465_v18  ;;  %2883 = vmatpush.bf16.msrb.mxu0 %v6505_v19  ;;  %v6446_v18 = vld [vmem:[%s6700_s8 + $0x84] sm:$0xff]  ;;  %v694_v19 = vor.u32 %v693_v6, %v690_v5 }
  0x35   : > { %1759 = vmatpush.bf16.msrb.mxu2 %v6472_v20  ;;  %v704_v20 = vor.u32 %v703_v8, %v6827_v7 }
  0x36   : > { %2138 = vmatpush.bf16.msrb.mxu3 %v6496_v21  ;;  %v1385_v21 = vld [vmem:[%s6700_s8] sm:$0xe] }
  0x37   : > { %1234 = vmatpush.bf16.msrb.mxu1 %v6464_v22  ;;  %2884 = vmatpush.bf16.msrb.mxu0 %v6504_v23  ;;  %v6450_v22 = vld [vmem:[%s6700_s8 + $0xb4] sm:$0xff]  ;;  %v6438_v23 = vld [vmem:[%s6700_s8 + $0x24] sm:$0xff] }
  0x39   : > { %1760 = vmatpush.bf16.msrb.mxu2 %v6471_v24  ;;  %v2344_v24 = vor.u32 %v2343_v11, %v2340_v10  ;;  %v731_v10 = vshll.u32 %v641_v57, 16 }
  0x3a   : > { %2139 = vmatpush.bf16.msrb.mxu3 %v6495_v25  ;;  %v2354_v25 = vor.u32 %v2353_v13, %v6830_v12  ;;  %v1493_v13 = vrot.slane %v1389_v62, 5  ;;  %v644_v62 = vld [vmem:[%s6700_s8 + $0x20] sm:$0x1] }
  0x3b   : > { %1235 = vmatpush.bf16.msrb.mxu1 %v6463_v26  ;;  %2885 = vmatpush.bf16.msrb.mxu0 %v6503_v27  ;;  %v2357_v26 = vshll.u32 %v5874_v15, 16  ;;  %v709_v27 = vrot.slane %v707_v14, 5  ;;  %v1388_v14 = vld [vmem:[%s6700_s8 + $0xc] sm:$0xe] }
  0x3c   : > { %516 = vmatmul.bf16.gmra.mxu1 %v6440_v30  ;;  %536 = vmatmul.bf16.gmra.mxu2 %v6444_v31  ;;  %v1488_v30 = vrot.slane %v1486_v16, 4  ;;  %v639_v31 = vld [vmem:[%s6700_s8 + $0xc] sm:$0xf] }
  0x3d   : > { %1761 = vmatpush.bf16.msrb.mxu2 %v6470_v28  ;;  %556 = vmatmul.bf16.gmra.mxu3 %v6448_v32  ;;  %v1387_v28 = vld [vmem:[%s6700_s8 + $0x8] sm:$0x1]  ;;  %v640_v32 = vld [vmem:[%s6700_s8 + $0x10] sm:$0xf] }
  0x3e   : > { %2140 = vmatpush.bf16.msrb.mxu3 %v6494_v29  ;;  %496 = vmatmul.bf16.gmra.mxu0 %v6436_v33  ;;  %v5664_v29 = vrot.slane %v1385_v21, 9  ;;  %v6475_v21 = vld [vmem:[%s6700_s8 + $0xc] sm:$0xff] }
  0x3f   : > { %1236 = vmatpush.bf16.msrb.mxu1 %v6462_v34  ;;  %2886 = vmatpush.bf16.msrb.mxu0 %v6502_v35  ;;  %v695_v34 = vrot.slane %v694_v19, 4  ;;  %v705_v35 = vrot.slane %v704_v20, 4  ;;  %v1390_v20 = vld [vmem:[%s6700_s8 + $0x14] sm:$0x1] }
  0x40   : > { %v1487_v52 = vsel %vm6851_vm5, %v5664_v29, %v1486_v16 }
  0x41   : > { %1762 = vmatpush.bf16.msrb.mxu2 %v6469_v36  ;;  %v5875_v36 = vld [vmem:[%s6700_s8 + $0x18] sm:$0xf]  ;;  %v710_v53 = vsel %vm6844_vm4, %v705_v35, %v709_v27  ;;  %v1645_v5 = vunpack.c.l.b16 %v1487_v52  ;;  %v1495_v27 = vrot.slane %v1493_v13, 4  ;;  %v6537_v35 = vld [vmem:[%s8062_s1 + $0x1b0] sm:$0xff] }
  0x42   : > { %2141 = vmatpush.bf16.msrb.mxu3 %v6493_v37  ;;  %v5876_v37 = vld [vmem:[%s6700_s8 + $0x1c] sm:$0xf]  ;;  %v1121_v4 = vunpack.c.l.b16 %v710_v53 }
  0x43   : > { %1237 = vmatpush.bf16.msrb.mxu1 %v6461_v38  ;;  %2887 = vmatpush.bf16.msrb.mxu0 %v6501_v39  ;;  %v1489_v39 = vrot.slane %v1387_v28, 5  ;;  %v1496_v28 = vrot.slane %v1390_v20, 5 }
  0x45   : > { %1763 = vmatpush.bf16.msrb.mxu2 %v6468_v40  ;;  %v2345_v40 = vrot.slane %v2344_v24, 4 }
  0x46   : > { %2142 = vmatpush.bf16.msrb.mxu3 %v6492_v41  ;;  %v2355_v41 = vrot.slane %v2354_v25, 4 }
  0x47   : > { %1238 = vmatpush.bf16.msrb.mxu1 %v6460_v42  ;;  %2888 = vmatpush.bf16.msrb.mxu0 %v6500_v43  ;;  %v2359_v42 = vrot.slane %v2357_v26, 5  ;;  %v712_v43 = vshrl.u32 %v639_v31, 16  ;;  %v5665_v26 = vrot.slane %v1388_v14, 9 }
  0x49   : > { %1764 = vmatpush.bf16.msrb.mxu2 %v6467_v44  ;;  %v715_v44 = vshll.u32 %v639_v31, 16  ;;  %v714_v58 = vrot.slane %v712_v43, 4  ;;  %v5879_v43 = vld [vmem:[%s6700_s8 + $0x28] sm:$0xf] }
  0x4a   : > { %2143 = vmatpush.bf16.msrb.mxu3 %v6491_v45  ;;  %v721_v45 = vshll.u32 %v640_v32, 16 }
  0x4b   : > { %1239 = vmatpush.bf16.msrb.mxu1 %v6459_v46  ;;  %2889 = vmatpush.bf16.msrb.mxu0 %v6499_v47  ;;  %v725_v46 = vshrl.u32 %v640_v32, 16  ;;  %v2362_v47 = vshrl.u32 %v5875_v36, 16  ;;  %v642_v32 = vld [vmem:[%s6700_s8 + $0x18] sm:$0xf] }
  0x4c   : > { %521 = vmatmul.bf16.gmra.mxu1 %v6441_v48  ;;  %541 = vmatmul.bf16.gmra.mxu2 %v6445_v49  ;;  %v2365_v48 = vshll.u32 %v5875_v36, 16  ;;  %v2371_v49 = vshll.u32 %v5876_v37, 16  ;;  %v6870_v60 = vrot.slane %v721_v45, 5  ;;  %v6545_v36 = vld [vmem:[%s8062_s1 + $0x1f0] sm:$0xff]  ;;  %v1497_v45 = vsel %vm6851_vm5, %v1495_v27, %v1496_v28 }
  0x4d   : > { %561 = vmatmul.bf16.gmra.mxu3 %v6449_v50  ;;  %3783 = vmatpush.bf16.msra.mxu2 %v6538_v54  ;;  %v2375_v50 = vshrl.u32 %v5876_v37, 16  ;;  %v1490_v54 = vsel %vm6851_vm5, %v1488_v30, %v1489_v39  ;;  %v727_v61 = vrot.slane %v725_v46, 4  ;;  %v2364_v63 = vrot.slane %v2362_v47, 4  ;;  %v6513_v37 = vld [vmem:[%s8062_s1 + $0x170] sm:$0xff] }
  0x4e   : > { %501 = vmatmul.bf16.gmra.mxu0 %v6437_v51  ;;  %4529 = vmatpush.bf16.msra.mxu3 %v6546_v55  ;;  %v700_v51 = vsel %vm6844_vm4, %v695_v34, %v6827_v7  ;;  %v2350_v55 = vsel %vm6844_vm4, %v2345_v40, %v6830_v12  ;;  %v2367_v0 = vrot.slane %v2365_v48, 5  ;;  %v6873_v1 = vrot.slane %v2371_v49, 5  ;;  %v5877_v7 = vld [vmem:[%s6700_s8 + $0x20] sm:$0x1]  ;;  %v643_v34 = vld [vmem:[%s6700_s8 + $0x1c] sm:$0xf] }
  0x4f   : > { %3404 = vmatpush.bf16.msra.mxu1 %v6514_v56  ;;  %5051 = vmatpush.bf16.msra.mxu0 %v6554_v59  ;;  %v2360_v56 = vsel %vm6844_vm4, %v2355_v41, %v2359_v42  ;;  %v717_v59 = vrot.slane %v715_v44, 5  ;;  %v2377_v2 = vrot.slane %v2375_v50, 4  ;;  %v1120_v3 = vunpack.c.l.b16 %v700_v51  ;;  %v5878_v42 = vld [vmem:[%s6700_s8 + $0x24] sm:$0xf]  ;;  %v6553_v44 = vld [vmem:[%s8062_s1 + $0x230] sm:$0xff] }
  0x50   : > { %v1646_v6 = vunpack.c.l.b16 %v1490_v54  ;;  %v2770_v8 = vunpack.c.l.b16 %v2350_v55  ;;  %v2771_v9 = vunpack.c.l.b16 %v2360_v56  ;;  %v728_v12 = vor.u32 %v727_v61, %v6870_v60 }
  0x51   : > { %v718_v11 = vor.u32 %v717_v59, %v714_v58  ;;  %v2368_v15 = vor.u32 %v2367_v0, %v2364_v63  ;;  %v2378_v16 = vor.u32 %v2377_v2, %v6873_v1  ;;  %v1494_v41 = vsel %vm6851_vm5, %v5665_v26, %v1493_v13  ;;  %3784 = vmatpush.bf16.msra.mxu2 %v6537_v35  ;;  %v5882_v35 = vld [vmem:[%s6700_s8 + $0x34] sm:$0xf] }
  0x52   : > { %v1677_v19 = vpack.c.b16 %v1646_v6, %v1645_v5  ;;  %v729_v25 = vrot.slane %v728_v12, 4  ;;  %4530 = vmatpush.bf16.msra.mxu3 %v6545_v36  ;;  %v736_v48 = vshrl.u32 %v642_v32, 16  ;;  %v739_v49 = vshll.u32 %v642_v32, 16 }
  0x53   : > { %v719_v24 = vrot.slane %v718_v11, 4  ;;  %v2369_v29 = vrot.slane %v2368_v15, 4  ;;  %v2379_v30 = vrot.slane %v2378_v16, 4  ;;  %v745_v50 = vshll.u32 %v643_v34, 16  ;;  %3405 = vmatpush.bf16.msra.mxu1 %v6513_v37  ;;  %5052 = vmatpush.bf16.msra.mxu0 %v6553_v44  ;;  %v6476_v15 = vld [vmem:[%s6700_s8 + $0x18] sm:$0xff] }
  0x54   : > { %v749_v51 = vshrl.u32 %v643_v34, 16  ;;  %v2386_v52 = vshrl.u32 %v5878_v42, 16  ;;  %v2389_v53 = vshll.u32 %v5878_v42, 16  ;;  %v2395_v54 = vshll.u32 %v5879_v43, 16 }
  0x55   : > { %v724_v39 = vsel %vm6844_vm4, %v719_v24, %v6870_v60  ;;  %v2374_v46 = vsel %vm6844_vm4, %v2369_v29, %v6873_v1  ;;  %v2399_v55 = vshrl.u32 %v5879_v43, 16  ;;  %v1647_v58 = vunpack.c.l.b16 %v1494_v41  ;;  %v646_v24 = vld [vmem:[%s6700_s8 + $0x28] sm:$0xf]  ;;  %v5881_v29 = vld [vmem:[%s6700_s8 + $0x30] sm:$0xf] }
  0x56   : > { %v1122_v56 = vunpack.c.l.b16 %v724_v39  ;;  %v1648_v59 = vunpack.c.l.b16 %v1497_v45  ;;  %v2772_v60 = vunpack.c.l.b16 %v2374_v46  ;;  %v738_v63 = vrot.slane %v736_v48, 4 }
  0x57   : > { %v741_v0 = vrot.slane %v739_v49, 5  ;;  %v747_v1 = vrot.slane %v745_v50, 5  ;;  %v751_v2 = vrot.slane %v749_v51, 4  ;;  %v2391_v5 = vrot.slane %v2389_v53, 5 }
  0x58   : > { %v2397_v6 = vrot.slane %v2395_v54, 5  ;;  %v1678_v11 = vpack.c.b16 %v1648_v59, %v1647_v58  ;;  %v769_v39 = vshll.u32 %v646_v24, 16  ;;  %v2410_v41 = vshrl.u32 %v5881_v29, 16 }
  0x59   : > { %v742_v12 = vor.u32 %v741_v0, %v738_v63  ;;  %v752_v13 = vor.u32 %v751_v2, %v747_v1  ;;  %v2413_v42 = vshll.u32 %v5881_v29, 16  ;;  %v2419_v45 = vshll.u32 %v5882_v35, 16 }
  0x5a   : > { %v2423_v46 = vshrl.u32 %v5882_v35, 16  ;;  %v6933_v53 = vrot.slane %v769_v39, 5  ;;  %v2412_v58 = vrot.slane %v2410_v41, 4  ;;  %v5885_v41 = vld [vmem:[%s6700_s8 + $0x40] sm:$0xf] }
  0x5b   : > { %v753_v26 = vrot.slane %v752_v13, 4  ;;  %v2415_v59 = vrot.slane %v2413_v42, 5  ;;  %v6937_v63 = vrot.slane %v2419_v45, 5 }
  0x5c   : > { %526 = vmatmul.bf16.gmra.mxu1 %v6442_v17  ;;  %546 = vmatmul.bf16.gmra.mxu2 %v6446_v18  ;;  %v2381_v17 = vshll.u32 %v5877_v7, 16  ;;  %v1152_v18 = vpack.c.b16 %v1121_v4, %v1120_v3  ;;  %v1392_v3 = vld [vmem:[%s6700_s8 + $0x1c] sm:$0xf]  ;;  %v2388_v4 = vrot.slane %v2386_v52, 4  ;;  %v2401_v7 = vrot.slane %v2399_v55, 4 }
  0x5d   : > { %566 = vmatmul.bf16.gmra.mxu3 %v6450_v22  ;;  %v2802_v22 = vpack.c.b16 %v2771_v9, %v2770_v8  ;;  %v5880_v8 = vld [vmem:[%s6700_s8 + $0x2c] sm:$0x1]  ;;  %v1500_v14 = vrot.slane %v1392_v3, 5  ;;  %v2425_v0 = vrot.slane %v2423_v46, 4  ;;  %v5883_v3 = vld [vmem:[%s6700_s8 + $0x38] sm:$0x1] }
  0x5e   : > { %506 = vmatmul.bf16.gmra.mxu0 %v6438_v23  ;;  %v733_v23 = vrot.slane %v731_v10, 5  ;;  %v2383_v31 = vrot.slane %v2381_v17, 5  ;;  %v755_v10 = vshll.u32 %v644_v62, 16  ;;  %v1391_v17 = vld [vmem:[%s6700_s8 + $0x18] sm:$0xe]  ;;  %v2405_v20 = vshll.u32 %v5880_v8, 16 }
  0x5f   : > { %v5666_v27 = vrot.slane %v1391_v17, 9  ;;  %v1502_v28 = vrot.slane %v1500_v14, 4  ;;  %v1395_v62 = vld [vmem:[%s6700_s8 + $0x28] sm:$0xf]  ;;  %v2416_v8 = vor.u32 %v2415_v59, %v2412_v58  ;;  %v2426_v13 = vor.u32 %v2425_v0, %v6937_v63  ;;  %v648_v17 = vld [vmem:[%s6700_s8 + $0x30] sm:$0xf] }
  0x60   : > { %v734_v40 = vsel %vm6844_vm4, %v729_v25, %v733_v23  ;;  %v2384_v47 = vsel %vm6844_vm4, %v2379_v30, %v2383_v31  ;;  %v645_v23 = vld [vmem:[%s6700_s8 + $0x24] sm:$0xf]  ;;  %v743_v25 = vrot.slane %v742_v12, 4  ;;  %v2407_v34 = vrot.slane %v2405_v20, 5  ;;  %v1396_v12 = vld [vmem:[%s6700_s8 + $0x2c] sm:$0x1] }
  0x61   : > { %v1123_v57 = vunpack.c.l.b16 %v734_v40  ;;  %v2773_v61 = vunpack.c.l.b16 %v2384_v47  ;;  %v760_v36 = vshrl.u32 %v645_v23, 16  ;;  %v763_v37 = vshll.u32 %v645_v23, 16  ;;  %v6512_v46 = vld [vmem:[%s8062_s1 + $0x168] sm:$0xff] }
  0x62   : > { %v773_v40 = vshrl.u32 %v646_v24, 16  ;;  %v748_v43 = vsel %vm6844_vm4, %v743_v25, %v747_v1  ;;  %v1501_v47 = vsel %vm6851_vm5, %v5666_v27, %v1500_v14  ;;  %v2429_v14 = vshll.u32 %v5883_v3, 16  ;;  %3406 = vmatpush.bf16.msra.mxu1 %v6512_v46 }
  0x63   : > { %v1153_v9 = vpack.c.b16 %v1123_v57, %v1122_v56  ;;  %v2803_v16 = vpack.c.b16 %v2773_v61, %v2772_v60  ;;  %v762_v51 = vrot.slane %v760_v36, 4  ;;  %v765_v52 = vrot.slane %v763_v37, 5  ;;  %v647_v57 = vld [vmem:[%s6700_s8 + $0x2c] sm:$0x1]  ;;  %v5884_v36 = vld [vmem:[%s6700_s8 + $0x3c] sm:$0xf] }
  0x64   : > { %v775_v54 = vrot.slane %v773_v40, 4  ;;  %v1124_v55 = vunpack.c.l.b16 %v748_v43  ;;  %v1649_v60 = vunpack.c.l.b16 %v1501_v47  ;;  %v1510_v24 = vrot.slane %v1396_v12, 5  ;;  %v6478_v12 = vld [vmem:[%s6700_s8 + $0x30] sm:$0xff] }
  0x65   : > { %v2417_v25 = vrot.slane %v2416_v8, 4  ;;  %v2431_v27 = vrot.slane %v2429_v14, 5  ;;  %v787_v29 = vshll.u32 %v648_v17, 16 }
  0x67   : > { %v2422_v42 = vsel %vm6844_vm4, %v2417_v25, %v6937_v63  ;;  %v789_v45 = vrot.slane %v787_v29, 5 }
  0x68   : > { %v2776_v59 = vunpack.c.l.b16 %v2422_v42 }
  0x6c   : > { %1240 = vmatmul.bf16.vlgmr.msrb.gmra.mxu1 %v1152_v18  ;;  %1765 = vmatmul.bf16.vlgmr.msrb.gmra.mxu2 %v1677_v19  ;;  %v2392_v18 = vor.u32 %v2391_v5, %v2388_v4  ;;  %v2402_v19 = vor.u32 %v2401_v7, %v2397_v6  ;;  %v766_v4 = vor.u32 %v765_v52, %v762_v51  ;;  %v1507_v7 = vrot.slane %v1395_v62, 5  ;;  %v650_v51 = vld [vmem:[%s6700_s8 + $0x38] sm:$0x1]  ;;  %v1398_v62 = vld [vmem:[%s6700_s8 + $0x34] sm:$0xf] }
  0x6d   : > { %2144 = vmatmul.bf16.vlgmr.msrb.gmra.mxu3 %v6475_v21  ;;  %v1393_v21 = vld [vmem:[%s6700_s8 + $0x20] sm:$0x1]  ;;  %v776_v5 = vor.u32 %v775_v54, %v6933_v53  ;;  %v2443_v52 = vshll.u32 %v5885_v41, 16  ;;  %v6552_v54 = vld [vmem:[%s8062_s1 + $0x228] sm:$0xff]  ;;  %v803_v0 = vshll.u32 %v650_v51, 16 }
  0x6e   : > { %2890 = vmatmul.bf16.vlgmr.msrb.gmra.mxu0 %v2802_v22  ;;  %v757_v22 = vrot.slane %v755_v10, 5  ;;  %v1503_v30 = vrot.slane %v1393_v21, 5  ;;  %v2393_v31 = vrot.slane %v2392_v18, 4  ;;  %v2403_v32 = vrot.slane %v2402_v19, 4  ;;  %v649_v21 = vld [vmem:[%s6700_s8 + $0x34] sm:$0xf] }
  0x6f   : > { %v767_v18 = vrot.slane %v766_v4, 4  ;;  %v777_v19 = vrot.slane %v776_v5, 4  ;;  %v1509_v23 = vrot.slane %v1507_v7, 4  ;;  %5053 = vmatpush.bf16.msra.mxu0 %v6552_v54  ;;  %v2445_v3 = vrot.slane %v2443_v52, 5  ;;  %v653_v51 = vld [vmem:[%s6700_s8 + $0x44] sm:$0x1] }
  0x70   : > { %v758_v44 = vsel %vm6844_vm4, %v753_v26, %v757_v22  ;;  %v1504_v48 = vsel %vm6851_vm5, %v1502_v28, %v1503_v30  ;;  %v2398_v49 = vsel %vm6844_vm4, %v2393_v31, %v2397_v6  ;;  %v2408_v50 = vsel %vm6844_vm4, %v2403_v32, %v2407_v34  ;;  %v6536_v32 = vld [vmem:[%s8062_s1 + $0x1a8] sm:$0xff]  ;;  %v1401_v54 = vld [vmem:[%s6700_s8 + $0x40] sm:$0xf] }
  0x71   : > { %v1125_v56 = vunpack.c.l.b16 %v758_v44  ;;  %v1650_v61 = vunpack.c.l.b16 %v1504_v48  ;;  %v2774_v1 = vunpack.c.l.b16 %v2398_v49  ;;  %v2775_v2 = vunpack.c.l.b16 %v2408_v50  ;;  %v6544_v34 = vld [vmem:[%s8062_s1 + $0x1e8] sm:$0xff]  ;;  %3785 = vmatpush.bf16.msra.mxu2 %v6536_v32 }
  0x72   : > { %v779_v6 = vshll.u32 %v647_v57, 16  ;;  %v2427_v26 = vrot.slane %v2426_v13, 4  ;;  %v784_v28 = vshrl.u32 %v648_v17, 16  ;;  %v793_v30 = vshll.u32 %v649_v21, 16  ;;  %4531 = vmatpush.bf16.msra.mxu3 %v6544_v34 }
  0x73   : > { %v1679_v10 = vpack.c.b16 %v1650_v61, %v1649_v60  ;;  %v797_v31 = vshrl.u32 %v649_v21, 16  ;;  %v772_v35 = vsel %vm6844_vm4, %v767_v18, %v6933_v53  ;;  %v1511_v40 = vsel %vm6851_vm5, %v1509_v23, %v1510_v24  ;;  %v652_v23 = vld [vmem:[%s6700_s8 + $0x40] sm:$0xf] }
  0x74   : > { %v781_v20 = vrot.slane %v779_v6, 5  ;;  %v2432_v43 = vsel %vm6844_vm4, %v2427_v26, %v2431_v27  ;;  %v786_v44 = vrot.slane %v784_v28, 4  ;;  %v6972_v47 = vrot.slane %v793_v30, 5  ;;  %v5886_v6 = vld [vmem:[%s6700_s8 + $0x44] sm:$0x1] }
  0x75   : > { %v799_v48 = vrot.slane %v797_v31, 4  ;;  %v2434_v49 = vshrl.u32 %v5884_v36, 16  ;;  %v2437_v50 = vshll.u32 %v5884_v36, 16  ;;  %v2447_v53 = vshrl.u32 %v5885_v41, 16  ;;  %v5887_v27 = vld [vmem:[%s6700_s8 + $0x48] sm:$0xf] }
  0x76   : > { %v782_v37 = vsel %vm6844_vm4, %v777_v19, %v781_v20  ;;  %v1652_v58 = vunpack.c.l.b16 %v1511_v40  ;;  %v2777_v60 = vunpack.c.l.b16 %v2432_v43  ;;  %v790_v61 = vor.u32 %v789_v45, %v786_v44  ;;  %v5888_v28 = vld [vmem:[%s6700_s8 + $0x4c] sm:$0xf] }
  0x77   : > { %v800_v63 = vor.u32 %v799_v48, %v6972_v47  ;;  %v2449_v4 = vrot.slane %v2447_v53, 4  ;;  %v1514_v5 = vrot.slane %v1398_v62, 5  ;;  %v2453_v18 = vshll.u32 %v5886_v6, 16 }
  0x78   : > { %v791_v13 = vrot.slane %v790_v61, 4  ;;  %v817_v36 = vshll.u32 %v652_v23, 16  ;;  %v2461_v40 = vshll.u32 %v5887_v27, 16  ;;  %v2467_v41 = vshll.u32 %v5888_v28, 16  ;;  %v5889_v61 = vld [vmem:[%s6700_s8 + $0x50] sm:$0x1] }
  0x79   : > { %v801_v14 = vrot.slane %v800_v63, 4  ;;  %v2450_v17 = vor.u32 %v2449_v4, %v2445_v3  ;;  %v1516_v20 = vrot.slane %v1514_v5, 4  ;;  %v2455_v30 = vrot.slane %v2453_v18, 5 }
  0x7a   : > { %v796_v24 = vsel %vm6844_vm4, %v791_v13, %v6972_v47  ;;  %v2471_v42 = vshrl.u32 %v5888_v28, 16  ;;  %v7002_v52 = vrot.slane %v817_v36, 5  ;;  %v5890_v28 = vld [vmem:[%s6700_s8 + $0x54] sm:$0xf] }
  0x7b   : > { %v2451_v29 = vrot.slane %v2450_v17, 4  ;;  %v1128_v43 = vunpack.c.l.b16 %v796_v24  ;;  %v6535_v24 = vld [vmem:[%s8062_s1 + $0x1a0] sm:$0xff] }
  0x7c   : > { %1245 = vmatmul.bf16.gmra.mxu1 %v1153_v9  ;;  %1770 = vmatmul.bf16.gmra.mxu2 %v1678_v11  ;;  %v1154_v9 = vpack.c.b16 %v1125_v56, %v1124_v55  ;;  %v1394_v11 = vld [vmem:[%s6700_s8 + $0x24] sm:$0xe]  ;;  %v1126_v55 = vunpack.c.l.b16 %v772_v35  ;;  %v1127_v56 = vunpack.c.l.b16 %v782_v37  ;;  %v821_v37 = vshrl.u32 %v652_v23, 16  ;;  %v655_v23 = vld [vmem:[%s6700_s8 + $0x4c] sm:$0xf] }
  0x7d   : > { %2149 = vmatmul.bf16.gmra.mxu3 %v6476_v15  ;;  %v6477_v15 = vld [vmem:[%s6700_s8 + $0x24] sm:$0xff]  ;;  %v5667_v22 = vrot.slane %v1394_v11, 9  ;;  %v1399_v11 = vld [vmem:[%s6700_s8 + $0x38] sm:$0x1]  ;;  %v2456_v46 = vsel %vm6844_vm4, %v2451_v29, %v2455_v30  ;;  %3786 = vmatpush.bf16.msra.mxu2 %v6535_v24 }
  0x7e   : > { %2895 = vmatmul.bf16.gmra.mxu0 %v2803_v16  ;;  %v2804_v16 = vpack.c.b16 %v2775_v2, %v2774_v1  ;;  %v2436_v1 = vrot.slane %v2434_v49, 4  ;;  %v2439_v2 = vrot.slane %v2437_v50, 5  ;;  %v1517_v21 = vrot.slane %v1399_v11, 5  ;;  %v5891_v29 = vld [vmem:[%s6700_s8 + $0x58] sm:$0xf] }
  0x7f   : > { %v1508_v39 = vsel %vm6851_vm5, %v5667_v22, %v1507_v7  ;;  %v1155_v7 = vpack.c.b16 %v1127_v56, %v1126_v55  ;;  %v651_v22 = vld [vmem:[%s6700_s8 + $0x3c] sm:$0xf]  ;;  %v823_v53 = vrot.slane %v821_v37, 4  ;;  %v2463_v56 = vrot.slane %v2461_v40, 5 }
  0x80   : > { %v1651_v57 = vunpack.c.l.b16 %v1508_v39  ;;  %v808_v31 = vshrl.u32 %v651_v22, 16  ;;  %v811_v32 = vshll.u32 %v651_v22, 16  ;;  %v1518_v35 = vsel %vm6851_vm5, %v1516_v20, %v1517_v21  ;;  %v654_v22 = vld [vmem:[%s6700_s8 + $0x48] sm:$0xf] }
  0x81   : > { %v2458_v39 = vshrl.u32 %v5887_v27, 16  ;;  %v1654_v50 = vunpack.c.l.b16 %v1518_v35  ;;  %v835_v35 = vshll.u32 %v654_v22, 16  ;;  %v841_v40 = vshll.u32 %v655_v23, 16 }
  0x82   : > { %v1680_v8 = vpack.c.b16 %v1652_v58, %v1651_v57  ;;  %v810_v47 = vrot.slane %v808_v31, 4  ;;  %v813_v48 = vrot.slane %v811_v32, 5  ;;  %v7005_v57 = vrot.slane %v2467_v41, 5 }
  0x83   : > { %v2460_v55 = vrot.slane %v2458_v39, 4  ;;  %v2473_v58 = vrot.slane %v2471_v42, 4  ;;  %v845_v41 = vshrl.u32 %v655_v23, 16  ;;  %v6511_v42 = vld [vmem:[%s8062_s1 + $0x160] sm:$0xff] }
  0x84   : > { %v814_v62 = vor.u32 %v813_v48, %v810_v47  ;;  %v2495_v47 = vshrl.u32 %v5891_v29, 16  ;;  %3407 = vmatpush.bf16.msra.mxu1 %v6511_v42  ;;  %v5893_v42 = vld [vmem:[%s6700_s8 + $0x60] sm:$0xf] }
  0x85   : > { %v2464_v6 = vor.u32 %v2463_v56, %v2460_v55  ;;  %v837_v55 = vrot.slane %v835_v35, 5 }
  0x86   : > { %v815_v13 = vrot.slane %v814_v62, 4  ;;  %v5892_v62 = vld [vmem:[%s6700_s8 + $0x5c] sm:$0x1] }
  0x8c   : > { %1250 = vmatmul.bf16.gmra.mxu1 %v1154_v9  ;;  %1775 = vmatmul.bf16.gmra.mxu2 %v1679_v10  ;;  %v2805_v9 = vpack.c.b16 %v2777_v60, %v2776_v59  ;;  %v1397_v10 = vld [vmem:[%s6700_s8 + $0x30] sm:$0xe]  ;;  %v2779_v60 = vunpack.c.l.b16 %v2456_v46  ;;  %v2491_v46 = vshll.u32 %v5891_v29, 16 }
  0x8d   : > { %2154 = vmatmul.bf16.gmra.mxu3 %v6477_v15  ;;  %v805_v15 = vrot.slane %v803_v0, 5  ;;  %v5668_v19 = vrot.slane %v1397_v10, 9  ;;  %v824_v0 = vor.u32 %v823_v53, %v7002_v52  ;;  %v6479_v10 = vld [vmem:[%s6700_s8 + $0x3c] sm:$0xff] }
  0x8e   : > { %2900 = vmatmul.bf16.gmra.mxu0 %v2804_v16  ;;  %v2440_v16 = vor.u32 %v2439_v2, %v2436_v1  ;;  %v827_v1 = vshll.u32 %v653_v51, 16  ;;  %v1400_v2 = vld [vmem:[%s6700_s8 + $0x3c] sm:$0xe]  ;;  %v6551_v51 = vld [vmem:[%s8062_s1 + $0x220] sm:$0xff] }
  0x8f   : > { %v806_v25 = vsel %vm6844_vm4, %v801_v14, %v805_v15  ;;  %v1515_v34 = vsel %vm6851_vm5, %v5668_v19, %v1514_v5  ;;  %v1402_v5 = vld [vmem:[%s6700_s8 + $0x44] sm:$0x1]  ;;  %v5669_v14 = vrot.slane %v1400_v2, 9  ;;  %v825_v15 = vrot.slane %v824_v0, 4  ;;  %5054 = vmatpush.bf16.msra.mxu0 %v6551_v51 }
  0x90   : > { %v2441_v26 = vrot.slane %v2440_v16, 4  ;;  %v1129_v44 = vunpack.c.l.b16 %v806_v25  ;;  %v1653_v49 = vunpack.c.l.b16 %v1515_v34  ;;  %v829_v16 = vrot.slane %v827_v1, 5  ;;  %v6543_v25 = vld [vmem:[%s8062_s1 + $0x1e0] sm:$0xff] }
  0x91   : > { %v1524_v18 = vrot.slane %v1402_v5, 5  ;;  %v2465_v19 = vrot.slane %v2464_v6, 4  ;;  %v832_v34 = vshrl.u32 %v654_v22, 16  ;;  %4532 = vmatpush.bf16.msra.mxu3 %v6543_v25  ;;  %v7060_v1 = vrot.slane %v2491_v46, 5  ;;  %v657_v22 = vld [vmem:[%s6700_s8 + $0x54] sm:$0xf] }
  0x92   : > { %v2446_v45 = vsel %vm6844_vm4, %v2441_v26, %v2445_v3  ;;  %v1156_v63 = vpack.c.b16 %v1129_v44, %v1128_v43  ;;  %v1521_v3 = vrot.slane %v1401_v54, 5  ;;  %v1681_v4 = vpack.c.b16 %v1654_v50, %v1653_v49 }
  0x93   : > { %v2778_v59 = vunpack.c.l.b16 %v2446_v45  ;;  %v820_v26 = vsel %vm6844_vm4, %v815_v13, %v7002_v52  ;;  %v830_v31 = vsel %vm6844_vm4, %v825_v15, %v829_v16  ;;  %v2470_v37 = vsel %vm6844_vm4, %v2465_v19, %v7005_v57  ;;  %v6480_v16 = vld [vmem:[%s6700_s8 + $0x48] sm:$0xff] }
  0x94   : > { %v1523_v17 = vrot.slane %v1521_v3, 4  ;;  %v1522_v27 = vsel %vm6851_vm5, %v5669_v14, %v1521_v3  ;;  %v2482_v44 = vshrl.u32 %v5890_v28, 16  ;;  %v2485_v45 = vshll.u32 %v5890_v28, 16 }
  0x95   : > { %v2806_v11 = vpack.c.b16 %v2779_v60, %v2778_v59  ;;  %v1130_v49 = vunpack.c.l.b16 %v820_v26  ;;  %v1655_v50 = vunpack.c.l.b16 %v1522_v27  ;;  %v1131_v52 = vunpack.c.l.b16 %v830_v31  ;;  %v658_v31 = vld [vmem:[%s6700_s8 + $0x58] sm:$0xf] }
  0x96   : > { %v1525_v32 = vsel %vm6851_vm5, %v1523_v17, %v1524_v18  ;;  %v834_v54 = vrot.slane %v832_v34, 4  ;;  %v2780_v56 = vunpack.c.l.b16 %v2470_v37  ;;  %v7056_v59 = vrot.slane %v841_v40, 5  ;;  %v1405_v18 = vld [vmem:[%s6700_s8 + $0x50] sm:$0x1] }
  0x97   : > { %v1656_v53 = vunpack.c.l.b16 %v1525_v32  ;;  %v847_v60 = vrot.slane %v845_v41, 4  ;;  %v2487_v0 = vrot.slane %v2485_v45, 5  ;;  %v2497_v2 = vrot.slane %v2495_v47, 4 }
  0x98   : > { %v838_v5 = vor.u32 %v837_v55, %v834_v54  ;;  %v2501_v14 = vshll.u32 %v5892_v62, 16  ;;  %v1531_v28 = vrot.slane %v1405_v18, 5  ;;  %v856_v35 = vshrl.u32 %v657_v22, 16 }
  0x99   : > { %v859_v37 = vshll.u32 %v657_v22, 16  ;;  %v865_v40 = vshll.u32 %v658_v31, 16  ;;  %v869_v41 = vshrl.u32 %v658_v31, 16 }
  0x9a   : > { %v839_v23 = vrot.slane %v838_v5, 4  ;;  %v2503_v29 = vrot.slane %v2501_v14, 5  ;;  %v858_v54 = vrot.slane %v856_v35, 4  ;;  %v1407_v5 = vld [vmem:[%s6700_s8 + $0x58] sm:$0xf] }
  0x9b   : > { %v861_v55 = vrot.slane %v859_v37, 5  ;;  %v871_v62 = vrot.slane %v869_v41, 4 }
  0x9c   : > { %1255 = vmatmul.bf16.gmra.mxu1 %v1155_v7  ;;  %1780 = vmatmul.bf16.gmra.mxu2 %v1680_v8  ;;  %v2474_v7 = vor.u32 %v2473_v58, %v7005_v57  ;;  %v2477_v8 = vshll.u32 %v5889_v61, 16  ;;  %v656_v58 = vld [vmem:[%s6700_s8 + $0x50] sm:$0x1]  ;;  %v1404_v61 = vld [vmem:[%s6700_s8 + $0x4c] sm:$0xf]  ;;  %v844_v46 = vsel %vm6844_vm4, %v839_v23, %v7056_v59  ;;  %v1535_v23 = vrot.slane %v1407_v5, 5 }
  0x9d   : > { %2159 = vmatmul.bf16.gmra.mxu3 %v6478_v12  ;;  %v851_v6 = vshll.u32 %v656_v58, 16  ;;  %v1528_v13 = vrot.slane %v1404_v61, 5  ;;  %v2509_v58 = vshll.u32 %v5893_v42, 16  ;;  %v7101_v61 = vrot.slane %v865_v40, 5 }
  0x9e   : > { %2905 = vmatmul.bf16.gmra.mxu0 %v2805_v9  ;;  %v2475_v20 = vrot.slane %v2474_v7, 4  ;;  %v2479_v21 = vrot.slane %v2477_v8, 5  ;;  %v1682_v8 = vpack.c.b16 %v1656_v53, %v1655_v50 }
  0x9f   : > { %v853_v24 = vrot.slane %v851_v6, 5  ;;  %v1530_v27 = vrot.slane %v1528_v13, 4 }
  0xa0   : > { %v2480_v39 = vsel %vm6844_vm4, %v2475_v20, %v2479_v21  ;;  %v2498_v20 = vor.u32 %v2497_v2, %v7060_v1 }
  0xa1   : > { %v2781_v57 = vunpack.c.l.b16 %v2480_v39  ;;  %v1532_v50 = vsel %vm6851_vm5, %v1530_v27, %v1531_v28  ;;  %v1408_v27 = vld [vmem:[%s6700_s8 + $0x5c] sm:$0x1] }
  0xa2   : > { %v2499_v34 = vrot.slane %v2498_v20, 4  ;;  %v1658_v2 = vunpack.c.l.b16 %v1532_v50  ;;  %v872_v20 = vor.u32 %v871_v62, %v7101_v61  ;;  %v661_v50 = vld [vmem:[%s6700_s8 + $0x64] sm:$0xf] }
  0xa3   : > { %v2807_v17 = vpack.c.b16 %v2781_v57, %v2780_v56  ;;  %v2506_v57 = vshrl.u32 %v5893_v42, 16  ;;  %v893_v5 = vshrl.u32 %v661_v50, 16 }
  0xa4   : > { %v2504_v53 = vsel %vm6844_vm4, %v2499_v34, %v2503_v29  ;;  %v6481_v29 = vld [vmem:[%s6700_s8 + $0x54] sm:$0xff]  ;;  %v873_v42 = vrot.slane %v872_v20, 4 }
  0xa5   : > { %v2508_v14 = vrot.slane %v2506_v57, 4  ;;  %v6534_v57 = vld [vmem:[%s8062_s1 + $0x198] sm:$0xff] }
  0xa6   : > { %3787 = vmatpush.bf16.msra.mxu2 %v6534_v57 }
  0xa9   : > { %v7012_v9 = vpop.f32.mrf.mxu1 }
  0xab   : > { %v7015_v12 = vpop.f32.mrf.mxu0 }
  0xac   : > { %1260 = vmatmul.bf16.gmra.mxu1 %v1156_v63  ;;  %1785 = vmatmul.bf16.gmra.mxu2 %v1681_v4  ;;  %v2484_v63 = vrot.slane %v2482_v44, 4  ;;  %v1157_v4 = vpack.c.b16 %v1131_v52, %v1130_v49  ;;  %v5894_v44 = vld [vmem:[%s6700_s8 + $0x64] sm:$0xf] }
  0xad   : > { %2164 = vmatmul.bf16.gmra.mxu3 %v6479_v10  ;;  %v848_v10 = vor.u32 %v847_v60, %v7056_v59  ;;  %v2515_v59 = vshll.u32 %v5894_v44, 16  ;;  %v2519_v60 = vshrl.u32 %v5894_v44, 16 }
  0xae   : > { %2910 = vmatmul.bf16.gmra.mxu0 %v2806_v11  ;;  %v1403_v11 = vld [vmem:[%s6700_s8 + $0x48] sm:$0xe]  ;;  %v2488_v19 = vor.u32 %v2487_v0, %v2484_v63  ;;  %v1132_v63 = vunpack.c.l.b16 %v844_v46  ;;  %v1537_v46 = vrot.slane %v1535_v23, 4 }
  0xaf   : > { %v7032_v30 = vpop.f32.mrf.mxu2  ;;  %v5670_v25 = vrot.slane %v1403_v11, 9  ;;  %v849_v26 = vrot.slane %v848_v10, 4  ;;  %v862_v10 = vor.u32 %v861_v55, %v858_v54  ;;  %v1406_v11 = vld [vmem:[%s6700_s8 + $0x54] sm:$0xe]  ;;  %v2521_v18 = vrot.slane %v2519_v60, 4 }
  0xb0   : > { %v7038_v36 = vpop.f32.mrf.mxu3  ;;  %v2489_v32 = vrot.slane %v2488_v19, 4  ;;  %v5671_v34 = vrot.slane %v1406_v11, 9 }
  0xb1   : > { %v7048_v43 = vpop.f32.mrf.mxu1  ;;  %v854_v47 = vsel %vm6844_vm4, %v849_v26, %v853_v24  ;;  %v1529_v49 = vsel %vm6851_vm5, %v5670_v25, %v1528_v13  ;;  %v5895_v13 = vld [vmem:[%s6700_s8 + $0x68] sm:$0x1] }
  0xb2   : > { %v2494_v52 = vsel %vm6844_vm4, %v2489_v32, %v7060_v1  ;;  %v1133_v0 = vunpack.c.l.b16 %v854_v47  ;;  %v1657_v1 = vunpack.c.l.b16 %v1529_v49  ;;  %v863_v32 = vrot.slane %v862_v10, 4  ;;  %v660_v49 = vld [vmem:[%s6700_s8 + $0x60] sm:$0xf] }
  0xb3   : > { %v7050_v48 = vpop.f32.mrf.mxu0  ;;  %v2782_v6 = vunpack.c.l.b16 %v2494_v52  ;;  %v2525_v35 = vshll.u32 %v5895_v13, 16  ;;  %v1538_v47 = vrot.slane %v1408_v27, 5  ;;  %v5896_v52 = vld [vmem:[%s6700_s8 + $0x6c] sm:$0xf]  ;;  %v1536_v54 = vsel %vm6851_vm5, %v5671_v34, %v1535_v23  ;;  %v6510_v27 = vld [vmem:[%s8062_s1 + $0x158] sm:$0xff] }
  0xb4   : > { %v1158_v25 = vpack.c.b16 %v1133_v0, %v1132_v63  ;;  %v1683_v26 = vpack.c.b16 %v1658_v2, %v1657_v1  ;;  %v880_v63 = vshrl.u32 %v660_v49, 16  ;;  %v883_v0 = vshll.u32 %v660_v49, 16  ;;  %v662_v34 = vld [vmem:[%s6700_s8 + $0x68] sm:$0x1]  ;;  %3408 = vmatpush.bf16.msra.mxu1 %v6510_v27 }
  0xb5   : > { %v2527_v55 = vrot.slane %v2525_v35, 5  ;;  %v1539_v2 = vsel %vm6851_vm5, %v1537_v46, %v1538_v47  ;;  %v2533_v10 = vshll.u32 %v5896_v52, 16  ;;  %v899_v57 = vshll.u32 %v662_v34, 16 }
  0xb7   : > { %v7062_v3 = vpop.f32.mrf.mxu2 }
  0xb8   : > { %v7064_v7 = vpop.f32.mrf.mxu3 }
  0xb9   : > { %v7068_v15 = vpop.f32.mrf.mxu1 }
  0xbb   : > { %v7073_v21 = vpop.f32.mrf.mxu0 }
  0xbc   : > { %1265 = vmatmul.bf16.gmra.mxu1 %v1157_v4  ;;  %1790 = vmatmul.bf16.gmra.mxu2 %v1682_v8  ;;  %v659_v4 = vld [vmem:[%s6700_s8 + $0x5c] sm:$0x1]  ;;  %v2783_v8 = vunpack.c.l.b16 %v2504_v53  ;;  %v868_v53 = vsel %vm6844_vm4, %v863_v32, %v7101_v61  ;;  %v1660_v32 = vunpack.c.l.b16 %v1539_v2 }
  0xbd   : > { %2169 = vmatmul.bf16.gmra.mxu3 %v6480_v16  ;;  %v2511_v16 = vrot.slane %v2509_v58, 5  ;;  %v875_v22 = vshll.u32 %v659_v4, 16  ;;  %v5897_v58 = vld [vmem:[%s6700_s8 + $0x70] sm:$0xf]  ;;  %v889_v4 = vshll.u32 %v661_v50, 16 }
  0xbe   : > { %2915 = vmatmul.bf16.gmra.mxu0 %v2807_v17  ;;  %v7107_v17 = vrot.slane %v2515_v59, 5  ;;  %v2808_v31 = vpack.c.b16 %v2783_v8, %v2782_v6  ;;  %v6542_v59 = vld [vmem:[%s8062_s1 + $0x1d8] sm:$0xff]  ;;  %v2530_v8 = vshrl.u32 %v5896_v52, 16  ;;  %v2539_v11 = vshll.u32 %v5897_v58, 16  ;;  %v5898_v50 = vld [vmem:[%s6700_s8 + $0x74] sm:$0x1] }
  0xbf   : > { %v7077_v39 = vpop.f32.mrf.mxu2  ;;  %v2512_v40 = vor.u32 %v2511_v16, %v2508_v14  ;;  %v877_v44 = vrot.slane %v875_v22, 5  ;;  %4533 = vmatpush.bf16.msra.mxu3 %v6542_v59  ;;  %v2543_v13 = vshrl.u32 %v5897_v58, 16  ;;  %v1134_v16 = vunpack.c.l.b16 %v868_v53 }
  0xc0   : > { %v7081_v45 = vpop.f32.mrf.mxu3  ;;  %v2522_v41 = vor.u32 %v2521_v18, %v7107_v17  ;;  %v1659_v18 = vunpack.c.l.b16 %v1536_v54  ;;  %v7160_v35 = vrot.slane %v889_v4, 5  ;;  %v6482_v4 = vld [vmem:[%s6700_s8 + $0x60] sm:$0xff] }
  0xc1   : > { %v7092_v51 = vpop.f32.mrf.mxu1  ;;  %v2513_v60 = vrot.slane %v2512_v40, 4  ;;  %v878_v61 = vsel %vm6844_vm4, %v873_v42, %v877_v44  ;;  %v1410_v40 = vld [vmem:[%s6700_s8 + $0x64] sm:$0xf]  ;;  %v2535_v42 = vrot.slane %v2533_v10, 5  ;;  %v7163_v44 = vrot.slane %v2539_v11, 5 }
  0xc2   : > { %v2523_v62 = vrot.slane %v2522_v41, 4  ;;  %v2532_v41 = vrot.slane %v2530_v8, 4  ;;  %v2545_v46 = vrot.slane %v2543_v13, 4  ;;  %v1542_v58 = vrot.slane %v1410_v40, 5  ;;  %v1411_v8 = vld [vmem:[%s6700_s8 + $0x68] sm:$0x1] }
  0xc3   : > { %v7099_v56 = vpop.f32.mrf.mxu0  ;;  %v2518_v22 = vsel %vm6844_vm4, %v2513_v60, %v7107_v17  ;;  %v895_v17 = vrot.slane %v893_v5, 4  ;;  %v1684_v60 = vpack.c.b16 %v1660_v32, %v1659_v18  ;;  %v663_v13 = vld [vmem:[%s6700_s8 + $0x6c] sm:$0xf]  ;;  %v1545_v18 = vrot.slane %v1411_v8, 5 }
  0xc4   : > { %v2528_v23 = vsel %vm6844_vm4, %v2523_v62, %v2527_v55  ;;  %v2784_v47 = vunpack.c.l.b16 %v2518_v22  ;;  %v1409_v62 = vld [vmem:[%s6700_s8 + $0x60] sm:$0xe]  ;;  %v904_v32 = vshrl.u32 %v663_v13, 16  ;;  %v907_v34 = vshll.u32 %v663_v13, 16 }
  0xc5   : > { %v2785_v49 = vunpack.c.l.b16 %v2528_v23  ;;  %v896_v55 = vor.u32 %v895_v17, %v7160_v35  ;;  %v901_v23 = vrot.slane %v899_v57, 5 }
  0xc7   : > { %v7109_v19 = vpop.f32.mrf.mxu2  ;;  %v2809_v5 = vpack.c.b16 %v2785_v49, %v2784_v47  ;;  %v897_v22 = vrot.slane %v896_v55, 4  ;;  %v5899_v47 = vld [vmem:[%s6700_s8 + $0x78] sm:$0xf]  ;;  %v5900_v49 = vld [vmem:[%s6700_s8 + $0x7c] sm:$0xf] }
  0xc8   : > { %v7112_v24 = vpop.f32.mrf.mxu3  ;;  %v2563_v8 = vshll.u32 %v5900_v49, 16 }
  0xc9   : > { %8069 = vst [vmem:[#allocation3_spill] sm:$0xff] %v7112_v24  ;;  %v7115_v28 = vpop.f32.mrf.mxu1 }
  0xcb   : > { %v7118_v37 = vpop.f32.mrf.mxu0 }
  0xcc   : > { %1270 = vmatmul.bf16.gmra.mxu1 %v1158_v25  ;;  %1795 = vmatmul.bf16.gmra.mxu2 %v1683_v26  ;;  %v882_v25 = vrot.slane %v880_v63, 4  ;;  %v885_v26 = vrot.slane %v883_v0, 5  ;;  %v2536_v63 = vor.u32 %v2535_v42, %v2532_v41  ;;  %v2546_v0 = vor.u32 %v2545_v46, %v7163_v44 }
  0xcd   : > { %2174 = vmatmul.bf16.gmra.mxu3 %v6481_v29  ;;  %v6550_v29 = vld [vmem:[%s8062_s1 + $0x218] sm:$0xff] }
  0xce   : > { %2920 = vmatmul.bf16.gmra.mxu0 %v2808_v31  ;;  %v1135_v31 = vunpack.c.l.b16 %v878_v61  ;;  %v886_v52 = vor.u32 %v885_v26, %v882_v25  ;;  %v2549_v61 = vshll.u32 %v5898_v50, 16  ;;  %v5672_v25 = vrot.slane %v1409_v62, 9 }
  0xcf   : > { %v7136_v1 = vpop.f32.mrf.mxu2  ;;  %5055 = vmatpush.bf16.msra.mxu0 %v6550_v29  ;;  %v1544_v26 = vrot.slane %v1542_v58, 4  ;;  %v2537_v27 = vrot.slane %v2536_v63, 4  ;;  %v2547_v29 = vrot.slane %v2546_v0, 4 }
  0xd0   : > { %v7142_v6 = vpop.f32.mrf.mxu3  ;;  %v1159_v54 = vpack.c.b16 %v1135_v31, %v1134_v16  ;;  %v887_v11 = vrot.slane %v886_v52, 4  ;;  %v664_v16 = vld [vmem:[%s6700_s8 + $0x70] sm:$0xf]  ;;  %v2551_v31 = vrot.slane %v2549_v61, 5  ;;  %v1543_v46 = vsel %vm6851_vm5, %v5672_v25, %v1542_v58  ;;  %v665_v61 = vld [vmem:[%s6700_s8 + $0x74] sm:$0x1] }
  0xd1   : > { %8070 = vst [vmem:[#allocation4_spill] sm:$0xff] %v7142_v6  ;;  %v7144_v14 = vpop.f32.mrf.mxu1  ;;  %v913_v17 = vshll.u32 %v664_v16, 16  ;;  %v917_v40 = vshrl.u32 %v664_v16, 16  ;;  %v902_v52 = vsel %vm6844_vm4, %v897_v22, %v901_v23  ;;  %v2542_v55 = vsel %vm6844_vm4, %v2537_v27, %v7163_v44 }
  0xd2   : > { %v892_v42 = vsel %vm6844_vm4, %v887_v11, %v7160_v35  ;;  %v2552_v35 = vsel %vm6844_vm4, %v2547_v29, %v2551_v31  ;;  %v906_v58 = vrot.slane %v904_v32, 4  ;;  %v2567_v11 = vshrl.u32 %v5900_v49, 16  ;;  %v1413_v29 = vld [vmem:[%s6700_s8 + $0x70] sm:$0xf]  ;;  %v1412_v31 = vld [vmem:[%s6700_s8 + $0x6c] sm:$0xe] }
  0xd3   : > { %v7146_v20 = vpop.f32.mrf.mxu0  ;;  %v7203_v62 = vrot.slane %v913_v17, 5  ;;  %v919_v63 = vrot.slane %v917_v40, 4  ;;  %v1136_v44 = vunpack.c.l.b16 %v892_v42  ;;  %v1661_v13 = vunpack.c.l.b16 %v1543_v46  ;;  %v5901_v46 = vld [vmem:[%s6700_s8 + $0x80] sm:$0x1] }
  0xd4   : > { %v1137_v16 = vunpack.c.l.b16 %v902_v52  ;;  %v2786_v23 = vunpack.c.l.b16 %v2542_v55  ;;  %v2787_v25 = vunpack.c.l.b16 %v2552_v35  ;;  %v923_v27 = vshll.u32 %v665_v61, 16 }
  0xd5   : > { %v7211_v17 = vrot.slane %v2563_v8, 5  ;;  %v2569_v40 = vrot.slane %v2567_v11, 4  ;;  %v1549_v35 = vrot.slane %v1413_v29, 5 }
  0xd6   : > { %v1160_v49 = vpack.c.b16 %v1137_v16, %v1136_v44  ;;  %v2810_v55 = vpack.c.b16 %v2787_v25, %v2786_v23  ;;  %v925_v61 = vrot.slane %v923_v27, 5  ;;  %v666_v16 = vld [vmem:[%s6700_s8 + $0x78] sm:$0xf]  ;;  %v667_v25 = vld [vmem:[%s6700_s8 + $0x7c] sm:$0xf] }
  0xd7   : > { %v7166_v53 = vpop.f32.mrf.mxu2  ;;  %v2570_v44 = vor.u32 %v2569_v40, %v7211_v17  ;;  %v928_v27 = vshrl.u32 %v666_v16, 16  ;;  %v931_v29 = vshll.u32 %v666_v16, 16 }
  0xd8   : > { %v7169_v59 = vpop.f32.mrf.mxu3 }
  0xd9   : > { %8071 = vst [vmem:[#allocation5_spill] sm:$0xff] %v7169_v59  ;;  %v7173_v2 = vpop.f32.mrf.mxu1 }
  0xdb   : > { %v7177_v10 = vpop.f32.mrf.mxu0 }
  0xdc   : > { %1275 = vmatmul.bf16.gmra.mxu1 %v1159_v54  ;;  %1800 = vmatmul.bf16.gmra.mxu2 %v1684_v60  ;;  %v1546_v54 = vsel %vm6851_vm5, %v1544_v26, %v1545_v18  ;;  %v909_v60 = vrot.slane %v907_v34, 5  ;;  %v920_v18 = vor.u32 %v919_v63, %v7203_v62 }
  0xdd   : > { %2179 = vmatmul.bf16.gmra.mxu3 %v6482_v4  ;;  %v2554_v4 = vshrl.u32 %v5899_v47, 16  ;;  %v1662_v22 = vunpack.c.l.b16 %v1546_v54  ;;  %v6483_v54 = vld [vmem:[%s6700_s8 + $0x6c] sm:$0xff] }
  0xde   : > { %2925 = vmatmul.bf16.gmra.mxu0 %v2809_v5  ;;  %v2557_v5 = vshll.u32 %v5899_v47, 16  ;;  %v910_v26 = vor.u32 %v909_v60, %v906_v58  ;;  %v921_v63 = vrot.slane %v920_v18, 4 }
  0xdf   : > { %v7181_v41 = vpop.f32.mrf.mxu2  ;;  %v2556_v32 = vrot.slane %v2554_v4, 4  ;;  %v1685_v52 = vpack.c.b16 %v1662_v22, %v1661_v13  ;;  %v1414_v4 = vld [vmem:[%s6700_s8 + $0x74] sm:$0x1]  ;;  %v2573_v13 = vshll.u32 %v5901_v46, 16  ;;  %v1551_v22 = vrot.slane %v1549_v35, 4 }
  0xe0   : > { %v7190_v50 = vpop.f32.mrf.mxu3  ;;  %v2559_v34 = vrot.slane %v2557_v5, 5  ;;  %v911_v60 = vrot.slane %v910_v26, 4  ;;  %v5673_v5 = vrot.slane %v1412_v31, 9  ;;  %v1552_v23 = vrot.slane %v1414_v4, 5  ;;  %v5902_v26 = vld [vmem:[%s6700_s8 + $0x84] sm:$0xf] }
  0xe1   : > { %8072 = vst [vmem:[#allocation6_spill] sm:$0xff] %v7190_v50  ;;  %v7201_v57 = vpop.f32.mrf.mxu1  ;;  %v6533_v31 = vld [vmem:[%s8062_s1 + $0x190] sm:$0xff]  ;;  %v926_v40 = vsel %vm6844_vm4, %v921_v63, %v925_v61  ;;  %v930_v63 = vrot.slane %v928_v27, 4  ;;  %v933_v61 = vrot.slane %v931_v29, 5 }
  0xe2   : > { %v2560_v50 = vor.u32 %v2559_v34, %v2556_v32  ;;  %v1550_v18 = vsel %vm6851_vm5, %v5673_v5, %v1549_v35  ;;  %v5903_v32 = vld [vmem:[%s6700_s8 + $0x88] sm:$0xf]  ;;  %v6541_v34 = vld [vmem:[%s8062_s1 + $0x1d0] sm:$0xff]  ;;  %3788 = vmatpush.bf16.msra.mxu2 %v6533_v31  ;;  %v2578_v35 = vshrl.u32 %v5902_v26, 16  ;;  %v1139_v6 = vunpack.c.l.b16 %v926_v40 }
  0xe3   : > { %v7205_v0 = vpop.f32.mrf.mxu0  ;;  %4534 = vmatpush.bf16.msra.mxu3 %v6541_v34  ;;  %v2587_v16 = vshll.u32 %v5903_v32, 16 }
  0xe4   : > { %v2561_v46 = vrot.slane %v2560_v50, 4  ;;  %v1553_v50 = vsel %vm6851_vm5, %v1551_v22, %v1552_v23  ;;  %v6549_v22 = vld [vmem:[%s8062_s1 + $0x210] sm:$0xff]  ;;  %v668_v23 = vld [vmem:[%s6700_s8 + $0x80] sm:$0x1] }
  0xe5   : > { %v1664_v31 = vunpack.c.l.b16 %v1553_v50  ;;  %v7259_v34 = vrot.slane %v2587_v16, 5  ;;  %5056 = vmatpush.bf16.msra.mxu0 %v6549_v22 }
  0xe7   : > { %v7213_v42 = vpop.f32.mrf.mxu2 }
  0xe8   : > { %v7216_v47 = vpop.f32.mrf.mxu3 }
  0xe9   : > { %8073 = vst [vmem:[#allocation7_spill] sm:$0xff] %v7216_v47  ;;  %v1241_v58 = vpop.f32.mrf.mxu1  ;;  %v2591_v47 = vshrl.u32 %v5903_v32, 16  ;;  %v1416_v32 = vld [vmem:[%s6700_s8 + $0x7c] sm:$0xf] }
  0xea   : > { %v1321_v8 = vadd.f32 %v1241_v58, %v7015_v12  ;;  %v916_v12 = vsel %vm6844_vm4, %v911_v60, %v7203_v62  ;;  %v2575_v62 = vrot.slane %v2573_v13, 5  ;;  %v2581_v58 = vshll.u32 %v5902_v26, 16 }
  0xeb   : > { %v7221_v11 = vpop.f32.mrf.mxu0  ;;  %v1138_v5 = vunpack.c.l.b16 %v916_v12  ;;  %v6509_v12 = vld [vmem:[%s8062_s1 + $0x150] sm:$0xff]  ;;  %v2593_v40 = vrot.slane %v2591_v47, 4 }
  0xec   : > { %1280 = vmatmul.bf16.gmra.mxu1 %v1160_v49  ;;  %1805 = vmatmul.bf16.gmra.mxu2 %v1685_v52  ;;  %v2571_v49 = vrot.slane %v2570_v44, 4  ;;  %v2583_v29 = vrot.slane %v2581_v58, 5  ;;  %v1415_v58 = vld [vmem:[%s6700_s8 + $0x78] sm:$0xe] }
  0xed   : > { %2184 = vmatmul.bf16.gmra.mxu3 %v6483_v54  ;;  %v937_v54 = vshll.u32 %v667_v25, 16  ;;  %3409 = vmatpush.bf16.msra.mxu1 %v6509_v12  ;;  %v1417_v12 = vld [vmem:[%s6700_s8 + $0x80] sm:$0x1]  ;;  %v2594_v22 = vor.u32 %v2593_v40, %v7259_v34  ;;  %v670_v40 = vld [vmem:[%s6700_s8 + $0x88] sm:$0xf] }
  0xee   : > { %2930 = vmatmul.bf16.gmra.mxu0 %v2810_v55  ;;  %v941_v55 = vshrl.u32 %v667_v25, 16  ;;  %v2576_v26 = vsel %vm6844_vm4, %v2571_v49, %v2575_v62  ;;  %v934_v62 = vor.u32 %v933_v61, %v930_v63  ;;  %v6484_v61 = vld [vmem:[%s6700_s8 + $0x78] sm:$0xff] }
  0xef   : > { %v1766_v52 = vpop.f32.mrf.mxu2  ;;  %v7256_v27 = vrot.slane %v937_v54, 5  ;;  %v2789_v49 = vunpack.c.l.b16 %v2576_v26  ;;  %v947_v54 = vshll.u32 %v668_v23, 16 }
  0xf0   : > { %v1846_v60 = vadd.f32 %v1766_v52, %v1321_v8  ;;  %v2145_v4 = vpop.f32.mrf.mxu3  ;;  %v2566_v8 = vsel %vm6844_vm4, %v2561_v46, %v7211_v17  ;;  %v1663_v17 = vunpack.c.l.b16 %v1550_v18  ;;  %v5904_v52 = vld [vmem:[%s6700_s8 + $0x8c] sm:$0x1]  ;;  %v1556_v18 = vrot.slane %v1416_v32, 5 }
  0xf1   : > { %v1243_v59 = vpop.f32.mrf.mxu1  ;;  %v2788_v46 = vunpack.c.l.b16 %v2566_v8  ;;  %v2597_v8 = vshll.u32 %v5904_v52, 16  ;;  %v935_v23 = vrot.slane %v934_v62, 4  ;;  %v2595_v52 = vrot.slane %v2594_v22, 4 }
  0xf2   : > { %v2225_v44 = vadd.f32 %v2145_v4, %v1846_v60  ;;  %v1322_v13 = vadd.f32 %v1243_v59, %v7050_v48  ;;  %v943_v48 = vrot.slane %v941_v55, 4  ;;  %v2580_v59 = vrot.slane %v2578_v35, 4 }
  0xf3   : > { %v2893_v25 = vpop.f32.mrf.mxu0  ;;  %v1161_v55 = vpack.c.b16 %v1139_v6, %v1138_v5  ;;  %v1686_v47 = vpack.c.b16 %v1664_v31, %v1663_v17  ;;  %v2811_v26 = vpack.c.b16 %v2789_v49, %v2788_v46  ;;  %v1558_v17 = vrot.slane %v1556_v18, 4 }
  0xf4   : > { %v944_v35 = vor.u32 %v943_v48, %v7256_v27  ;;  %v2584_v4 = vor.u32 %v2583_v29, %v2580_v59  ;;  %v949_v48 = vrot.slane %v947_v54, 5  ;;  %v5674_v59 = vrot.slane %v1415_v58, 9  ;;  %v669_v29 = vld [vmem:[%s6700_s8 + $0x84] sm:$0xf] }
  0xf5   : > { %v1559_v31 = vrot.slane %v1417_v12, 5  ;;  %v2599_v46 = vrot.slane %v2597_v8, 5  ;;  %v7273_v49 = vadd.f32 %v7221_v11, %v2225_v44  ;;  %v952_v62 = vshrl.u32 %v669_v29, 16 }
  0xf6   : > { %v2585_v32 = vrot.slane %v2584_v4, 4  ;;  %v955_v54 = vshll.u32 %v669_v29, 16  ;;  %v961_v58 = vshll.u32 %v670_v40, 16  ;;  %v965_v4 = vshrl.u32 %v670_v40, 16  ;;  %v671_v29 = vld [vmem:[%s6700_s8 + $0x8c] sm:$0x1] }
  0xf7   : > { %v1768_v60 = vpop.f32.mrf.mxu2  ;;  %v1560_v11 = vsel %vm6851_vm5, %v1558_v17, %v1559_v31 }
  0xf8   : > { %v1847_v16 = vadd.f32 %v1768_v60, %v1322_v13  ;;  %v2147_v50 = vpop.f32.mrf.mxu3  ;;  %v945_v13 = vrot.slane %v944_v35, 4  ;;  %v5905_v60 = vld [vmem:[%s6700_s8 + $0x90] sm:$0xf]  ;;  %v940_v35 = vsel %vm6844_vm4, %v935_v23, %v7256_v27  ;;  %v2590_v44 = vsel %vm6844_vm4, %v2585_v32, %v7259_v34 }
  0xf9   : > { %v1246_v63 = vpop.f32.mrf.mxu1  ;;  %v2602_v12 = vshrl.u32 %v5905_v60, 16  ;;  %v2605_v22 = vshll.u32 %v5905_v60, 16  ;;  %v967_v34 = vrot.slane %v965_v4, 4  ;;  %v1666_v32 = vunpack.c.l.b16 %v1560_v11  ;;  %v1419_v60 = vld [vmem:[%s6700_s8 + $0x88] sm:$0xf] }
  0xfa   : > { %v2226_v24 = vadd.f32 %v2147_v50, %v1847_v16  ;;  %v1323_v6 = vadd.f32 %v1246_v63, %v7073_v21  ;;  %v950_v50 = vsel %vm6844_vm4, %v945_v13, %v949_v48  ;;  %v954_v63 = vrot.slane %v952_v62, 4  ;;  %v1418_v4 = vld [vmem:[%s6700_s8 + $0x84] sm:$0xe] }
  0xfb   : > { %v7268_v5 = vpop.f32.mrf.mxu0  ;;  %v7295_v13 = vrot.slane %v961_v58, 5  ;;  %v1141_v17 = vunpack.c.l.b16 %v950_v50  ;;  %v2790_v40 = vunpack.c.l.b16 %v2590_v44  ;;  %v2607_v62 = vrot.slane %v2605_v22, 5 }
  0xfc   : > { %1285 = vmatmul.bf16.gmra.mxu1 %v1161_v55  ;;  %1810 = vmatmul.bf16.gmra.mxu2 %v1686_v47  ;;  %v7275_v21 = vadd.f32 %v2893_v25, %v2226_v24  ;;  %v5906_v55 = vld [vmem:[%s6700_s8 + $0x94] sm:$0xf]  ;;  %v1557_v24 = vsel %vm6851_vm5, %v5674_v59, %v1556_v18  ;;  %v2600_v47 = vsel %vm6844_vm4, %v2595_v52, %v2599_v46  ;;  %v2604_v46 = vrot.slane %v2602_v12, 4 }
  0xfd   : > { %2189 = vmatmul.bf16.gmra.mxu3 %v6484_v61  ;;  %v957_v61 = vrot.slane %v955_v54, 5  ;;  %v2615_v18 = vshrl.u32 %v5906_v55, 16  ;;  %v1665_v31 = vunpack.c.l.b16 %v1557_v24  ;;  %v2791_v52 = vunpack.c.l.b16 %v2600_v47  ;;  %v1420_v47 = vld [vmem:[%s6700_s8 + $0x8c] sm:$0x1] }
  0xfe   : > { %2935 = vmatmul.bf16.gmra.mxu0 %v2811_v26  ;;  %v2611_v26 = vshll.u32 %v5906_v55, 16  ;;  %v971_v54 = vshll.u32 %v671_v29, 16  ;;  %v1563_v12 = vrot.slane %v1419_v60, 5  ;;  %v2608_v22 = vor.u32 %v2607_v62, %v2604_v46  ;;  %v673_v62 = vld [vmem:[%s6700_s8 + $0x94] sm:$0xf] }
  0xff   : > { %v1771_v16 = vpop.f32.mrf.mxu2  ;;  %v958_v58 = vor.u32 %v957_v61, %v954_v63  ;;  %v1687_v24 = vpack.c.b16 %v1666_v32, %v1665_v31  ;;  %v5675_v63 = vrot.slane %v1418_v4, 9  ;;  %v1566_v32 = vrot.slane %v1420_v47, 5  ;;  %v6532_v4 = vld [vmem:[%s8062_s1 + $0x188] sm:$0xff] }
 0x100   : > { %v1848_v25 = vadd.f32 %v1771_v16, %v1323_v6  ;;  %v2150_v27 = vpop.f32.mrf.mxu3  ;;  %v1140_v6 = vunpack.c.l.b16 %v940_v35  ;;  %v7298_v55 = vrot.slane %v2611_v26, 5  ;;  %v968_v16 = vor.u32 %v967_v34, %v7295_v13  ;;  %v6485_v26 = vld [vmem:[%s6700_s8 + $0x84] sm:$0xff]  ;;  %3789 = vmatpush.bf16.msra.mxu2 %v6532_v4 }
 0x101   : > { %v1248_v8 = vpop.f32.mrf.mxu1  ;;  %v973_v29 = vrot.slane %v971_v54, 5  ;;  %v2609_v46 = vrot.slane %v2608_v22, 4  ;;  %v5908_v54 = vld [vmem:[%s6700_s8 + $0x9c] sm:$0xf] }
 0x102   : > { %v2227_v23 = vadd.f32 %v2150_v27, %v1848_v25  ;;  %v1324_v48 = vadd.f32 %v1248_v8, %v7099_v56  ;;  %v2617_v56 = vrot.slane %v2615_v18, 4  ;;  %v5907_v25 = vld [vmem:[%s6700_s8 + $0x98] sm:$0x1]  ;;  %v1162_v50 = vpack.c.b16 %v1141_v17, %v1140_v6 }
 0x103   : > { %v2898_v59 = vpop.f32.mrf.mxu0  ;;  %v2812_v27 = vpack.c.b16 %v2791_v52, %v2790_v40  ;;  %v2621_v18 = vshll.u32 %v5907_v25, 16  ;;  %v969_v31 = vrot.slane %v968_v16, 4  ;;  %v672_v40 = vld [vmem:[%s6700_s8 + $0x90] sm:$0xf]  ;;  %v1565_v52 = vrot.slane %v1563_v12, 4 }
 0x104   : > { %v2618_v61 = vor.u32 %v2617_v56, %v7298_v55  ;;  %v7313_v60 = vadd.f32 %v7268_v5, %v2227_v23  ;;  %v5909_v25 = vld [vmem:[%s6700_s8 + $0xa0] sm:$0xf]  ;;  %v2629_v47 = vshll.u32 %v5908_v54, 16 }
 0x105   : > { %v2623_v16 = vrot.slane %v2621_v18, 5  ;;  %v974_v23 = vsel %vm6844_vm4, %v969_v31, %v973_v29  ;;  %v2614_v18 = vsel %vm6844_vm4, %v2609_v46, %v7298_v55  ;;  %v6548_v55 = vld [vmem:[%s8062_s1 + $0x208] sm:$0xff] }
 0x106   : > { %v1143_v29 = vunpack.c.l.b16 %v974_v23  ;;  %5057 = vmatpush.bf16.msra.mxu0 %v6548_v55  ;;  %v2792_v23 = vunpack.c.l.b16 %v2614_v18 }
 0x107   : > { %v1773_v35 = vpop.f32.mrf.mxu2 }
 0x108   : > { %v1849_v11 = vadd.f32 %v1773_v35, %v1324_v48  ;;  %v2152_v44 = vpop.f32.mrf.mxu3  ;;  %v959_v48 = vrot.slane %v958_v58, 4  ;;  %v2619_v58 = vrot.slane %v2618_v61, 4  ;;  %v6540_v35 = vld [vmem:[%s8062_s1 + $0x1c8] sm:$0xff] }
 0x109   : > { %v1251_v8 = vpop.f32.mrf.mxu1  ;;  %4535 = vmatpush.bf16.msra.mxu3 %v6540_v35 }
 0x10a   : > { %v2228_v34 = vadd.f32 %v2152_v44, %v1849_v11  ;;  %v1325_v6 = vadd.f32 %v1251_v8, %v7118_v37  ;;  %v1564_v37 = vsel %vm6851_vm5, %v5675_v63, %v1563_v12  ;;  %v964_v5 = vsel %vm6844_vm4, %v959_v48, %v7295_v13 }
 0x10b   : > { %v7307_v17 = vpop.f32.mrf.mxu0  ;;  %v985_v11 = vshll.u32 %v673_v62, 16  ;;  %v989_v44 = vshrl.u32 %v673_v62, 16  ;;  %v1567_v8 = vsel %vm6851_vm5, %v1565_v52, %v1566_v32  ;;  %v2639_v13 = vshrl.u32 %v5909_v25, 16  ;;  %v6508_v52 = vld [vmem:[%s8062_s1 + $0x148] sm:$0xff] }
 0x10c   : > { %1290 = vmatmul.bf16.gmra.mxu1 %v1162_v50  ;;  %1815 = vmatmul.bf16.gmra.mxu2 %v1687_v24  ;;  %v7315_v56 = vadd.f32 %v2898_v59, %v2228_v34  ;;  %v976_v59 = vshrl.u32 %v672_v40, 16  ;;  %v979_v50 = vshll.u32 %v672_v40, 16  ;;  %v1142_v61 = vunpack.c.l.b16 %v964_v5  ;;  %v674_v40 = vld [vmem:[%s6700_s8 + $0x98] sm:$0x1] }
 0x10d   : > { %2194 = vmatmul.bf16.gmra.mxu3 %v6485_v26  ;;  %v2635_v26 = vshll.u32 %v5909_v25, 16  ;;  %v2624_v34 = vsel %vm6844_vm4, %v2619_v58, %v2623_v16  ;;  %v7346_v46 = vrot.slane %v985_v11, 5  ;;  %v2631_v16 = vrot.slane %v2629_v47, 5  ;;  %v1422_v25 = vld [vmem:[%s6700_s8 + $0x94] sm:$0xf]  ;;  %3410 = vmatpush.bf16.msra.mxu1 %v6508_v52 }
 0x10e   : > { %8074 = vst [vmem:[#allocation8_spill] sm:$0xff] %v7315_v56  ;;  %2940 = vmatmul.bf16.gmra.mxu0 %v2812_v27  ;;  %v2626_v27 = vshrl.u32 %v5908_v54, 16  ;;  %v978_v62 = vrot.slane %v976_v59, 4  ;;  %v981_v32 = vrot.slane %v979_v50, 5  ;;  %v991_v54 = vrot.slane %v989_v44, 4 }
 0x10f   : > { %v1776_v24 = vpop.f32.mrf.mxu2  ;;  %v1668_v4 = vunpack.c.l.b16 %v1567_v8  ;;  %v7349_v35 = vrot.slane %v2635_v26, 5  ;;  %v2641_v5 = vrot.slane %v2639_v13, 4  ;;  %v2793_v59 = vunpack.c.l.b16 %v2624_v34  ;;  %v1421_v47 = vld [vmem:[%s6700_s8 + $0x90] sm:$0xe] }
 0x110   : > { %v1850_v12 = vadd.f32 %v1776_v24, %v1325_v6  ;;  %v2155_v22 = vpop.f32.mrf.mxu3  ;;  %v2628_v58 = vrot.slane %v2626_v27, 4  ;;  %v995_v50 = vshll.u32 %v674_v40, 16  ;;  %v5910_v24 = vld [vmem:[%s6700_s8 + $0xa4] sm:$0x1]  ;;  %v1163_v11 = vpack.c.b16 %v1143_v29, %v1142_v61  ;;  %v6486_v40 = vld [vmem:[%s6700_s8 + $0x90] sm:$0xff] }
 0x111   : > { %v1253_v63 = vpop.f32.mrf.mxu1  ;;  %v982_v44 = vor.u32 %v981_v32, %v978_v62  ;;  %v992_v27 = vor.u32 %v991_v54, %v7346_v46  ;;  %v2642_v52 = vor.u32 %v2641_v5, %v7349_v35  ;;  %v2645_v18 = vshll.u32 %v5910_v24, 16 }
 0x112   : > { %v2229_v48 = vadd.f32 %v2155_v22, %v1850_v12  ;;  %v1326_v6 = vadd.f32 %v1253_v63, %v7146_v20  ;;  %v1667_v20 = vunpack.c.l.b16 %v1564_v37  ;;  %v1423_v37 = vld [vmem:[%s6700_s8 + $0x98] sm:$0x1]  ;;  %v1570_v22 = vrot.slane %v1422_v25, 5  ;;  %v675_v25 = vld [vmem:[%s6700_s8 + $0x9c] sm:$0xf] }
 0x113   : > { %v2903_v31 = vpop.f32.mrf.mxu0  ;;  %v2632_v8 = vor.u32 %v2631_v16, %v2628_v58  ;;  %v2813_v55 = vpack.c.b16 %v2793_v59, %v2792_v23  ;;  %v997_v56 = vrot.slane %v995_v50, 5  ;;  %v5676_v32 = vrot.slane %v1421_v47, 9  ;;  %v676_v59 = vld [vmem:[%s6700_s8 + $0xa0] sm:$0xf]  ;;  %v5912_v47 = vld [vmem:[%s6700_s8 + $0xac] sm:$0xf] }
 0x114   : > { %v1688_v13 = vpack.c.b16 %v1668_v4, %v1667_v20  ;;  %v1573_v54 = vrot.slane %v1423_v37, 5  ;;  %v983_v58 = vrot.slane %v982_v44, 4  ;;  %v1572_v16 = vrot.slane %v1570_v22, 4  ;;  %v5911_v44 = vld [vmem:[%s6700_s8 + $0xa8] sm:$0xf] }
 0x115   : > { %v2633_v20 = vrot.slane %v2632_v8, 4  ;;  %v2643_v4 = vrot.slane %v2642_v52, 4  ;;  %v2647_v5 = vrot.slane %v2645_v18, 5  ;;  %v7362_v23 = vadd.f32 %v7307_v17, %v2229_v48 }
 0x116   : > { %v1000_v50 = vshrl.u32 %v675_v25, 16  ;;  %v1003_v24 = vshll.u32 %v675_v25, 16  ;;  %v1574_v48 = vsel %vm6851_vm5, %v1572_v16, %v1573_v54  ;;  %v2653_v18 = vshll.u32 %v5911_v44, 16 }
 0x117   : > { %v1778_v12 = vpop.f32.mrf.mxu2  ;;  %v1670_v25 = vunpack.c.l.b16 %v1574_v48 }
 0x118   : > { %v1851_v26 = vadd.f32 %v1778_v12, %v1326_v6  ;;  %v2157_v63 = vpop.f32.mrf.mxu3  ;;  %v993_v6 = vrot.slane %v992_v27, 4  ;;  %v1571_v12 = vsel %vm6851_vm5, %v5676_v32, %v1570_v22  ;;  %v2648_v22 = vsel %vm6844_vm4, %v2643_v4, %v2647_v5  ;;  %v677_v4 = vld [vmem:[%s6700_s8 + $0xa4] sm:$0x1] }
 0x119   : > { %v1256_v34 = vpop.f32.mrf.mxu1  ;;  %v1005_v52 = vrot.slane %v1003_v24, 5  ;;  %v1669_v54 = vunpack.c.l.b16 %v1571_v12 }
 0x11a   : > { %v2230_v61 = vadd.f32 %v2157_v63, %v1851_v26  ;;  %v1327_v29 = vadd.f32 %v1256_v34, %v7177_v10  ;;  %v998_v17 = vsel %vm6844_vm4, %v993_v6, %v997_v56  ;;  %v1009_v26 = vshll.u32 %v676_v59, 16 }
 0x11b   : > { %v7358_v62 = vpop.f32.mrf.mxu0  ;;  %v1013_v63 = vshrl.u32 %v676_v59, 16  ;;  %v2650_v56 = vshrl.u32 %v5911_v44, 16  ;;  %v1145_v32 = vunpack.c.l.b16 %v998_v17  ;;  %v1425_v59 = vld [vmem:[%s6700_s8 + $0xa0] sm:$0xf]  ;;  %v5913_v17 = vld [vmem:[%s6700_s8 + $0xb0] sm:$0x1] }
 0x11c   : > { %1295 = vmatmul.bf16.gmra.mxu1 %v1163_v11  ;;  %1820 = vmatmul.bf16.gmra.mxu2 %v1688_v13  ;;  %v7364_v10 = vadd.f32 %v2903_v31, %v2230_v61  ;;  %v988_v11 = vsel %vm6844_vm4, %v983_v58, %v7346_v46  ;;  %v2638_v31 = vsel %vm6844_vm4, %v2633_v20, %v7349_v35  ;;  %v1002_v46 = vrot.slane %v1000_v50, 4  ;;  %v1424_v50 = vld [vmem:[%s6700_s8 + $0x9c] sm:$0xe] }
 0x11d   : > { %2199 = vmatmul.bf16.gmra.mxu3 %v6486_v40  ;;  %v2663_v61 = vshrl.u32 %v5912_v47, 16  ;;  %v7384_v58 = vrot.slane %v1009_v26, 5  ;;  %v1015_v6 = vrot.slane %v1013_v63, 4  ;;  %v2794_v16 = vunpack.c.l.b16 %v2638_v31  ;;  %v6487_v26 = vld [vmem:[%s6700_s8 + $0x9c] sm:$0xff] }
 0x11e   : > { %2945 = vmatmul.bf16.gmra.mxu0 %v2813_v55  ;;  %v2659_v55 = vshll.u32 %v5912_v47, 16  ;;  %v2795_v20 = vunpack.c.l.b16 %v2648_v22  ;;  %v1006_v5 = vor.u32 %v1005_v52, %v1002_v46  ;;  %v2652_v24 = vrot.slane %v2650_v56, 4 }
 0x11f   : > { %v1781_v27 = vpop.f32.mrf.mxu2  ;;  %v1016_v31 = vor.u32 %v1015_v6, %v7384_v58  ;;  %v5677_v46 = vrot.slane %v1424_v50, 9  ;;  %v1577_v52 = vrot.slane %v1425_v59, 5  ;;  %v679_v6 = vld [vmem:[%s6700_s8 + $0xac] sm:$0xf] }
 0x120   : > { %v1852_v37 = vadd.f32 %v1781_v27, %v1327_v29  ;;  %v2160_v8 = vpop.f32.mrf.mxu3  ;;  %v1144_v29 = vunpack.c.l.b16 %v988_v11  ;;  %v7389_v44 = vrot.slane %v2659_v55, 5  ;;  %v2665_v27 = vrot.slane %v2663_v61, 4  ;;  %v1426_v55 = vld [vmem:[%s6700_s8 + $0xa4] sm:$0x1] }
 0x121   : > { %v1258_v13 = vpop.f32.mrf.mxu1  ;;  %v2814_v63 = vpack.c.b16 %v2795_v20, %v2794_v16  ;;  %v1579_v59 = vrot.slane %v1577_v52, 4  ;;  %v1580_v50 = vrot.slane %v1426_v55, 5 }
 0x122   : > { %v2231_v34 = vadd.f32 %v2160_v8, %v1852_v37  ;;  %v1328_v40 = vadd.f32 %v1258_v13, %v7205_v0  ;;  %v2655_v0 = vrot.slane %v2653_v18, 5  ;;  %v1164_v12 = vpack.c.b16 %v1145_v32, %v1144_v29 }
 0x123   : > { %v2908_v35 = vpop.f32.mrf.mxu0  ;;  %v1689_v37 = vpack.c.b16 %v1670_v25, %v1669_v54  ;;  %v1019_v8 = vshll.u32 %v677_v4, 16  ;;  %v1007_v13 = vrot.slane %v1006_v5, 4  ;;  %v2669_v29 = vshll.u32 %v5913_v17, 16  ;;  %v678_v25 = vld [vmem:[%s6700_s8 + $0xa8] sm:$0xf] }
 0x124   : > { %v2656_v61 = vor.u32 %v2655_v0, %v2652_v24  ;;  %v1017_v32 = vrot.slane %v1016_v31, 4  ;;  %v7401_v16 = vadd.f32 %v7358_v62, %v2231_v34  ;;  %v7410_v5 = vsel %vm6851_vm5, %v5677_v46, %v1577_v52  ;;  %v6531_v24 = vld [vmem:[%s8062_s1 + $0x180] sm:$0xff]  ;;  %v5914_v62 = vld [vmem:[%s6700_s8 + $0xb4] sm:$0xf] }
 0x125   : > { %v1021_v54 = vrot.slane %v1019_v8, 5  ;;  %v1012_v4 = vsel %vm6844_vm4, %v1007_v13, %v7384_v58  ;;  %v6539_v34 = vld [vmem:[%s8062_s1 + $0x1c0] sm:$0xff]  ;;  %v2671_v58 = vrot.slane %v2669_v29, 5  ;;  %v1024_v17 = vshrl.u32 %v678_v25, 16  ;;  %3790 = vmatpush.bf16.msra.mxu2 %v6531_v24 }
 0x126   : > { %v2657_v0 = vrot.slane %v2656_v61, 4  ;;  %4536 = vmatpush.bf16.msra.mxu3 %v6539_v34  ;;  %v2677_v13 = vshll.u32 %v5914_v62, 16  ;;  %v1671_v46 = vunpack.c.l.b16 %v7410_v5 }
 0x127   : > { %v1783_v11 = vpop.f32.mrf.mxu2  ;;  %v1026_v5 = vrot.slane %v1024_v17, 4 }
 0x128   : > { %v1853_v48 = vadd.f32 %v1783_v11, %v1328_v40  ;;  %v2162_v47 = vpop.f32.mrf.mxu3  ;;  %v2666_v40 = vor.u32 %v2665_v27, %v7389_v44  ;;  %v5915_v11 = vld [vmem:[%s6700_s8 + $0xb8] sm:$0xf]  ;;  %v2662_v29 = vsel %vm6844_vm4, %v2657_v0, %v7389_v44 }
 0x129   : > { %v1261_v22 = vpop.f32.mrf.mxu1  ;;  %v2683_v52 = vshll.u32 %v5915_v11, 16  ;;  %v2796_v0 = vunpack.c.l.b16 %v2662_v29 }
 0x12a   : > { %v2232_v56 = vadd.f32 %v2162_v47, %v1853_v48  ;;  %v2667_v27 = vrot.slane %v2666_v40, 4  ;;  %v1027_v48 = vshll.u32 %v678_v25, 16  ;;  %v1033_v47 = vshll.u32 %v679_v6, 16  ;;  %v6547_v25 = vld [vmem:[%s8062_s1 + $0x200] sm:$0xff] }
 0x12b   : > { %v7394_v18 = vpop.f32.mrf.mxu0  ;;  %v1146_v40 = vunpack.c.l.b16 %v1012_v4  ;;  %5058 = vmatpush.bf16.msra.mxu0 %v6547_v25  ;;  %v6488_v25 = vld [vmem:[%s6700_s8 + $0xa8] sm:$0xff] }
 0x12c   : > { %1300 = vmatmul.bf16.gmra.mxu1 %v1164_v12  ;;  %1825 = vmatmul.bf16.gmra.mxu2 %v1689_v37  ;;  %v7403_v20 = vadd.f32 %v2908_v35, %v2232_v56  ;;  %v1329_v35 = vadd.f32 %v1261_v22, %v7012_v9  ;;  %v1037_v37 = vshrl.u32 %v679_v6, 16  ;;  %v1581_v22 = vsel %vm6851_vm5, %v1579_v59, %v1580_v50  ;;  %v680_v6 = vld [vmem:[%s6700_s8 + $0xb0] sm:$0x1] }
 0x12d   : > { %2204 = vmatmul.bf16.gmra.mxu3 %v6487_v26  ;;  %v1022_v26 = vsel %vm6844_vm4, %v1017_v32, %v1021_v54  ;;  %v2687_v56 = vshrl.u32 %v5915_v11, 16  ;;  %v2672_v32 = vsel %vm6844_vm4, %v2667_v27, %v2671_v58  ;;  %v6507_v54 = vld [vmem:[%s8062_s1 + $0x140] sm:$0xff]  ;;  %v1029_v59 = vrot.slane %v1027_v48, 5  ;;  %v5916_v48 = vld [vmem:[%s6700_s8 + $0xbc] sm:$0x1] }
 0x12e   : > { %8075 = vst [vmem:[#allocation9_spill] sm:$0xff] %v7403_v20  ;;  %2950 = vmatmul.bf16.gmra.mxu0 %v2814_v63  ;;  %v2674_v63 = vshrl.u32 %v5914_v62, 16  ;;  %v7438_v4 = vrot.slane %v1033_v47, 5  ;;  %v1039_v50 = vrot.slane %v1037_v37, 4  ;;  %v1147_v24 = vunpack.c.l.b16 %v1022_v26  ;;  %v1428_v62 = vld [vmem:[%s6700_s8 + $0xac] sm:$0xf]  ;;  %3411 = vmatpush.bf16.msra.mxu1 %v6507_v54 }
 0x12f   : > { %v1786_v12 = vpop.f32.mrf.mxu2  ;;  %v1672_v44 = vunpack.c.l.b16 %v1581_v22  ;;  %v2797_v27 = vunpack.c.l.b16 %v2672_v32  ;;  %v7441_v58 = vrot.slane %v2683_v52, 5  ;;  %v2689_v11 = vrot.slane %v2687_v56, 4  ;;  %v1429_v54 = vld [vmem:[%s6700_s8 + $0xb0] sm:$0x1] }
 0x130   : > { %v1854_v31 = vadd.f32 %v1786_v12, %v1329_v35  ;;  %v2165_v8 = vpop.f32.mrf.mxu3  ;;  %v2676_v34 = vrot.slane %v2674_v63, 4  ;;  %v2679_v35 = vrot.slane %v2677_v13, 5  ;;  %v1043_v17 = vshll.u32 %v680_v6, 16 }
 0x131   : > { %v1263_v9 = vpop.f32.mrf.mxu1  ;;  %v1030_v37 = vor.u32 %v1029_v59, %v1026_v5  ;;  %v1584_v26 = vrot.slane %v1428_v62, 5  ;;  %v1165_v22 = vpack.c.b16 %v1147_v24, %v1146_v40  ;;  %v1690_v29 = vpack.c.b16 %v1672_v44, %v1671_v46 }
 0x132   : > { %v2233_v55 = vadd.f32 %v2165_v8, %v1854_v31  ;;  %v1330_v12 = vadd.f32 %v1263_v9, %v7048_v43  ;;  %v1040_v31 = vor.u32 %v1039_v50, %v7438_v4  ;;  %v1427_v8 = vld [vmem:[%s6700_s8 + $0xa8] sm:$0xe]  ;;  %v2680_v32 = vor.u32 %v2679_v35, %v2676_v34 }
 0x133   : > { %v2913_v61 = vpop.f32.mrf.mxu0  ;;  %v2815_v56 = vpack.c.b16 %v2797_v27, %v2796_v0  ;;  %v2690_v20 = vor.u32 %v2689_v11, %v7441_v58  ;;  %v2693_v43 = vshll.u32 %v5916_v48, 16  ;;  %v1045_v5 = vrot.slane %v1043_v17, 5  ;;  %v681_v0 = vld [vmem:[%s6700_s8 + $0xb4] sm:$0xf]  ;;  %v682_v11 = vld [vmem:[%s6700_s8 + $0xb8] sm:$0xf] }
 0x134   : > { %v5678_v59 = vrot.slane %v1427_v8, 9  ;;  %v1031_v50 = vrot.slane %v1030_v37, 4  ;;  %v1041_v62 = vrot.slane %v1040_v31, 4  ;;  %v1587_v40 = vrot.slane %v1429_v54, 5  ;;  %v5917_v17 = vld [vmem:[%s6700_s8 + $0xc0] sm:$0xf] }
 0x135   : > { %v2681_v46 = vrot.slane %v2680_v32, 4  ;;  %v7451_v24 = vadd.f32 %v7394_v18, %v2233_v55  ;;  %v2691_v34 = vrot.slane %v2690_v20, 4  ;;  %v2695_v35 = vrot.slane %v2693_v43, 5 }
 0x136   : > { %v1046_v18 = vsel %vm6844_vm4, %v1041_v62, %v1045_v5  ;;  %v1585_v55 = vsel %vm6851_vm5, %v5678_v59, %v1584_v26  ;;  %v1048_v8 = vshrl.u32 %v681_v0, 16  ;;  %v683_v62 = vld [vmem:[%s6700_s8 + $0xbc] sm:$0x1] }
 0x137   : > { %v1788_v47 = vpop.f32.mrf.mxu2 }
 0x138   : > { %v1855_v63 = vadd.f32 %v1788_v47, %v1330_v12  ;;  %v2167_v13 = vpop.f32.mrf.mxu3  ;;  %v1586_v12 = vrot.slane %v1584_v26, 4  ;;  %v1036_v47 = vsel %vm6844_vm4, %v1031_v50, %v7438_v4  ;;  %v2696_v4 = vsel %vm6844_vm4, %v2691_v34, %v2695_v35  ;;  %v1431_v35 = vld [vmem:[%s6700_s8 + $0xb8] sm:$0xf] }
 0x139   : > { %v1266_v52 = vpop.f32.mrf.mxu1  ;;  %v2698_v26 = vshrl.u32 %v5917_v17, 16  ;;  %v1148_v43 = vunpack.c.l.b16 %v1036_v47  ;;  %v2799_v50 = vunpack.c.l.b16 %v2696_v4 }
 0x13a   : > { %v2234_v9 = vadd.f32 %v2167_v13, %v1855_v63  ;;  %v1331_v27 = vadd.f32 %v1266_v52, %v7068_v15  ;;  %v1588_v20 = vsel %vm6851_vm5, %v1586_v12, %v1587_v40  ;;  %v2686_v15 = vsel %vm6844_vm4, %v2681_v46, %v7441_v58 }
 0x13b   : > { %v2916_v6 = vpop.f32.mrf.mxu0  ;;  %v1051_v63 = vshll.u32 %v681_v0, 16  ;;  %v2701_v52 = vshll.u32 %v5917_v17, 16  ;;  %v1673_v58 = vunpack.c.l.b16 %v1585_v55  ;;  %v1674_v5 = vunpack.c.l.b16 %v1588_v20  ;;  %v1430_v17 = vld [vmem:[%s6700_s8 + $0xb4] sm:$0xe] }
 0x13c   : > { %1305 = vmatmul.bf16.gmra.mxu1 %v1165_v22  ;;  %1830 = vmatmul.bf16.gmra.mxu2 %v1690_v29  ;;  %v7453_v44 = vadd.f32 %v2913_v61, %v2234_v9  ;;  %v5918_v61 = vld [vmem:[%s6700_s8 + $0xc4] sm:$0xf]  ;;  %v1057_v22 = vshll.u32 %v682_v11, 16  ;;  %v1061_v29 = vshrl.u32 %v682_v11, 16  ;;  %v1149_v9 = vunpack.c.l.b16 %v1046_v18 }
 0x13d   : > { %2209 = vmatmul.bf16.gmra.mxu3 %v6488_v25  ;;  %v2707_v25 = vshll.u32 %v5918_v61, 16  ;;  %v2798_v59 = vunpack.c.l.b16 %v2686_v15  ;;  %v1050_v12 = vrot.slane %v1048_v8, 4  ;;  %v1053_v40 = vrot.slane %v1051_v63, 5 }
 0x13e   : > { %2955 = vmatmul.bf16.gmra.mxu0 %v2815_v56  ;;  %v2711_v56 = vshrl.u32 %v5918_v61, 16  ;;  %v7475_v46 = vrot.slane %v1057_v22, 5  ;;  %v1063_v34 = vrot.slane %v1061_v29, 4  ;;  %v2700_v0 = vrot.slane %v2698_v26, 4  ;;  %v5919_v61 = vld [vmem:[%s6700_s8 + $0xc8] sm:$0x1] }
 0x13f   : > { %v1791_v48 = vpop.f32.mrf.mxu2  ;;  %v7482_v47 = vrot.slane %v2707_v25, 5  ;;  %v1166_v20 = vpack.c.b16 %v1149_v9, %v1148_v43  ;;  %v1691_v15 = vpack.c.b16 %v1674_v5, %v1673_v58  ;;  %v2816_v8 = vpack.c.b16 %v2799_v50, %v2798_v59  ;;  %v6224_v5 = vld [vmem:[%s6700_s8 + $0x18] sm:$0xf]  ;;  %v6225_v59 = vld [vmem:[%s6700_s8 + $0x1c] sm:$0xf] }
 0x140   : > { %v1856_v37 = vadd.f32 %v1791_v48, %v1331_v27  ;;  %v2170_v31 = vpop.f32.mrf.mxu3  ;;  %v2703_v48 = vrot.slane %v2701_v52, 5  ;;  %v2713_v18 = vrot.slane %v2711_v56, 4  ;;  %v1067_v63 = vshll.u32 %v683_v62, 16 }
 0x141   : > { %v1268_v13 = vpop.f32.mrf.mxu1  ;;  %v1054_v22 = vor.u32 %v1053_v40, %v1050_v12  ;;  %v5679_v29 = vrot.slane %v1430_v17, 9  ;;  %v1591_v26 = vrot.slane %v1431_v35, 5  ;;  %v2717_v43 = vshll.u32 %v5919_v61, 16 }
 0x142   : > { %v2235_v54 = vadd.f32 %v2170_v31, %v1856_v37  ;;  %v1332_v11 = vadd.f32 %v1268_v13, %v7092_v51  ;;  %v1064_v51 = vor.u32 %v1063_v34, %v7475_v46  ;;  %v1432_v13 = vld [vmem:[%s6700_s8 + $0xbc] sm:$0x1]  ;;  %v2704_v25 = vor.u32 %v2703_v48, %v2700_v0 }
 0x143   : > { %v2918_v32 = vpop.f32.mrf.mxu0  ;;  %v2714_v56 = vor.u32 %v2713_v18, %v7482_v47  ;;  %v1069_v9 = vrot.slane %v1067_v63, 5  ;;  %v1594_v58 = vrot.slane %v1432_v13, 5  ;;  %v1055_v62 = vrot.slane %v1054_v22, 4  ;;  %v5969_v13 = vld [vmem:[%s6700_s8 + $0x10] sm:$0xf] }
 0x144   : > { %v7478_v27 = vadd.f32 %v2916_v6, %v2235_v54  ;;  %v6489_v6 = vld [vmem:[%s6700_s8 + $0xb4] sm:$0xff]  ;;  %v1065_v12 = vrot.slane %v1064_v51, 4  ;;  %v1592_v40 = vsel %vm6851_vm5, %v5679_v29, %v1591_v26  ;;  %v1593_v34 = vrot.slane %v1591_v26, 4 }
 0x145   : > { %v2705_v0 = vrot.slane %v2704_v25, 4  ;;  %v2719_v17 = vrot.slane %v2717_v43, 5  ;;  %v3985_v18 = vshrl.u32 %v6224_v5, 16 }
 0x147   : > { %v1793_v55 = vpop.f32.mrf.mxu2  ;;  %v2710_v22 = vsel %vm6844_vm4, %v2705_v0, %v7482_v47  ;;  %v6321_v47 = vld [vmem:[%s6700_s8 + $0x1c] sm:$0xf] }
 0x148   : > { %v1857_v37 = vadd.f32 %v1793_v55, %v1332_v11  ;;  %v2172_v31 = vpop.f32.mrf.mxu3  ;;  %v2715_v11 = vrot.slane %v2714_v56, 4  ;;  %v3988_v55 = vshll.u32 %v6224_v5, 16  ;;  %v2800_v5 = vunpack.c.l.b16 %v2710_v22 }
 0x149   : > { %v1271_v4 = vpop.f32.mrf.mxu1 }
 0x14a   : > { %v2236_v54 = vadd.f32 %v2172_v31, %v1857_v37  ;;  %v1333_v35 = vadd.f32 %v1271_v4, %v7115_v28  ;;  %v1070_v28 = vsel %vm6844_vm4, %v1065_v12, %v1069_v9  ;;  %v2720_v51 = vsel %vm6844_vm4, %v2715_v11, %v2719_v17  ;;  %v6226_v9 = vld [vmem:[%s6700_s8 + $0x20] sm:$0x1] }
 0x14b   : > { %v2921_v52 = vpop.f32.mrf.mxu0  ;;  %v3990_v29 = vrot.slane %v3988_v55, 5  ;;  %v1151_v56 = vunpack.c.l.b16 %v1070_v28  ;;  %v3133_v12 = vrot.slane %v5969_v13, 5  ;;  %v4004_v11 = vshll.u32 %v6226_v9, 16  ;;  %v5970_v55 = vld [vmem:[%s6700_s8 + $0x14] sm:$0x1] }
 0x14c   : > { %1310 = vmatmul.bf16.gmra.mxu1 %v1166_v20  ;;  %1835 = vmatmul.bf16.gmra.mxu2 %v1691_v15  ;;  %v7491_v50 = vadd.f32 %v2918_v32, %v2236_v54  ;;  %v3994_v20 = vshll.u32 %v6225_v59, 16  ;;  %v3998_v32 = vshrl.u32 %v6225_v59, 16  ;;  %v1060_v15 = vsel %vm6844_vm4, %v1055_v62, %v7475_v46  ;;  %v6228_v9 = vld [vmem:[%s6700_s8 + $0x28] sm:$0xf] }
 0x14d   : > { %2214 = vmatmul.bf16.gmra.mxu3 %v6489_v6  ;;  %v1675_v6 = vunpack.c.l.b16 %v1592_v40  ;;  %v3987_v46 = vrot.slane %v3985_v18, 4  ;;  %v1150_v25 = vunpack.c.l.b16 %v1060_v15  ;;  %v2801_v59 = vunpack.c.l.b16 %v2720_v51  ;;  %v6320_v15 = vld [vmem:[%s6700_s8 + $0x18] sm:$0xe] }
 0x14e   : > { %2960 = vmatmul.bf16.gmra.mxu0 %v2816_v8  ;;  %v1595_v8 = vsel %vm6851_vm5, %v1593_v34, %v1594_v58  ;;  %v7509_v26 = vrot.slane %v3994_v20, 5  ;;  %v4000_v54 = vrot.slane %v3998_v32, 4  ;;  %v5968_v34 = vld [vmem:[%s6700_s8 + $0xc] sm:$0xe]  ;;  %v4780_v20 = vrot.slane %v6321_v47, 5 }
 0x14f   : > { %v1796_v48 = vpop.f32.mrf.mxu2  ;;  %v1676_v43 = vunpack.c.l.b16 %v1595_v8  ;;  %v1167_v18 = vpack.c.b16 %v1151_v56, %v1150_v25  ;;  %v6016_v8 = vrot.slane %v5968_v34, 9  ;;  %v3136_v22 = vrot.slane %v5970_v55, 5 }
 0x150   : > { %v1858_v61 = vadd.f32 %v1796_v48, %v1333_v35  ;;  %v2175_v37 = vpop.f32.mrf.mxu3  ;;  %v3991_v35 = vor.u32 %v3990_v29, %v3987_v46  ;;  %v4001_v0 = vor.u32 %v4000_v54, %v7509_v26  ;;  %v4006_v46 = vrot.slane %v4004_v11, 5 }
 0x151   : > { %v1273_v31 = vpop.f32.mrf.mxu1  ;;  %v4782_v29 = vrot.slane %v4780_v20, 4 }
 0x152   : > { %v2237_v63 = vadd.f32 %v2175_v37, %v1858_v61  ;;  %v1334_v62 = vadd.f32 %v1273_v31, %v7144_v14  ;;  %v6490_v61 = vld [vmem:[%s6700_s8 + $0xc0] sm:$0xff]  ;;  %v2817_v37 = vpack.c.b16 %v2801_v59, %v2800_v5  ;;  %v3992_v51 = vrot.slane %v3991_v35, 4 }
 0x153   : > { %v2923_v4 = vpop.f32.mrf.mxu0  ;;  %v6322_v14 = vld [vmem:[%s6700_s8 + $0x20] sm:$0x1]  ;;  %v4002_v13 = vrot.slane %v4001_v0, 4  ;;  %v3134_v59 = vsel %vm6851_vm5, %v6016_v8, %v3133_v12 }
 0x154   : > { %v7512_v58 = vadd.f32 %v2921_v52, %v2237_v63  ;;  %v1692_v52 = vpack.c.b16 %v1676_v43, %v1675_v6  ;;  %v3135_v63 = vrot.slane %v3133_v12, 4  ;;  %v6368_v6 = vrot.slane %v6320_v15, 9  ;;  %v6227_v43 = vld [vmem:[%s6700_s8 + $0x24] sm:$0xf] }
 0x155   : > { %v4783_v54 = vrot.slane %v6322_v14, 5  ;;  %v4007_v34 = vsel %vm6844_vm4, %v4002_v13, %v4006_v46  ;;  %v4009_v0 = vshrl.u32 %v6227_v43, 16  ;;  %v4012_v11 = vshll.u32 %v6227_v43, 16  ;;  %v5972_v14 = vld [vmem:[%s6700_s8 + $0x1c] sm:$0xf] }
 0x156   : > { %v3137_v47 = vsel %vm6851_vm5, %v3135_v63, %v3136_v22  ;;  %v6229_v13 = vld [vmem:[%s6700_s8 + $0x2c] sm:$0x1] }
 0x157   : > { %v1798_v40 = vpop.f32.mrf.mxu2  ;;  %v4784_v35 = vsel %vm6851_vm5, %v4782_v29, %v4783_v54  ;;  %v3293_v55 = vunpack.c.l.b16 %v3137_v47  ;;  %v4014_v8 = vrot.slane %v4012_v11, 5  ;;  %v5971_v47 = vld [vmem:[%s6700_s8 + $0x18] sm:$0xe] }
 0x158   : > { %v1859_v17 = vadd.f32 %v1798_v40, %v1334_v62  ;;  %v2177_v48 = vpop.f32.mrf.mxu3  ;;  %v3997_v62 = vsel %vm6844_vm4, %v3992_v51, %v7509_v26  ;;  %v6017_v11 = vrot.slane %v5971_v47, 9 }
 0x159   : > { %v1276_v32 = vpop.f32.mrf.mxu1 }
 0x15a   : > { %v2238_v31 = vadd.f32 %v2177_v48, %v1859_v17  ;;  %v1335_v56 = vadd.f32 %v1276_v32, %v7173_v2  ;;  %v4781_v2 = vsel %vm6851_vm5, %v6368_v6, %v4780_v20  ;;  %v4018_v17 = vshll.u32 %v6228_v9, 16  ;;  %v6324_v6 = vld [vmem:[%s6700_s8 + $0x28] sm:$0xf] }
 0x15b   : > { %v2926_v28 = vpop.f32.mrf.mxu0  ;;  %v4022_v48 = vshrl.u32 %v6228_v9, 16  ;;  %v4417_v32 = vunpack.c.l.b16 %v3997_v62  ;;  %v4940_v20 = vunpack.c.l.b16 %v4784_v35  ;;  %v3140_v9 = vrot.slane %v5972_v14, 5 }
 0x15c   : > { %1315 = vmatmul.bf16.gmra.mxu1 %v1167_v18  ;;  %1840 = vmatmul.bf16.gmra.mxu2 %v1692_v52  ;;  %v7522_v25 = vadd.f32 %v2923_v4, %v2238_v31  ;;  %v3292_v52 = vunpack.c.l.b16 %v3134_v59  ;;  %v4011_v31 = vrot.slane %v4009_v0, 4  ;;  %v7543_v63 = vrot.slane %v4018_v17, 5  ;;  %v6325_v0 = vld [vmem:[%s6700_s8 + $0x2c] sm:$0x1] }
 0x15d   : > { %2219 = vmatmul.bf16.gmra.mxu3 %v6490_v61  ;;  %v4418_v61 = vunpack.c.l.b16 %v4007_v34  ;;  %v4024_v22 = vrot.slane %v4022_v48, 4  ;;  %v4787_v35 = vrot.slane %v6324_v6, 5  ;;  %v3142_v17 = vrot.slane %v3140_v9, 4  ;;  %v6230_v48 = vld [vmem:[%s6700_s8 + $0x30] sm:$0xf] }
 0x15e   : > { %2965 = vmatmul.bf16.gmra.mxu0 %v2817_v37  ;;  %v4939_v37 = vunpack.c.l.b16 %v4781_v2  ;;  %v4015_v62 = vor.u32 %v4014_v8, %v4011_v31  ;;  %v5973_v2 = vld [vmem:[%s6700_s8 + $0x20] sm:$0x1]  ;;  %v4790_v8 = vrot.slane %v6325_v0, 5  ;;  %v6232_v0 = vld [vmem:[%s6700_s8 + $0x38] sm:$0x1] }
 0x15f   : > { %v1801_v5 = vpop.f32.mrf.mxu2  ;;  %v4449_v43 = vpack.c.b16 %v4418_v61, %v4417_v32  ;;  %v4789_v31 = vrot.slane %v4787_v35, 4 }
 0x160   : > { %v1860_v40 = vadd.f32 %v1801_v5, %v1335_v56  ;;  %v2180_v4 = vpop.f32.mrf.mxu3  ;;  %v3324_v56 = vpack.c.b16 %v3293_v55, %v3292_v52  ;;  %v4971_v59 = vpack.c.b16 %v4940_v20, %v4939_v37  ;;  %v3143_v55 = vrot.slane %v5973_v2, 5 }
 0x161   : > { %v1278_v12 = vpop.f32.mrf.mxu1  ;;  %v4016_v32 = vrot.slane %v4015_v62, 4  ;;  %v4791_v62 = vsel %vm6851_vm5, %v4789_v31, %v4790_v8  ;;  %v4052_v8 = vshll.u32 %v6232_v0, 16 }
 0x162   : > { %v2239_v18 = vadd.f32 %v2180_v4, %v1860_v40  ;;  %v1336_v51 = vadd.f32 %v1278_v12, %v7201_v57  ;;  %v4025_v57 = vor.u32 %v4024_v22, %v7543_v63  ;;  %v4028_v40 = vshll.u32 %v6229_v13, 16  ;;  %v6323_v12 = vld [vmem:[%s6700_s8 + $0x24] sm:$0xe] }
 0x163   : > { %v2928_v26 = vpop.f32.mrf.mxu0  ;;  %v6369_v14 = vrot.slane %v6323_v12, 9  ;;  %v4036_v13 = vshll.u32 %v6230_v48, 16 }
 0x164   : > { %v7540_v15 = vadd.f32 %v2926_v28, %v2239_v18  ;;  %v6515_v28 = vld [vmem:[%s6700_s8 + $0x18] sm:$0xff]  ;;  %v6231_v18 = vld [vmem:[%s6700_s8 + $0x34] sm:$0xf]  ;;  %v4026_v61 = vrot.slane %v4025_v57, 4  ;;  %v4030_v37 = vrot.slane %v4028_v40, 5 }
 0x165   : > { %v4046_v6 = vshrl.u32 %v6231_v18, 16  ;;  %v4788_v47 = vsel %vm6851_vm5, %v6369_v14, %v4787_v35  ;;  %v4038_v40 = vrot.slane %v4036_v13, 5  ;;  %v6516_v13 = vld [vmem:[%s6700_s8 + $0x24] sm:$0xff] }
 0x166   : > { %v4941_v35 = vunpack.c.l.b16 %v4788_v47 }
 0x167   : > { %v1803_v46 = vpop.f32.mrf.mxu2  ;;  %v4048_v2 = vrot.slane %v4046_v6, 4 }
 0x168   : > { %v1861_v29 = vadd.f32 %v1803_v46, %v1336_v51  ;;  %v2182_v54 = vpop.f32.mrf.mxu3  ;;  %v4033_v51 = vshrl.u32 %v6230_v48, 16  ;;  %v4042_v46 = vshll.u32 %v6231_v18, 16  ;;  %v4942_v18 = vunpack.c.l.b16 %v4791_v62 }
 0x169   : > { %v1281_v5 = vpop.f32.mrf.mxu1 }
 0x16a   : > { %v2240_v4 = vadd.f32 %v2182_v54, %v1861_v29  ;;  %v1337_v20 = vadd.f32 %v1281_v5, %v7032_v30  ;;  %v4021_v30 = vsel %vm6844_vm4, %v4016_v32, %v7543_v63  ;;  %v4035_v57 = vrot.slane %v4033_v51, 4 }
 0x16b   : > { %v2931_v34 = vpop.f32.mrf.mxu0 }
 0x16c   : > { %3412 = vmatmul.bf16.vlgmr.msra.gmra.mxu1 %v3324_v56  ;;  %3791 = vmatmul.bf16.vlgmr.msra.gmra.mxu2 %v6515_v28  ;;  %v7556_v52 = vadd.f32 %v2928_v26, %v2240_v4  ;;  %v3141_v56 = vsel %vm6851_vm5, %v6017_v11, %v3140_v9  ;;  %v3144_v28 = vsel %vm6851_vm5, %v3142_v17, %v3143_v55  ;;  %v5975_v9 = vld [vmem:[%s6700_s8 + $0x28] sm:$0xf]  ;;  %v7573_v4 = vrot.slane %v4042_v46, 5  ;;  %v6327_v55 = vld [vmem:[%s6700_s8 + $0x34] sm:$0xf] }
 0x16d   : > { %4537 = vmatmul.bf16.vlgmr.msra.gmra.mxu3 %v4449_v43  ;;  %v3294_v63 = vunpack.c.l.b16 %v3141_v56  ;;  %v3295_v12 = vunpack.c.l.b16 %v3144_v28  ;;  %v4419_v17 = vunpack.c.l.b16 %v4021_v30  ;;  %v4039_v14 = vor.u32 %v4038_v40, %v4035_v57  ;;  %v5976_v46 = vld [vmem:[%s6700_s8 + $0x2c] sm:$0x1]  ;;  %v6326_v28 = vld [vmem:[%s6700_s8 + $0x30] sm:$0xe] }
 0x16e   : > { %5059 = vmatmul.bf16.vlgmr.msra.gmra.mxu0 %v4971_v59  ;;  %v4031_v59 = vsel %vm6844_vm4, %v4026_v61, %v4030_v37  ;;  %v3147_v61 = vrot.slane %v5975_v9, 5  ;;  %v4049_v31 = vor.u32 %v4048_v2, %v7573_v4  ;;  %v4794_v6 = vrot.slane %v6327_v55, 5 }
 0x16f   : > { %v1806_v22 = vpop.f32.mrf.mxu2  ;;  %v4420_v48 = vunpack.c.l.b16 %v4031_v59  ;;  %v3325_v51 = vpack.c.b16 %v3295_v12, %v3294_v63  ;;  %v4972_v56 = vpack.c.b16 %v4942_v18, %v4941_v35  ;;  %v3150_v47 = vrot.slane %v5976_v46, 5 }
 0x170   : > { %v1862_v29 = vadd.f32 %v1806_v22, %v1337_v20  ;;  %v2185_v26 = vpop.f32.mrf.mxu3  ;;  %v5974_v20 = vld [vmem:[%s6700_s8 + $0x24] sm:$0xe]  ;;  %v3149_v59 = vrot.slane %v3147_v61, 4  ;;  %v4040_v62 = vrot.slane %v4039_v14, 4  ;;  %v4050_v9 = vrot.slane %v4049_v31, 4 }
 0x171   : > { %v1283_v54 = vpop.f32.mrf.mxu1  ;;  %v4054_v57 = vrot.slane %v4052_v8, 5  ;;  %v6370_v40 = vrot.slane %v6326_v28, 9  ;;  %v4796_v2 = vrot.slane %v4794_v6, 4 }
 0x172   : > { %v2241_v43 = vadd.f32 %v2185_v26, %v1862_v29  ;;  %v1338_v32 = vadd.f32 %v1283_v54, %v7062_v3  ;;  %v4450_v26 = vpack.c.b16 %v4420_v48, %v4419_v17  ;;  %v6328_v3 = vld [vmem:[%s6700_s8 + $0x38] sm:$0x1]  ;;  %v6233_v17 = vld [vmem:[%s6700_s8 + $0x3c] sm:$0xf]  ;;  %v6234_v48 = vld [vmem:[%s6700_s8 + $0x40] sm:$0xf]  ;;  %v3151_v55 = vsel %vm6851_vm5, %v3149_v59, %v3150_v47 }
 0x173   : > { %v2933_v5 = vpop.f32.mrf.mxu0  ;;  %v4797_v63 = vrot.slane %v6328_v3, 5  ;;  %v4057_v31 = vshrl.u32 %v6233_v17, 16  ;;  %v4060_v8 = vshll.u32 %v6233_v17, 16  ;;  %v3297_v46 = vunpack.c.l.b16 %v3151_v55  ;;  %v5978_v3 = vld [vmem:[%s6700_s8 + $0x34] sm:$0xf] }
 0x174   : > { %v7576_v11 = vadd.f32 %v2931_v34, %v2241_v43  ;;  %v6018_v43 = vrot.slane %v5974_v20, 9  ;;  %v4055_v20 = vsel %vm6844_vm4, %v4050_v9, %v4054_v57  ;;  %v6235_v9 = vld [vmem:[%s6700_s8 + $0x44] sm:$0x1]  ;;  %v5977_v55 = vld [vmem:[%s6700_s8 + $0x30] sm:$0xe] }
 0x175   : > { %v4798_v14 = vsel %vm6851_vm5, %v4796_v2, %v4797_v63 }
 0x176   : > { %v3148_v18 = vsel %vm6851_vm5, %v6018_v43, %v3147_v61  ;;  %v4062_v43 = vrot.slane %v4060_v8, 5  ;;  %v6019_v8 = vrot.slane %v5977_v55, 9 }
 0x177   : > { %v1808_v37 = vpop.f32.mrf.mxu2 }
 0x178   : > { %v1863_v34 = vadd.f32 %v1808_v37, %v1338_v32  ;;  %v2187_v22 = vpop.f32.mrf.mxu3  ;;  %v4045_v32 = vsel %vm6844_vm4, %v4040_v62, %v7573_v4 }
 0x179   : > { %v1286_v29 = vpop.f32.mrf.mxu1 }
 0x17a   : > { %v2242_v54 = vadd.f32 %v2187_v22, %v1863_v34  ;;  %v1339_v0 = vadd.f32 %v1286_v29, %v7077_v39  ;;  %v4795_v39 = vsel %vm6851_vm5, %v6370_v40, %v4794_v6  ;;  %v4066_v34 = vshll.u32 %v6234_v48, 16  ;;  %v6330_v40 = vld [vmem:[%s6700_s8 + $0x40] sm:$0xf] }
 0x17b   : > { %v2936_v30 = vpop.f32.mrf.mxu0  ;;  %v4070_v22 = vshrl.u32 %v6234_v48, 16  ;;  %v4421_v29 = vunpack.c.l.b16 %v4045_v32  ;;  %v4944_v6 = vunpack.c.l.b16 %v4798_v14  ;;  %v3154_v48 = vrot.slane %v5978_v3, 5 }
 0x17c   : > { %3417 = vmatmul.bf16.gmra.mxu1 %v3325_v51  ;;  %3796 = vmatmul.bf16.gmra.mxu2 %v6516_v13  ;;  %v7586_v12 = vadd.f32 %v2933_v5, %v2242_v54  ;;  %v3296_v13 = vunpack.c.l.b16 %v3148_v18  ;;  %v4059_v54 = vrot.slane %v4057_v31, 4  ;;  %v7607_v59 = vrot.slane %v4066_v34, 5  ;;  %v6331_v31 = vld [vmem:[%s6700_s8 + $0x44] sm:$0x1] }
 0x17d   : > { %4542 = vmatmul.bf16.gmra.mxu3 %v4450_v26  ;;  %v4422_v26 = vunpack.c.l.b16 %v4055_v20  ;;  %v4072_v47 = vrot.slane %v4070_v22, 4  ;;  %v4801_v14 = vrot.slane %v6330_v40, 5  ;;  %v3156_v34 = vrot.slane %v3154_v48, 4  ;;  %v6236_v22 = vld [vmem:[%s6700_s8 + $0x48] sm:$0xf] }
 0x17e   : > { %5064 = vmatmul.bf16.gmra.mxu0 %v4972_v56  ;;  %v4943_v56 = vunpack.c.l.b16 %v4795_v39  ;;  %v4063_v32 = vor.u32 %v4062_v43, %v4059_v54  ;;  %v5979_v39 = vld [vmem:[%s6700_s8 + $0x38] sm:$0x1]  ;;  %v4804_v43 = vrot.slane %v6331_v31, 5  ;;  %v6238_v31 = vld [vmem:[%s6700_s8 + $0x50] sm:$0x1] }
 0x17f   : > { %v1811_v35 = vpop.f32.mrf.mxu2  ;;  %v4451_v17 = vpack.c.b16 %v4422_v26, %v4421_v29  ;;  %v4803_v54 = vrot.slane %v4801_v14, 4 }
 0x180   : > { %v1864_v37 = vadd.f32 %v1811_v35, %v1339_v0  ;;  %v2190_v5 = vpop.f32.mrf.mxu3  ;;  %v3326_v0 = vpack.c.b16 %v3297_v46, %v3296_v13  ;;  %v4973_v18 = vpack.c.b16 %v4944_v6, %v4943_v56  ;;  %v3157_v46 = vrot.slane %v5979_v39, 5 }
 0x181   : > { %v1288_v61 = vpop.f32.mrf.mxu1  ;;  %v4064_v29 = vrot.slane %v4063_v32, 4  ;;  %v4805_v32 = vsel %vm6851_vm5, %v4803_v54, %v4804_v43  ;;  %v4100_v43 = vshll.u32 %v6238_v31, 16 }
 0x182   : > { %v2243_v51 = vadd.f32 %v2190_v5, %v1864_v37  ;;  %v1340_v62 = vadd.f32 %v1288_v61, %v7109_v19  ;;  %v4073_v19 = vor.u32 %v4072_v47, %v7607_v59  ;;  %v4076_v37 = vshll.u32 %v6235_v9, 16  ;;  %v6329_v61 = vld [vmem:[%s6700_s8 + $0x3c] sm:$0xe] }
 0x183   : > { %v2938_v4 = vpop.f32.mrf.mxu0  ;;  %v6371_v3 = vrot.slane %v6329_v61, 9  ;;  %v4084_v9 = vshll.u32 %v6236_v22, 16 }
 0x184   : > { %v7604_v28 = vadd.f32 %v2936_v30, %v2243_v51  ;;  %v6517_v30 = vld [vmem:[%s6700_s8 + $0x30] sm:$0xff]  ;;  %v6237_v51 = vld [vmem:[%s6700_s8 + $0x4c] sm:$0xf]  ;;  %v4074_v26 = vrot.slane %v4073_v19, 4  ;;  %v4078_v56 = vrot.slane %v4076_v37, 5 }
 0x185   : > { %v4094_v40 = vshrl.u32 %v6237_v51, 16  ;;  %v4802_v55 = vsel %vm6851_vm5, %v6371_v3, %v4801_v14  ;;  %v4086_v37 = vrot.slane %v4084_v9, 5  ;;  %v6518_v9 = vld [vmem:[%s6700_s8 + $0x3c] sm:$0xff] }
 0x186   : > { %v4945_v14 = vunpack.c.l.b16 %v4802_v55 }
 0x187   : > { %v1813_v57 = vpop.f32.mrf.mxu2  ;;  %v4096_v39 = vrot.slane %v4094_v40, 4 }
 0x188   : > { %v1865_v2 = vadd.f32 %v1813_v57, %v1340_v62  ;;  %v2192_v63 = vpop.f32.mrf.mxu3  ;;  %v4081_v62 = vshrl.u32 %v6236_v22, 16  ;;  %v4090_v57 = vshll.u32 %v6237_v51, 16  ;;  %v4946_v51 = vunpack.c.l.b16 %v4805_v32 }
 0x189   : > { %v1291_v35 = vpop.f32.mrf.mxu1 }
 0x18a   : > { %v2244_v5 = vadd.f32 %v2192_v63, %v1865_v2  ;;  %v1341_v6 = vadd.f32 %v1291_v35, %v7136_v1  ;;  %v4069_v1 = vsel %vm6844_vm4, %v4064_v29, %v7607_v59  ;;  %v4083_v19 = vrot.slane %v4081_v62, 4 }
 0x18b   : > { %v2941_v20 = vpop.f32.mrf.mxu0 }
 0x18c   : > { %3422 = vmatmul.bf16.gmra.mxu1 %v3326_v0  ;;  %3801 = vmatmul.bf16.gmra.mxu2 %v6517_v30  ;;  %v7620_v13 = vadd.f32 %v2938_v4, %v2244_v5  ;;  %v3155_v0 = vsel %vm6851_vm5, %v6019_v8, %v3154_v48  ;;  %v3158_v30 = vsel %vm6851_vm5, %v3156_v34, %v3157_v46  ;;  %v5981_v48 = vld [vmem:[%s6700_s8 + $0x40] sm:$0xf]  ;;  %v7637_v5 = vrot.slane %v4090_v57, 5  ;;  %v6333_v46 = vld [vmem:[%s6700_s8 + $0x4c] sm:$0xf] }
 0x18d   : > { %4547 = vmatmul.bf16.gmra.mxu3 %v4451_v17  ;;  %v3298_v59 = vunpack.c.l.b16 %v3155_v0  ;;  %v3299_v61 = vunpack.c.l.b16 %v3158_v30  ;;  %v4423_v34 = vunpack.c.l.b16 %v4069_v1  ;;  %v4087_v3 = vor.u32 %v4086_v37, %v4083_v19  ;;  %v5982_v57 = vld [vmem:[%s6700_s8 + $0x44] sm:$0x1]  ;;  %v6332_v30 = vld [vmem:[%s6700_s8 + $0x48] sm:$0xe] }
 0x18e   : > { %5069 = vmatmul.bf16.gmra.mxu0 %v4973_v18  ;;  %v4079_v18 = vsel %vm6844_vm4, %v4074_v26, %v4078_v56  ;;  %v3161_v26 = vrot.slane %v5981_v48, 5  ;;  %v4097_v54 = vor.u32 %v4096_v39, %v7637_v5  ;;  %v4808_v40 = vrot.slane %v6333_v46, 5 }
 0x18f   : > { %v1816_v47 = vpop.f32.mrf.mxu2  ;;  %v4424_v22 = vunpack.c.l.b16 %v4079_v18  ;;  %v3327_v62 = vpack.c.b16 %v3299_v61, %v3298_v59  ;;  %v4974_v0 = vpack.c.b16 %v4946_v51, %v4945_v14  ;;  %v3164_v55 = vrot.slane %v5982_v57, 5 }
 0x190   : > { %v1866_v2 = vadd.f32 %v1816_v47, %v1341_v6  ;;  %v2195_v4 = vpop.f32.mrf.mxu3  ;;  %v5980_v6 = vld [vmem:[%s6700_s8 + $0x3c] sm:$0xe]  ;;  %v3163_v18 = vrot.slane %v3161_v26, 4  ;;  %v4088_v32 = vrot.slane %v4087_v3, 4  ;;  %v4098_v48 = vrot.slane %v4097_v54, 4 }
 0x191   : > { %v1293_v63 = vpop.f32.mrf.mxu1  ;;  %v4102_v19 = vrot.slane %v4100_v43, 5  ;;  %v6372_v37 = vrot.slane %v6332_v30, 9  ;;  %v4810_v39 = vrot.slane %v4808_v40, 4 }
 0x192   : > { %v2245_v17 = vadd.f32 %v2195_v4, %v1866_v2  ;;  %v1342_v29 = vadd.f32 %v1293_v63, %v7166_v53  ;;  %v4452_v4 = vpack.c.b16 %v4424_v22, %v4423_v34  ;;  %v6334_v53 = vld [vmem:[%s6700_s8 + $0x50] sm:$0x1]  ;;  %v6239_v34 = vld [vmem:[%s6700_s8 + $0x54] sm:$0xf]  ;;  %v6240_v22 = vld [vmem:[%s6700_s8 + $0x58] sm:$0xf]  ;;  %v3165_v46 = vsel %vm6851_vm5, %v3163_v18, %v3164_v55 }
 0x193   : > { %v2943_v35 = vpop.f32.mrf.mxu0  ;;  %v4811_v59 = vrot.slane %v6334_v53, 5  ;;  %v4105_v54 = vshrl.u32 %v6239_v34, 16  ;;  %v4108_v43 = vshll.u32 %v6239_v34, 16  ;;  %v3301_v57 = vunpack.c.l.b16 %v3165_v46  ;;  %v5984_v53 = vld [vmem:[%s6700_s8 + $0x4c] sm:$0xf] }
 0x194   : > { %v7640_v8 = vadd.f32 %v2941_v20, %v2245_v17  ;;  %v6020_v17 = vrot.slane %v5980_v6, 9  ;;  %v4103_v6 = vsel %vm6844_vm4, %v4098_v48, %v4102_v19  ;;  %v6241_v48 = vld [vmem:[%s6700_s8 + $0x5c] sm:$0x1]  ;;  %v5983_v46 = vld [vmem:[%s6700_s8 + $0x48] sm:$0xe] }
 0x195   : > { %v4812_v3 = vsel %vm6851_vm5, %v4810_v39, %v4811_v59 }
 0x196   : > { %v3162_v51 = vsel %vm6851_vm5, %v6020_v17, %v3161_v26  ;;  %v4110_v17 = vrot.slane %v4108_v43, 5  ;;  %v6021_v43 = vrot.slane %v5983_v46, 9 }
 0x197   : > { %v1818_v56 = vpop.f32.mrf.mxu2 }
 0x198   : > { %v1867_v20 = vadd.f32 %v1818_v56, %v1342_v29  ;;  %v2197_v47 = vpop.f32.mrf.mxu3  ;;  %v4093_v29 = vsel %vm6844_vm4, %v4088_v32, %v7637_v5 }
 0x199   : > { %v1296_v2 = vpop.f32.mrf.mxu1 }
 0x19a   : > { %v2246_v63 = vadd.f32 %v2197_v47, %v1867_v20  ;;  %v1343_v31 = vadd.f32 %v1296_v2, %v7181_v41  ;;  %v4809_v41 = vsel %vm6851_vm5, %v6372_v37, %v4808_v40  ;;  %v4114_v20 = vshll.u32 %v6240_v22, 16  ;;  %v6336_v37 = vld [vmem:[%s6700_s8 + $0x58] sm:$0xf] }
 0x19b   : > { %v2946_v1 = vpop.f32.mrf.mxu0  ;;  %v4118_v47 = vshrl.u32 %v6240_v22, 16  ;;  %v4425_v2 = vunpack.c.l.b16 %v4093_v29  ;;  %v4948_v40 = vunpack.c.l.b16 %v4812_v3  ;;  %v3168_v22 = vrot.slane %v5984_v53, 5 }
 0x19c   : > { %3427 = vmatmul.bf16.gmra.mxu1 %v3327_v62  ;;  %3806 = vmatmul.bf16.gmra.mxu2 %v6518_v9  ;;  %v7650_v61 = vadd.f32 %v2943_v35, %v2246_v63  ;;  %v3300_v9 = vunpack.c.l.b16 %v3162_v51  ;;  %v4107_v63 = vrot.slane %v4105_v54, 4  ;;  %v7671_v18 = vrot.slane %v4114_v20, 5  ;;  %v6337_v54 = vld [vmem:[%s6700_s8 + $0x5c] sm:$0x1] }
 0x19d   : > { %4552 = vmatmul.bf16.gmra.mxu3 %v4452_v4  ;;  %v4426_v4 = vunpack.c.l.b16 %v4103_v6  ;;  %v4120_v55 = vrot.slane %v4118_v47, 4  ;;  %v4815_v3 = vrot.slane %v6336_v37, 5  ;;  %v3170_v20 = vrot.slane %v3168_v22, 4  ;;  %v6242_v47 = vld [vmem:[%s6700_s8 + $0x60] sm:$0xf] }
 0x19e   : > { %5074 = vmatmul.bf16.gmra.mxu0 %v4974_v0  ;;  %v4947_v0 = vunpack.c.l.b16 %v4809_v41  ;;  %v4111_v29 = vor.u32 %v4110_v17, %v4107_v63  ;;  %v5985_v41 = vld [vmem:[%s6700_s8 + $0x50] sm:$0x1]  ;;  %v4818_v17 = vrot.slane %v6337_v54, 5  ;;  %v6244_v54 = vld [vmem:[%s6700_s8 + $0x68] sm:$0x1] }
 0x19f   : > { %v1821_v14 = vpop.f32.mrf.mxu2  ;;  %v4453_v34 = vpack.c.b16 %v4426_v4, %v4425_v2  ;;  %v4817_v63 = vrot.slane %v4815_v3, 4 }
 0x1a0   : > { %v1868_v56 = vadd.f32 %v1821_v14, %v1343_v31  ;;  %v2200_v35 = vpop.f32.mrf.mxu3  ;;  %v3328_v31 = vpack.c.b16 %v3301_v57, %v3300_v9  ;;  %v4975_v51 = vpack.c.b16 %v4948_v40, %v4947_v0  ;;  %v3171_v57 = vrot.slane %v5985_v41, 5 }
 0x1a1   : > { %v1298_v26 = vpop.f32.mrf.mxu1  ;;  %v4112_v2 = vrot.slane %v4111_v29, 4  ;;  %v4819_v29 = vsel %vm6851_vm5, %v4817_v63, %v4818_v17  ;;  %v4148_v17 = vshll.u32 %v6244_v54, 16 }
 0x1a2   : > { %v2247_v62 = vadd.f32 %v2200_v35, %v1868_v56  ;;  %v1344_v32 = vadd.f32 %v1298_v26, %v7213_v42  ;;  %v4121_v42 = vor.u32 %v4120_v55, %v7671_v18  ;;  %v4124_v56 = vshll.u32 %v6241_v48, 16  ;;  %v6335_v26 = vld [vmem:[%s6700_s8 + $0x54] sm:$0xe] }
 0x1a3   : > { %v2948_v5 = vpop.f32.mrf.mxu0  ;;  %v6373_v53 = vrot.slane %v6335_v26, 9  ;;  %v4132_v48 = vshll.u32 %v6242_v47, 16 }
 0x1a4   : > { %v7668_v30 = vadd.f32 %v2946_v1, %v2247_v62  ;;  %v6519_v1 = vld [vmem:[%s6700_s8 + $0x48] sm:$0xff]  ;;  %v6243_v62 = vld [vmem:[%s6700_s8 + $0x64] sm:$0xf]  ;;  %v4122_v4 = vrot.slane %v4121_v42, 4  ;;  %v4126_v0 = vrot.slane %v4124_v56, 5 }
 0x1a5   : > { %v4142_v37 = vshrl.u32 %v6243_v62, 16  ;;  %v4816_v46 = vsel %vm6851_vm5, %v6373_v53, %v4815_v3  ;;  %v4134_v56 = vrot.slane %v4132_v48, 5  ;;  %v6520_v48 = vld [vmem:[%s6700_s8 + $0x54] sm:$0xff] }
 0x1a6   : > { %v4949_v3 = vunpack.c.l.b16 %v4816_v46 }
 0x1a7   : > { %v1823_v19 = vpop.f32.mrf.mxu2  ;;  %v4144_v41 = vrot.slane %v4142_v37, 4 }
 0x1a8   : > { %v1869_v39 = vadd.f32 %v1823_v19, %v1344_v32  ;;  %v2202_v59 = vpop.f32.mrf.mxu3  ;;  %v4129_v32 = vshrl.u32 %v6242_v47, 16  ;;  %v4138_v19 = vshll.u32 %v6243_v62, 16  ;;  %v4950_v62 = vunpack.c.l.b16 %v4819_v29 }
 0x1a9   : > { %v1301_v14 = vpop.f32.mrf.mxu1 }
 0x1aa   : > { %v2248_v35 = vadd.f32 %v2202_v59, %v1869_v39  ;;  %v1345_v40 = vadd.f32 %v1301_v14, %v7038_v36  ;;  %v4117_v36 = vsel %vm6844_vm4, %v4112_v2, %v7671_v18  ;;  %v4131_v42 = vrot.slane %v4129_v32, 4 }
 0x1ab   : > { %v2951_v6 = vpop.f32.mrf.mxu0 }
 0x1ac   : > { %3432 = vmatmul.bf16.gmra.mxu1 %v3328_v31  ;;  %3811 = vmatmul.bf16.gmra.mxu2 %v6519_v1  ;;  %v7684_v9 = vadd.f32 %v2948_v5, %v2248_v35  ;;  %v3169_v31 = vsel %vm6851_vm5, %v6021_v43, %v3168_v22  ;;  %v3172_v1 = vsel %vm6851_vm5, %v3170_v20, %v3171_v57  ;;  %v5987_v22 = vld [vmem:[%s6700_s8 + $0x58] sm:$0xf]  ;;  %v7701_v35 = vrot.slane %v4138_v19, 5  ;;  %v6339_v57 = vld [vmem:[%s6700_s8 + $0x64] sm:$0xf] }
 0x1ad   : > { %4557 = vmatmul.bf16.gmra.mxu3 %v4453_v34  ;;  %v3302_v18 = vunpack.c.l.b16 %v3169_v31  ;;  %v3303_v26 = vunpack.c.l.b16 %v3172_v1  ;;  %v4427_v20 = vunpack.c.l.b16 %v4117_v36  ;;  %v4135_v53 = vor.u32 %v4134_v56, %v4131_v42  ;;  %v5988_v19 = vld [vmem:[%s6700_s8 + $0x5c] sm:$0x1]  ;;  %v6338_v1 = vld [vmem:[%s6700_s8 + $0x60] sm:$0xe] }
 0x1ae   : > { %5079 = vmatmul.bf16.gmra.mxu0 %v4975_v51  ;;  %v4127_v51 = vsel %vm6844_vm4, %v4122_v4, %v4126_v0  ;;  %v3175_v4 = vrot.slane %v5987_v22, 5  ;;  %v4145_v63 = vor.u32 %v4144_v41, %v7701_v35  ;;  %v4822_v37 = vrot.slane %v6339_v57, 5 }
 0x1af   : > { %v1826_v55 = vpop.f32.mrf.mxu2  ;;  %v4428_v47 = vunpack.c.l.b16 %v4127_v51  ;;  %v3329_v32 = vpack.c.b16 %v3303_v26, %v3302_v18  ;;  %v4976_v31 = vpack.c.b16 %v4950_v62, %v4949_v3  ;;  %v3178_v46 = vrot.slane %v5988_v19, 5 }
 0x1b0   : > { %v1870_v39 = vadd.f32 %v1826_v55, %v1345_v40  ;;  %v2205_v5 = vpop.f32.mrf.mxu3  ;;  %v5986_v40 = vld [vmem:[%s6700_s8 + $0x54] sm:$0xe]  ;;  %v3177_v51 = vrot.slane %v3175_v4, 4  ;;  %v4136_v29 = vrot.slane %v4135_v53, 4  ;;  %v4146_v22 = vrot.slane %v4145_v63, 4 }
 0x1b1   : > { %v1303_v59 = vpop.f32.mrf.mxu1  ;;  %v4150_v42 = vrot.slane %v4148_v17, 5  ;;  %v6374_v56 = vrot.slane %v6338_v1, 9  ;;  %v4824_v41 = vrot.slane %v4822_v37, 4 }
 0x1b2   : > { %v2249_v34 = vadd.f32 %v2205_v5, %v1870_v39  ;;  %v1346_v2 = vadd.f32 %v1303_v59, %v7064_v7  ;;  %v4454_v5 = vpack.c.b16 %v4428_v47, %v4427_v20  ;;  %v6340_v7 = vld [vmem:[%s6700_s8 + $0x68] sm:$0x1]  ;;  %v6245_v20 = vld [vmem:[%s6700_s8 + $0x6c] sm:$0xf]  ;;  %v6246_v47 = vld [vmem:[%s6700_s8 + $0x70] sm:$0xf]  ;;  %v3179_v57 = vsel %vm6851_vm5, %v3177_v51, %v3178_v46 }
 0x1b3   : > { %v2953_v14 = vpop.f32.mrf.mxu0  ;;  %v4825_v18 = vrot.slane %v6340_v7, 5  ;;  %v4153_v63 = vshrl.u32 %v6245_v20, 16  ;;  %v4156_v17 = vshll.u32 %v6245_v20, 16  ;;  %v3305_v19 = vunpack.c.l.b16 %v3179_v57  ;;  %v5990_v7 = vld [vmem:[%s6700_s8 + $0x64] sm:$0xf] }
 0x1b4   : > { %v7704_v43 = vadd.f32 %v2951_v6, %v2249_v34  ;;  %v6022_v34 = vrot.slane %v5986_v40, 9  ;;  %v4151_v40 = vsel %vm6844_vm4, %v4146_v22, %v4150_v42  ;;  %v6247_v42 = vld [vmem:[%s6700_s8 + $0x74] sm:$0x1] }
 0x1b5   : > { %v4826_v53 = vsel %vm6851_vm5, %v4824_v41, %v4825_v18  ;;  %v6342_v41 = vld [vmem:[%s6700_s8 + $0x70] sm:$0xf] }
 0x1b6   : > { %v3176_v62 = vsel %vm6851_vm5, %v6022_v34, %v3175_v4  ;;  %v4158_v34 = vrot.slane %v4156_v17, 5  ;;  %v6341_v17 = vld [vmem:[%s6700_s8 + $0x6c] sm:$0xe] }
 0x1b7   : > { %v1828_v0 = vpop.f32.mrf.mxu2 }
 0x1b8   : > { %v1871_v6 = vadd.f32 %v1828_v0, %v1346_v2  ;;  %v2207_v55 = vpop.f32.mrf.mxu3  ;;  %v4141_v2 = vsel %vm6844_vm4, %v4136_v29, %v7701_v35  ;;  %v8076_v29 = vld [vmem:[#allocation3_spill] sm:$0xff] }
 0x1b9   : > { %v1306_v39 = vpop.f32.mrf.mxu1 }
 0x1ba   : > { %v2250_v59 = vadd.f32 %v2207_v55, %v1871_v6  ;;  %v1347_v54 = vadd.f32 %v1306_v39, %v7081_v45  ;;  %v4823_v45 = vsel %vm6851_vm5, %v6374_v56, %v4822_v37  ;;  %v4162_v6 = vshll.u32 %v6246_v47, 16 }
 0x1bb   : > { %v2956_v36 = vpop.f32.mrf.mxu0  ;;  %v4166_v55 = vshrl.u32 %v6246_v47, 16  ;;  %v4429_v39 = vunpack.c.l.b16 %v4141_v2  ;;  %v4952_v37 = vunpack.c.l.b16 %v4826_v53  ;;  %v5989_v2 = vld [vmem:[%s6700_s8 + $0x60] sm:$0xe] }
 0x1bc   : > { %3437 = vmatmul.bf16.gmra.mxu1 %v3329_v32  ;;  %3816 = vmatmul.bf16.gmra.mxu2 %v6520_v48  ;;  %v7714_v26 = vadd.f32 %v2953_v14, %v2250_v59  ;;  %v3304_v48 = vunpack.c.l.b16 %v3176_v62  ;;  %v4155_v59 = vrot.slane %v4153_v63, 4  ;;  %v7735_v51 = vrot.slane %v4162_v6, 5  ;;  %v6343_v6 = vld [vmem:[%s6700_s8 + $0x74] sm:$0x1] }
 0x1bd   : > { %4562 = vmatmul.bf16.gmra.mxu3 %v4454_v5  ;;  %v4430_v5 = vunpack.c.l.b16 %v4151_v40  ;;  %v4168_v46 = vrot.slane %v4166_v55, 4  ;;  %v4172_v40 = vshll.u32 %v6247_v42, 16  ;;  %v4829_v63 = vrot.slane %v6342_v41, 5 }
 0x1be   : > { %5084 = vmatmul.bf16.gmra.mxu0 %v4976_v31  ;;  %v4951_v31 = vunpack.c.l.b16 %v4823_v45  ;;  %v3330_v20 = vpack.c.b16 %v3305_v19, %v3304_v48  ;;  %v6023_v55 = vrot.slane %v5989_v2, 9  ;;  %v6248_v48 = vld [vmem:[%s6700_s8 + $0x78] sm:$0xf]  ;;  %v6249_v19 = vld [vmem:[%s6700_s8 + $0x7c] sm:$0xf] }
 0x1bf   : > { %v1831_v3 = vpop.f32.mrf.mxu2  ;;  %v4455_v47 = vpack.c.b16 %v4430_v5, %v4429_v39  ;;  %v4180_v41 = vshll.u32 %v6248_v48, 16 }
 0x1c0   : > { %v1872_v0 = vadd.f32 %v1831_v3, %v1347_v54  ;;  %v2210_v14 = vpop.f32.mrf.mxu3  ;;  %v3182_v3 = vrot.slane %v5990_v7, 5  ;;  %v4977_v57 = vpack.c.b16 %v4952_v37, %v4951_v31  ;;  %v4174_v7 = vrot.slane %v4172_v40, 5 }
 0x1c1   : > { %v1308_v4 = vpop.f32.mrf.mxu1 }
 0x1c2   : > { %v2251_v32 = vadd.f32 %v2210_v14, %v1872_v0  ;;  %v1348_v22 = vadd.f32 %v1308_v4, %v8076_v29  ;;  %v4159_v0 = vor.u32 %v4158_v34, %v4155_v59  ;;  %v4169_v14 = vor.u32 %v4168_v46, %v7735_v51  ;;  %v5991_v4 = vld [vmem:[%s6700_s8 + $0x68] sm:$0x1] }
 0x1c3   : > { %v2958_v35 = vpop.f32.mrf.mxu0  ;;  %v3185_v5 = vrot.slane %v5991_v4, 5  ;;  %v8077_v59 = vld [vmem:[#allocation4_spill] sm:$0xff]  ;;  %v6375_v46 = vrot.slane %v6341_v17, 9  ;;  %v4831_v29 = vrot.slane %v4829_v63, 4  ;;  %v4182_v4 = vrot.slane %v4180_v41, 5 }
 0x1c4   : > { %v7732_v1 = vadd.f32 %v2956_v36, %v2251_v32  ;;  %v6521_v36 = vld [vmem:[%s6700_s8 + $0x60] sm:$0xff]  ;;  %v3184_v32 = vrot.slane %v3182_v3, 4  ;;  %v4160_v31 = vrot.slane %v4159_v0, 4  ;;  %v4170_v37 = vrot.slane %v4169_v14, 4 }
 0x1c5   : > { %v4830_v40 = vsel %vm6851_vm5, %v6375_v46, %v4829_v63 }
 0x1c6   : > { %v4175_v14 = vsel %vm6844_vm4, %v4170_v37, %v4174_v7  ;;  %v4953_v63 = vunpack.c.l.b16 %v4830_v40  ;;  %v6345_v7 = vld [vmem:[%s6700_s8 + $0x7c] sm:$0xf] }
 0x1c7   : > { %v1833_v56 = vpop.f32.mrf.mxu2 }
 0x1c8   : > { %v1873_v18 = vadd.f32 %v1833_v56, %v1348_v22  ;;  %v2212_v54 = vpop.f32.mrf.mxu3  ;;  %v4832_v22 = vrot.slane %v6343_v6, 5  ;;  %v4177_v56 = vshrl.u32 %v6248_v48, 16  ;;  %v6250_v48 = vld [vmem:[%s6700_s8 + $0x80] sm:$0x1] }
 0x1c9   : > { %v1311_v62 = vpop.f32.mrf.mxu1 }
 0x1ca   : > { %v2252_v45 = vadd.f32 %v2212_v54, %v1873_v18  ;;  %v1349_v34 = vadd.f32 %v1311_v62, %v8077_v59  ;;  %v4186_v18 = vshll.u32 %v6249_v19, 16  ;;  %v4190_v54 = vshrl.u32 %v6249_v19, 16  ;;  %v8078_v59 = vld [vmem:[#allocation5_spill] sm:$0xff] }
 0x1cb   : > { %v2961_v53 = vpop.f32.mrf.mxu0  ;;  %v4165_v62 = vsel %vm6844_vm4, %v4160_v31, %v7735_v51  ;;  %v4432_v31 = vunpack.c.l.b16 %v4175_v14  ;;  %v6344_v14 = vld [vmem:[%s6700_s8 + $0x78] sm:$0xe] }
 0x1cc   : > { %3442 = vmatmul.bf16.gmra.mxu1 %v3330_v20  ;;  %3821 = vmatmul.bf16.gmra.mxu2 %v6521_v36  ;;  %v7748_v39 = vadd.f32 %v2958_v35, %v2252_v45  ;;  %v4833_v45 = vsel %vm6851_vm5, %v4831_v29, %v4832_v22  ;;  %v7764_v17 = vrot.slane %v4186_v18, 5  ;;  %v4192_v6 = vrot.slane %v4190_v54, 4  ;;  %v5992_v29 = vld [vmem:[%s6700_s8 + $0x6c] sm:$0xe]  ;;  %v5994_v22 = vld [vmem:[%s6700_s8 + $0x74] sm:$0x1] }
 0x1cd   : > { %4567 = vmatmul.bf16.gmra.mxu3 %v4455_v47  ;;  %v3183_v47 = vsel %vm6851_vm5, %v6023_v55, %v3182_v3  ;;  %v4179_v3 = vrot.slane %v4177_v56, 4  ;;  %v4954_v37 = vunpack.c.l.b16 %v4833_v45  ;;  %v4196_v18 = vshll.u32 %v6250_v48, 16 }
 0x1ce   : > { %5089 = vmatmul.bf16.gmra.mxu0 %v4977_v57  ;;  %v3186_v57 = vsel %vm6851_vm5, %v3184_v32, %v3185_v5  ;;  %v3306_v51 = vunpack.c.l.b16 %v3183_v47  ;;  %v5993_v32 = vld [vmem:[%s6700_s8 + $0x70] sm:$0xf]  ;;  %v4431_v5 = vunpack.c.l.b16 %v4165_v62  ;;  %v4193_v41 = vor.u32 %v4192_v6, %v7764_v17 }
 0x1cf   : > { %v1836_v42 = vpop.f32.mrf.mxu2  ;;  %v3307_v55 = vunpack.c.l.b16 %v3186_v57  ;;  %v4183_v56 = vor.u32 %v4182_v4, %v4179_v3  ;;  %v4836_v47 = vrot.slane %v6345_v7, 5  ;;  %v4198_v48 = vrot.slane %v4196_v18, 5 }
 0x1d0   : > { %v1874_v20 = vadd.f32 %v1836_v42, %v1349_v34  ;;  %v2215_v36 = vpop.f32.mrf.mxu3  ;;  %v3189_v42 = vrot.slane %v5993_v32, 5  ;;  %v4456_v62 = vpack.c.b16 %v4432_v31, %v4431_v5  ;;  %v3192_v32 = vrot.slane %v5994_v22, 5  ;;  %v8079_v5 = vld [vmem:[#allocation6_spill] sm:$0xff] }
 0x1d1   : > { %v1313_v35 = vpop.f32.mrf.mxu1  ;;  %v4184_v4 = vrot.slane %v4183_v56, 4  ;;  %v4194_v6 = vrot.slane %v4193_v41, 4 }
 0x1d2   : > { %v2253_v2 = vadd.f32 %v2215_v36, %v1874_v20  ;;  %v1350_v34 = vadd.f32 %v1313_v35, %v8078_v59  ;;  %v3331_v20 = vpack.c.b16 %v3307_v55, %v3306_v51  ;;  %v6522_v36 = vld [vmem:[%s6700_s8 + $0x6c] sm:$0xff]  ;;  %v6346_v35 = vld [vmem:[%s6700_s8 + $0x80] sm:$0x1]  ;;  %v6024_v59 = vrot.slane %v5992_v29, 9 }
 0x1d3   : > { %v2963_v0 = vpop.f32.mrf.mxu0  ;;  %v3191_v3 = vrot.slane %v3189_v42, 4  ;;  %v6376_v51 = vrot.slane %v6344_v14, 9  ;;  %v4838_v55 = vrot.slane %v4836_v47, 4  ;;  %v4839_v7 = vrot.slane %v6346_v35, 5 }
 0x1d4   : > { %v7768_v19 = vadd.f32 %v2961_v53, %v2253_v2  ;;  %v4978_v2 = vpack.c.b16 %v4954_v37, %v4953_v63  ;;  %v6251_v63 = vld [vmem:[%s6700_s8 + $0x84] sm:$0xf]  ;;  %v6252_v37 = vld [vmem:[%s6700_s8 + $0x88] sm:$0xf]  ;;  %v3190_v29 = vsel %vm6851_vm5, %v6024_v59, %v3189_v42  ;;  %v4189_v56 = vsel %vm6844_vm4, %v4184_v4, %v7764_v17  ;;  %v5996_v4 = vld [vmem:[%s6700_s8 + $0x7c] sm:$0xf] }
 0x1d5   : > { %v3193_v22 = vsel %vm6851_vm5, %v3191_v3, %v3192_v32  ;;  %v4199_v18 = vsel %vm6844_vm4, %v4194_v6, %v4198_v48  ;;  %v3308_v14 = vunpack.c.l.b16 %v3190_v29 }
 0x1d6   : > { %v3309_v35 = vunpack.c.l.b16 %v3193_v22  ;;  %v4434_v59 = vunpack.c.l.b16 %v4199_v18 }
 0x1d7   : > { %v1838_v46 = vpop.f32.mrf.mxu2 }
 0x1d8   : > { %v1875_v53 = vadd.f32 %v1838_v46, %v1350_v34  ;;  %v2217_v54 = vpop.f32.mrf.mxu3  ;;  %v3332_v22 = vpack.c.b16 %v3309_v35, %v3308_v14 }
 0x1d9   : > { %v1316_v57 = vpop.f32.mrf.mxu1 }
 0x1da   : > { %v2254_v40 = vadd.f32 %v2217_v54, %v1875_v53  ;;  %v1351_v31 = vadd.f32 %v1316_v57, %v8079_v5  ;;  %v4837_v53 = vsel %vm6851_vm5, %v6376_v51, %v4836_v47  ;;  %v4840_v54 = vsel %vm6851_vm5, %v4838_v55, %v4839_v7  ;;  %v8080_v7 = vld [vmem:[#allocation7_spill] sm:$0xff] }
 0x1db   : > { %v2966_v45 = vpop.f32.mrf.mxu0  ;;  %v4210_v57 = vshll.u32 %v6252_v37, 16  ;;  %v4955_v32 = vunpack.c.l.b16 %v4837_v53  ;;  %v4956_v47 = vunpack.c.l.b16 %v4840_v54  ;;  %v5995_v53 = vld [vmem:[%s6700_s8 + $0x78] sm:$0xe] }
 0x1dc   : > { %3447 = vmatmul.bf16.gmra.mxu1 %v3331_v20  ;;  %3826 = vmatmul.bf16.gmra.mxu2 %v6522_v36  ;;  %v7778_v34 = vadd.f32 %v2963_v0, %v2254_v40  ;;  %v4201_v20 = vshrl.u32 %v6251_v63, 16  ;;  %v4204_v36 = vshll.u32 %v6251_v63, 16  ;;  %v4433_v40 = vunpack.c.l.b16 %v4189_v56 }
 0x1dd   : > { %4572 = vmatmul.bf16.gmra.mxu3 %v4456_v62  ;;  %v4214_v62 = vshrl.u32 %v6252_v37, 16  ;;  %v7799_v51 = vrot.slane %v4210_v57, 5  ;;  %v6348_v37 = vld [vmem:[%s6700_s8 + $0x88] sm:$0xf]  ;;  %v4979_v18 = vpack.c.b16 %v4956_v47, %v4955_v32  ;;  %v6025_v14 = vrot.slane %v5995_v53, 9 }
 0x1de   : > { %5094 = vmatmul.bf16.gmra.mxu0 %v4978_v2  ;;  %v4203_v6 = vrot.slane %v4201_v20, 4  ;;  %v4206_v48 = vrot.slane %v4204_v36, 5  ;;  %v4457_v56 = vpack.c.b16 %v4434_v59, %v4433_v40  ;;  %v6254_v40 = vld [vmem:[%s6700_s8 + $0x90] sm:$0xf] }
 0x1df   : > { %v1841_v46 = vpop.f32.mrf.mxu2  ;;  %v4216_v55 = vrot.slane %v4214_v62, 4  ;;  %v5997_v62 = vld [vmem:[%s6700_s8 + $0x80] sm:$0x1] }
 0x1e0   : > { %v1876_v41 = vadd.f32 %v1841_v46, %v1351_v31  ;;  %v2220_v0 = vpop.f32.mrf.mxu3  ;;  %v6253_v31 = vld [vmem:[%s6700_s8 + $0x8c] sm:$0x1]  ;;  %v4207_v54 = vor.u32 %v4206_v48, %v4203_v6  ;;  %v3199_v32 = vrot.slane %v5997_v62, 5  ;;  %v6255_v48 = vld [vmem:[%s6700_s8 + $0x94] sm:$0xf] }
 0x1e1   : > { %v1318_v42 = vpop.f32.mrf.mxu1  ;;  %v4217_v20 = vor.u32 %v4216_v55, %v7799_v51  ;;  %v4238_v53 = vshrl.u32 %v6255_v48, 16 }
 0x1e2   : > { %v2255_v2 = vadd.f32 %v2220_v0, %v1876_v41  ;;  %v1352_v5 = vadd.f32 %v1318_v42, %v8080_v7  ;;  %v3196_v41 = vrot.slane %v5996_v4, 5  ;;  %v4220_v42 = vshll.u32 %v6253_v31, 16  ;;  %v6347_v7 = vld [vmem:[%s6700_s8 + $0x84] sm:$0xe] }
 0x1e3   : > { %v2968_v17 = vpop.f32.mrf.mxu0  ;;  %v4208_v47 = vrot.slane %v4207_v54, 4  ;;  %v4218_v4 = vrot.slane %v4217_v20, 4  ;;  %v6377_v31 = vrot.slane %v6347_v7, 9 }
 0x1e4   : > { %v7796_v3 = vadd.f32 %v2966_v45, %v2255_v2  ;;  %v6523_v45 = vld [vmem:[%s6700_s8 + $0x78] sm:$0xff]  ;;  %v4843_v2 = vrot.slane %v6348_v37, 5  ;;  %v3198_v35 = vrot.slane %v3196_v41, 4  ;;  %v4222_v6 = vrot.slane %v4220_v42, 5 }
 0x1e6   : > { %v3200_v20 = vsel %vm6851_vm5, %v3198_v35, %v3199_v32  ;;  %v4844_v62 = vsel %vm6851_vm5, %v6377_v31, %v4843_v2  ;;  %v6256_v31 = vld [vmem:[%s6700_s8 + $0x98] sm:$0x1] }
 0x1e7   : > { %v1843_v63 = vpop.f32.mrf.mxu2  ;;  %v3311_v35 = vunpack.c.l.b16 %v3200_v20 }
 0x1e8   : > { %v1877_v46 = vadd.f32 %v1843_v63, %v1352_v5  ;;  %v2222_v29 = vpop.f32.mrf.mxu3  ;;  %v6349_v5 = vld [vmem:[%s6700_s8 + $0x8c] sm:$0x1]  ;;  %v4845_v63 = vrot.slane %v4843_v2, 4  ;;  %v4240_v2 = vrot.slane %v4238_v53, 4 }
 0x1e9   : > { %v3413_v0 = vpop.f32.mrf.mxu1  ;;  %v4846_v37 = vrot.slane %v6349_v5, 5 }
 0x1ea   : > { %v2256_v36 = vadd.f32 %v2222_v29, %v1877_v46  ;;  %v3493_v55 = vadd.f32 %v3413_v0, %v7273_v49  ;;  %v4225_v29 = vshrl.u32 %v6254_v40, 16  ;;  %v4213_v49 = vsel %vm6844_vm4, %v4208_v47, %v7799_v51 }
 0x1eb   : > { %v5060_v57 = vpop.f32.mrf.mxu0  ;;  %v4435_v47 = vunpack.c.l.b16 %v4213_v49 }
 0x1ec   : > { %3452 = vmatmul.bf16.gmra.mxu1 %v3332_v22  ;;  %3831 = vmatmul.bf16.gmra.mxu2 %v6523_v45  ;;  %v7811_v59 = vadd.f32 %v2968_v17, %v2256_v36  ;;  %v4228_v22 = vshll.u32 %v6254_v40, 16  ;;  %v4223_v36 = vsel %vm6844_vm4, %v4218_v4, %v4222_v6  ;;  %v4227_v7 = vrot.slane %v4225_v29, 4  ;;  %v5999_v40 = vld [vmem:[%s6700_s8 + $0x88] sm:$0xf] }
 0x1ed   : > { %4577 = vmatmul.bf16.gmra.mxu3 %v4457_v56  ;;  %v3197_v56 = vsel %vm6851_vm5, %v6025_v14, %v3196_v41  ;;  %v4847_v41 = vsel %vm6851_vm5, %v4845_v63, %v4846_v37  ;;  %v4436_v4 = vunpack.c.l.b16 %v4223_v36  ;;  %v4957_v6 = vunpack.c.l.b16 %v4844_v62  ;;  %v6351_v63 = vld [vmem:[%s6700_s8 + $0x94] sm:$0xf] }
 0x1ee   : > { %5099 = vmatmul.bf16.gmra.mxu0 %v4979_v18  ;;  %v4234_v18 = vshll.u32 %v6255_v48, 16  ;;  %v3310_v51 = vunpack.c.l.b16 %v3197_v56  ;;  %v4230_v5 = vrot.slane %v4228_v22, 5  ;;  %v4958_v48 = vunpack.c.l.b16 %v4847_v41  ;;  %v5998_v56 = vld [vmem:[%s6700_s8 + $0x84] sm:$0xe]  ;;  %v6350_v41 = vld [vmem:[%s6700_s8 + $0x90] sm:$0xe] }
 0x1ef   : > { %v3792_v46 = vpop.f32.mrf.mxu2  ;;  %v4458_v49 = vpack.c.b16 %v4436_v4, %v4435_v47  ;;  %v4244_v36 = vshll.u32 %v6256_v31, 16  ;;  %v6378_v4 = vrot.slane %v6350_v41, 9  ;;  %v6257_v31 = vld [vmem:[%s6700_s8 + $0x9c] sm:$0xf] }
 0x1f0   : > { %v3872_v45 = vadd.f32 %v3792_v46, %v3493_v55  ;;  %v4538_v17 = vpop.f32.mrf.mxu3  ;;  %v7835_v32 = vrot.slane %v4234_v18, 5  ;;  %v3203_v46 = vrot.slane %v5999_v40, 5  ;;  %v6000_v18 = vld [vmem:[%s6700_s8 + $0x8c] sm:$0x1]  ;;  %v6352_v40 = vld [vmem:[%s6700_s8 + $0x98] sm:$0x1] }
 0x1f1   : > { %v3415_v54 = vpop.f32.mrf.mxu1  ;;  %v4246_v47 = vrot.slane %v4244_v36, 5 }
 0x1f2   : > { %v4618_v0 = vadd.f32 %v4538_v17, %v3872_v45  ;;  %v3494_v55 = vadd.f32 %v3415_v54, %v7275_v21  ;;  %v3333_v45 = vpack.c.b16 %v3311_v35, %v3310_v51  ;;  %v6524_v17 = vld [vmem:[%s6700_s8 + $0x84] sm:$0xff]  ;;  %v4241_v53 = vor.u32 %v4240_v2, %v7835_v32 }
 0x1f3   : > { %v5062_v42 = vpop.f32.mrf.mxu0  ;;  %v4850_v21 = vrot.slane %v6351_v63, 5 }
 0x1f4   : > { %v5140_v14 = vadd.f32 %v5060_v57, %v4618_v0  ;;  %v4231_v57 = vor.u32 %v4230_v5, %v4227_v7  ;;  %v4980_v0 = vpack.c.b16 %v4958_v48, %v4957_v6  ;;  %v6026_v7 = vrot.slane %v5998_v56, 9  ;;  %v6258_v56 = vld [vmem:[%s6700_s8 + $0xa0] sm:$0xf] }
 0x1f5   : > { %v3205_v5 = vrot.slane %v3203_v46, 4  ;;  %v4242_v2 = vrot.slane %v4241_v53, 4  ;;  %v4852_v6 = vrot.slane %v4850_v21, 4  ;;  %v4853_v48 = vrot.slane %v6352_v40, 5 }
 0x1f6   : > { %5236 = vst [vmem:[%s7832_s7] sm:$0xff] %v5140_v14  ;;  %v4232_v51 = vrot.slane %v4231_v57, 4  ;;  %v5306_v63 = vmul.f32 %v5140_v14, %v5140_v14  ;;  %v4851_v40 = vsel %vm6851_vm5, %v6378_v4, %v4850_v21 }
 0x1f7   : > { %v3794_v37 = vpop.f32.mrf.mxu2 }
 0x1f8   : > { %v3873_v29 = vadd.f32 %v3794_v37, %v3494_v55  ;;  %v4540_v22 = vpop.f32.mrf.mxu3  ;;  %v3206_v55 = vrot.slane %v6000_v18, 5 }
 0x1f9   : > { %v3418_v20 = vpop.f32.mrf.mxu1 }
 0x1fa   : > { %v4619_v54 = vadd.f32 %v4540_v22, %v3873_v29  ;;  %v3495_v22 = vadd.f32 %v3418_v20, %v7313_v60  ;;  %v4247_v60 = vsel %vm6844_vm4, %v4242_v2, %v4246_v47  ;;  %v4258_v20 = vshll.u32 %v6258_v56, 16 }
 0x1fb   : > { %v5065_v62 = vpop.f32.mrf.mxu0 }
 0x1fc   : > { %v5141_v35 = vadd.f32 %v5062_v42, %v4619_v54  ;;  %3457 = vmatmul.bf16.gmra.mxu1 %v3333_v45  ;;  %3836 = vmatmul.bf16.gmra.mxu2 %v6524_v17  ;;  %v3204_v42 = vsel %vm6851_vm5, %v6026_v7, %v3203_v46  ;;  %v3207_v45 = vsel %vm6851_vm5, %v3205_v5, %v3206_v55  ;;  %v4262_v54 = vshrl.u32 %v6258_v56, 16 }
 0x1fd   : > { %4582 = vmatmul.bf16.gmra.mxu3 %v4458_v49  ;;  %v4237_v17 = vsel %vm6844_vm4, %v4232_v51, %v7835_v32  ;;  %v4854_v32 = vsel %vm6851_vm5, %v4852_v6, %v4853_v48  ;;  %v3312_v7 = vunpack.c.l.b16 %v3204_v42  ;;  %v3313_v5 = vunpack.c.l.b16 %v3207_v45  ;;  %v8081_v48 = vld [vmem:[#allocation8_spill] sm:$0xff]  ;;  %v6354_v45 = vld [vmem:[%s6700_s8 + $0xa0] sm:$0xf] }
 0x1fe   : > { %5104 = vmatmul.bf16.gmra.mxu0 %v4980_v0  ;;  %5237 = vst [vmem:[%s7832_s7 + $0x8] sm:$0xff] %v5141_v35  ;;  %v5268_v37 = vadd.f32 %v5141_v35, %v5140_v14  ;;  %v5307_v29 = vmul.f32 %v5141_v35, %v5141_v35  ;;  %v4249_v0 = vshrl.u32 %v6257_v31, 16  ;;  %v4252_v14 = vshll.u32 %v6257_v31, 16 }
 0x1ff   : > { %v3797_v57 = vpop.f32.mrf.mxu2  ;;  %v4437_v55 = vunpack.c.l.b16 %v4237_v17  ;;  %v4438_v35 = vunpack.c.l.b16 %v4247_v60  ;;  %v4959_v31 = vunpack.c.l.b16 %v4851_v40  ;;  %v4264_v21 = vrot.slane %v4262_v54, 4  ;;  %v6003_v40 = vld [vmem:[%s6700_s8 + $0x98] sm:$0x1] }
 0x200   : > { %v5338_v18 = vadd.f32 %v5307_v29, %v5306_v63  ;;  %v3874_v53 = vadd.f32 %v3797_v57, %v3495_v22  ;;  %v4543_v49 = vpop.f32.mrf.mxu3  ;;  %v4251_v2 = vrot.slane %v4249_v0, 4  ;;  %v4254_v47 = vrot.slane %v4252_v14, 5  ;;  %v6002_v29 = vld [vmem:[%s6700_s8 + $0x94] sm:$0xf]  ;;  %v6259_v57 = vld [vmem:[%s6700_s8 + $0xa4] sm:$0x1] }
 0x201   : > { %v3420_v36 = vpop.f32.mrf.mxu1  ;;  %v4960_v63 = vunpack.c.l.b16 %v4854_v32  ;;  %v7865_v22 = vrot.slane %v4258_v20, 5  ;;  %v3334_v42 = vpack.c.b16 %v3313_v5, %v3312_v7  ;;  %v6525_v0 = vld [vmem:[%s6700_s8 + $0x90] sm:$0xff]  ;;  %v3210_v60 = vrot.slane %v6002_v29, 5  ;;  %v6353_v5 = vld [vmem:[%s6700_s8 + $0x9c] sm:$0xe] }
 0x202   : > { %v4620_v46 = vadd.f32 %v4543_v49, %v3874_v53  ;;  %v3496_v56 = vadd.f32 %v3420_v36, %v8081_v48  ;;  %v6001_v14 = vld [vmem:[%s6700_s8 + $0x90] sm:$0xe]  ;;  %v4255_v20 = vor.u32 %v4254_v47, %v4251_v2  ;;  %v4268_v32 = vshll.u32 %v6259_v57, 16  ;;  %v6355_v48 = vld [vmem:[%s6700_s8 + $0xa4] sm:$0x1] }
 0x203   : > { %v5067_v41 = vpop.f32.mrf.mxu0  ;;  %v4265_v36 = vor.u32 %v4264_v21, %v7865_v22  ;;  %v3212_v2 = vrot.slane %v3210_v60, 4  ;;  %v3213_v47 = vrot.slane %v6003_v40, 5  ;;  %v6379_v29 = vrot.slane %v6353_v5, 9 }
 0x204   : > { %v5142_v51 = vadd.f32 %v5065_v62, %v4620_v46  ;;  %v4459_v46 = vpack.c.b16 %v4438_v35, %v4437_v55  ;;  %v4256_v55 = vrot.slane %v4255_v20, 4  ;;  %v6260_v35 = vld [vmem:[%s6700_s8 + $0xa8] sm:$0xf]  ;;  %v4860_v21 = vrot.slane %v6355_v48, 5 }
 0x206   : > { %5238 = vst [vmem:[%s7832_s7 + $0x10] sm:$0xff] %v5142_v51  ;;  %v5269_v4 = vadd.f32 %v5268_v37, %v5142_v51  ;;  %v5308_v6 = vmul.f32 %v5142_v51, %v5142_v51  ;;  %v4981_v37 = vpack.c.b16 %v4960_v63, %v4959_v31  ;;  %v4266_v31 = vrot.slane %v4265_v36, 4 }
 0x207   : > { %v3799_v62 = vpop.f32.mrf.mxu2  ;;  %v4270_v63 = vrot.slane %v4268_v32, 5 }
 0x208   : > { %v5339_v17 = vadd.f32 %v5338_v18, %v5308_v6  ;;  %v3875_v53 = vadd.f32 %v3799_v62, %v3496_v56  ;;  %v4545_v49 = vpop.f32.mrf.mxu3  ;;  %v4857_v18 = vrot.slane %v6354_v45, 5  ;;  %v6027_v6 = vrot.slane %v6001_v14, 9 }
 0x209   : > { %v3423_v54 = vpop.f32.mrf.mxu1 }
 0x20a   : > { %v4621_v51 = vadd.f32 %v4545_v49, %v3875_v53  ;;  %v3497_v45 = vadd.f32 %v3423_v54, %v7362_v23  ;;  %v4859_v53 = vrot.slane %v4857_v18, 4  ;;  %v4273_v49 = vshrl.u32 %v6260_v35, 16 }
 0x20b   : > { %v5070_v7 = vpop.f32.mrf.mxu0  ;;  %v4261_v23 = vsel %vm6844_vm4, %v4256_v55, %v7865_v22 }
 0x20c   : > { %v5143_v56 = vadd.f32 %v5067_v41, %v4621_v51  ;;  %3462 = vmatmul.bf16.gmra.mxu1 %v3334_v42  ;;  %3841 = vmatmul.bf16.gmra.mxu2 %v6525_v0  ;;  %v6261_v41 = vld [vmem:[%s6700_s8 + $0xac] sm:$0xf]  ;;  %v4276_v0 = vshll.u32 %v6260_v35, 16  ;;  %v4861_v5 = vsel %vm6851_vm5, %v4859_v53, %v4860_v21  ;;  %v6005_v35 = vld [vmem:[%s6700_s8 + $0xa0] sm:$0xf] }
 0x20d   : > { %4587 = vmatmul.bf16.gmra.mxu3 %v4459_v46  ;;  %v3211_v46 = vsel %vm6851_vm5, %v6027_v6, %v3210_v60  ;;  %v4282_v54 = vshll.u32 %v6261_v41, 16  ;;  %v4286_v32 = vshrl.u32 %v6261_v41, 16  ;;  %v4858_v60 = vsel %vm6851_vm5, %v6379_v29, %v4857_v18  ;;  %v6262_v53 = vld [vmem:[%s6700_s8 + $0xb0] sm:$0x1] }
 0x20e   : > { %5109 = vmatmul.bf16.gmra.mxu0 %v4981_v37  ;;  %5239 = vst [vmem:[%s7832_s7 + $0x18] sm:$0xff] %v5143_v56  ;;  %v5270_v57 = vadd.f32 %v5269_v4, %v5143_v56  ;;  %v5309_v62 = vmul.f32 %v5143_v56, %v5143_v56  ;;  %v3214_v37 = vsel %vm6851_vm5, %v3212_v2, %v3213_v47  ;;  %v3314_v48 = vunpack.c.l.b16 %v3211_v46 }
 0x20f   : > { %v3802_v42 = vpop.f32.mrf.mxu2  ;;  %v4271_v4 = vsel %vm6844_vm4, %v4266_v31, %v4270_v63  ;;  %v4275_v6 = vrot.slane %v4273_v49, 4  ;;  %v4278_v56 = vrot.slane %v4276_v0, 5  ;;  %v3315_v22 = vunpack.c.l.b16 %v3214_v37  ;;  %v6357_v49 = vld [vmem:[%s6700_s8 + $0xac] sm:$0xf]  ;;  %v6526_v37 = vld [vmem:[%s6700_s8 + $0x9c] sm:$0xff] }
 0x210   : > { %v5340_v14 = vadd.f32 %v5339_v17, %v5309_v62  ;;  %v3876_v40 = vadd.f32 %v3802_v42, %v3497_v45  ;;  %v4548_v20 = vpop.f32.mrf.mxu3  ;;  %v4439_v47 = vunpack.c.l.b16 %v4261_v23  ;;  %v4440_v55 = vunpack.c.l.b16 %v4271_v4  ;;  %v6004_v23 = vld [vmem:[%s6700_s8 + $0x9c] sm:$0xe]  ;;  %v6006_v4 = vld [vmem:[%s6700_s8 + $0xa4] sm:$0x1] }
 0x211   : > { %v3425_v36 = vpop.f32.mrf.mxu1  ;;  %v4961_v31 = vunpack.c.l.b16 %v4858_v60  ;;  %v4962_v63 = vunpack.c.l.b16 %v4861_v5  ;;  %v7895_v62 = vrot.slane %v4282_v54, 5  ;;  %v4288_v18 = vrot.slane %v4286_v32, 4  ;;  %v6356_v5 = vld [vmem:[%s6700_s8 + $0xa8] sm:$0xe] }
 0x212   : > { %v4622_v17 = vadd.f32 %v4548_v20, %v3876_v40  ;;  %v3498_v45 = vadd.f32 %v3425_v36, %v7364_v10  ;;  %v3217_v41 = vrot.slane %v6005_v35, 5  ;;  %v4279_v42 = vor.u32 %v4278_v56, %v4275_v6  ;;  %v6358_v6 = vld [vmem:[%s6700_s8 + $0xb0] sm:$0x1] }
 0x213   : > { %v5072_v51 = vpop.f32.mrf.mxu0  ;;  %v3335_v46 = vpack.c.b16 %v3315_v22, %v3314_v48  ;;  %v4460_v32 = vpack.c.b16 %v4440_v55, %v4439_v47  ;;  %v4292_v10 = vshll.u32 %v6262_v53, 16  ;;  %v4864_v56 = vrot.slane %v6357_v49, 5  ;;  %v6264_v49 = vld [vmem:[%s6700_s8 + $0xb8] sm:$0xf] }
 0x214   : > { %v5144_v2 = vadd.f32 %v5070_v7, %v4622_v17  ;;  %v4289_v17 = vor.u32 %v4288_v18, %v7895_v62  ;;  %v3220_v35 = vrot.slane %v6006_v4, 5  ;;  %v4280_v48 = vrot.slane %v4279_v42, 4  ;;  %v6263_v18 = vld [vmem:[%s6700_s8 + $0xb4] sm:$0xf] }
 0x215   : > { %v4294_v55 = vrot.slane %v4292_v10, 5  ;;  %v4300_v4 = vshll.u32 %v6263_v18, 16 }
 0x216   : > { %5240 = vst [vmem:[%s7832_s7 + $0x20] sm:$0xff] %v5144_v2  ;;  %v5271_v29 = vadd.f32 %v5270_v57, %v5144_v2  ;;  %v5310_v21 = vmul.f32 %v5144_v2, %v5144_v2  ;;  %v4982_v57 = vpack.c.b16 %v4962_v63, %v4961_v31  ;;  %v3219_v2 = vrot.slane %v3217_v41, 4 }
 0x217   : > { %v3804_v7 = vpop.f32.mrf.mxu2  ;;  %v4290_v47 = vrot.slane %v4289_v17, 4  ;;  %v6380_v31 = vrot.slane %v6356_v5, 9  ;;  %v4867_v63 = vrot.slane %v6358_v6, 5 }
 0x218   : > { %v5341_v0 = vadd.f32 %v5340_v14, %v5310_v21  ;;  %v3877_v40 = vadd.f32 %v3804_v7, %v3498_v45  ;;  %v4550_v20 = vpop.f32.mrf.mxu3  ;;  %v6028_v14 = vrot.slane %v6004_v23, 9  ;;  %v4866_v7 = vrot.slane %v4864_v56, 4 }
 0x219   : > { %v3428_v54 = vpop.f32.mrf.mxu1  ;;  %v3221_v42 = vsel %vm6851_vm5, %v3219_v2, %v3220_v35  ;;  %v4865_v10 = vsel %vm6851_vm5, %v6380_v31, %v4864_v56  ;;  %v4302_v35 = vrot.slane %v4300_v4, 5 }
 0x21a   : > { %v4623_v36 = vadd.f32 %v4550_v20, %v3877_v40  ;;  %v3499_v53 = vadd.f32 %v3428_v54, %v7401_v16  ;;  %v4285_v20 = vsel %vm6844_vm4, %v4280_v48, %v7895_v62  ;;  %v4295_v16 = vsel %vm6844_vm4, %v4290_v47, %v4294_v55  ;;  %v6008_v47 = vld [vmem:[%s6700_s8 + $0xac] sm:$0xf] }
 0x21b   : > { %v5075_v60 = vpop.f32.mrf.mxu0  ;;  %v4306_v54 = vshll.u32 %v6264_v49, 16  ;;  %v4868_v62 = vsel %vm6851_vm5, %v4866_v7, %v4867_v63  ;;  %v4441_v5 = vunpack.c.l.b16 %v4285_v20  ;;  %v4963_v48 = vunpack.c.l.b16 %v4865_v10  ;;  %v6527_v20 = vld [vmem:[%s6700_s8 + $0xa8] sm:$0xff] }
 0x21c   : > { %v5145_v22 = vadd.f32 %v5072_v51, %v4623_v36  ;;  %3467 = vmatmul.bf16.gmra.mxu1 %v3335_v46  ;;  %3846 = vmatmul.bf16.gmra.mxu2 %v6526_v37  ;;  %v3218_v51 = vsel %vm6851_vm5, %v6028_v14, %v3217_v41  ;;  %v3317_v36 = vunpack.c.l.b16 %v3221_v42  ;;  %v4442_v14 = vunpack.c.l.b16 %v4295_v16 }
 0x21d   : > { %4592 = vmatmul.bf16.gmra.mxu3 %v4460_v32  ;;  %v7925_v55 = vrot.slane %v4306_v54, 5  ;;  %v6009_v54 = vld [vmem:[%s6700_s8 + $0xb0] sm:$0x1] }
 0x21e   : > { %5114 = vmatmul.bf16.gmra.mxu0 %v4982_v57  ;;  %5241 = vst [vmem:[%s7832_s7 + $0x28] sm:$0xff] %v5145_v22  ;;  %v5272_v21 = vadd.f32 %v5271_v29, %v5145_v22  ;;  %v5311_v45 = vmul.f32 %v5145_v22, %v5145_v22  ;;  %v4297_v29 = vshrl.u32 %v6263_v18, 16  ;;  %v4310_v57 = vshrl.u32 %v6264_v49, 16  ;;  %v8082_v18 = vld [vmem:[#allocation9_spill] sm:$0xff]  ;;  %v6360_v49 = vld [vmem:[%s6700_s8 + $0xb8] sm:$0xf] }
 0x21f   : > { %v3807_v40 = vpop.f32.mrf.mxu2  ;;  %v4964_v22 = vunpack.c.l.b16 %v4868_v62  ;;  %v4461_v16 = vpack.c.b16 %v4442_v14, %v4441_v5  ;;  %v6359_v62 = vld [vmem:[%s6700_s8 + $0xb4] sm:$0xe]  ;;  %v6266_v14 = vld [vmem:[%s6700_s8 + $0xc0] sm:$0xf] }
 0x220   : > { %v5342_v46 = vadd.f32 %v5341_v0, %v5311_v45  ;;  %v3878_v37 = vadd.f32 %v3807_v40, %v3499_v53  ;;  %v4553_v23 = vpop.f32.mrf.mxu3  ;;  %v3316_v0 = vunpack.c.l.b16 %v3218_v51  ;;  %v4299_v2 = vrot.slane %v4297_v29, 4  ;;  %v6265_v53 = vld [vmem:[%s6700_s8 + $0xbc] sm:$0x1] }
 0x221   : > { %v3430_v32 = vpop.f32.mrf.mxu1  ;;  %v4312_v56 = vrot.slane %v4310_v57, 4  ;;  %v4316_v57 = vshll.u32 %v6265_v53, 16 }
 0x222   : > { %v4624_v41 = vadd.f32 %v4553_v23, %v3878_v37  ;;  %v3500_v45 = vadd.f32 %v3430_v32, %v8082_v18  ;;  %v3336_v7 = vpack.c.b16 %v3317_v36, %v3316_v0  ;;  %v6007_v37 = vld [vmem:[%s6700_s8 + $0xa8] sm:$0xe]  ;;  %v3224_v23 = vrot.slane %v6008_v47, 5  ;;  %v6361_v0 = vld [vmem:[%s6700_s8 + $0xbc] sm:$0x1] }
 0x223   : > { %v5077_v17 = vpop.f32.mrf.mxu0  ;;  %v4303_v29 = vor.u32 %v4302_v35, %v4299_v2  ;;  %v4313_v32 = vor.u32 %v4312_v56, %v7925_v55  ;;  %v6029_v36 = vrot.slane %v6007_v37, 9  ;;  %v3227_v35 = vrot.slane %v6009_v54, 5 }
 0x224   : > { %v5146_v6 = vadd.f32 %v5075_v60, %v4624_v41  ;;  %v3226_v2 = vrot.slane %v3224_v23, 4  ;;  %v6381_v47 = vrot.slane %v6359_v62, 9  ;;  %v4874_v56 = vrot.slane %v6361_v0, 5 }
 0x225   : > { %v4304_v5 = vrot.slane %v4303_v29, 4  ;;  %v3225_v37 = vsel %vm6851_vm5, %v6029_v36, %v3224_v23 }
 0x226   : > { %5242 = vst [vmem:[%s7832_s7 + $0x30] sm:$0xff] %v5146_v6  ;;  %v5273_v31 = vadd.f32 %v5272_v21, %v5146_v6  ;;  %v5312_v63 = vmul.f32 %v5146_v6, %v5146_v6  ;;  %v4983_v21 = vpack.c.b16 %v4964_v22, %v4963_v48  ;;  %v4314_v48 = vrot.slane %v4313_v32, 4 }
 0x227   : > { %v3809_v60 = vpop.f32.mrf.mxu2  ;;  %v4318_v22 = vrot.slane %v4316_v57, 5  ;;  %v3228_v29 = vsel %vm6851_vm5, %v3226_v2, %v3227_v35  ;;  %v3318_v57 = vunpack.c.l.b16 %v3225_v37  ;;  %v6011_v2 = vld [vmem:[%s6700_s8 + $0xb8] sm:$0xf]  ;;  %v6012_v37 = vld [vmem:[%s6700_s8 + $0xbc] sm:$0x1] }
 0x228   : > { %v5343_v40 = vadd.f32 %v5342_v46, %v5312_v63  ;;  %v3879_v51 = vadd.f32 %v3809_v60, %v3500_v45  ;;  %v4555_v42 = vpop.f32.mrf.mxu3  ;;  %v4871_v46 = vrot.slane %v6360_v49, 5  ;;  %v4324_v49 = vshll.u32 %v6266_v14, 16 }
 0x229   : > { %v3433_v4 = vpop.f32.mrf.mxu1 }
 0x22a   : > { %v4625_v41 = vadd.f32 %v4555_v42, %v3879_v51  ;;  %v3501_v45 = vadd.f32 %v3433_v4, %v7451_v24  ;;  %v4873_v53 = vrot.slane %v4871_v46, 4  ;;  %v4309_v24 = vsel %vm6844_vm4, %v4304_v5, %v7925_v55 }
 0x22b   : > { %v5080_v10 = vpop.f32.mrf.mxu0  ;;  %v4872_v23 = vsel %vm6851_vm5, %v6381_v47, %v4871_v46  ;;  %v4326_v62 = vrot.slane %v4324_v49, 5  ;;  %v3319_v55 = vunpack.c.l.b16 %v3228_v29  ;;  %v4443_v36 = vunpack.c.l.b16 %v4309_v24 }
 0x22c   : > { %v5147_v6 = vadd.f32 %v5077_v17, %v4625_v41  ;;  %3472 = vmatmul.bf16.gmra.mxu1 %v3336_v7  ;;  %3851 = vmatmul.bf16.gmra.mxu2 %v6527_v20  ;;  %v6267_v17 = vld [vmem:[%s6700_s8 + $0xc4] sm:$0xf]  ;;  %v4321_v7 = vshrl.u32 %v6266_v14, 16  ;;  %v4875_v32 = vsel %vm6851_vm5, %v4873_v53, %v4874_v56  ;;  %v4965_v35 = vunpack.c.l.b16 %v4872_v23  ;;  %v6268_v56 = vld [vmem:[%s6700_s8 + $0xc8] sm:$0x1] }
 0x22d   : > { %4597 = vmatmul.bf16.gmra.mxu3 %v4461_v16  ;;  %v4330_v4 = vshll.u32 %v6267_v17, 16  ;;  %v4966_v5 = vunpack.c.l.b16 %v4875_v32  ;;  %v6363_v53 = vld [vmem:[%s6700_s8 + $0xc4] sm:$0xf]  ;;  %v3337_v49 = vpack.c.b16 %v3319_v55, %v3318_v57 }
 0x22e   : > { %5119 = vmatmul.bf16.gmra.mxu0 %v4983_v21  ;;  %5243 = vst [vmem:[%s7832_s7 + $0x38] sm:$0xff] %v5147_v6  ;;  %v5274_v63 = vadd.f32 %v5273_v31, %v5147_v6  ;;  %v5313_v18 = vmul.f32 %v5147_v6, %v5147_v6  ;;  %v4319_v31 = vsel %vm6844_vm4, %v4314_v48, %v4318_v22  ;;  %v4334_v21 = vshrl.u32 %v6267_v17, 16 }
 0x22f   : > { %v3812_v60 = vpop.f32.mrf.mxu2  ;;  %v4323_v41 = vrot.slane %v4321_v7, 4  ;;  %v4444_v6 = vunpack.c.l.b16 %v4319_v31  ;;  %v7955_v14 = vrot.slane %v4330_v4, 5  ;;  %v4878_v23 = vrot.slane %v6363_v53, 5 }
 0x230   : > { %v5344_v51 = vadd.f32 %v5343_v40, %v5313_v18  ;;  %v3880_v42 = vadd.f32 %v3812_v60, %v3501_v45  ;;  %v4558_v20 = vpop.f32.mrf.mxu3  ;;  %v4336_v46 = vrot.slane %v4334_v21, 4  ;;  %v3231_v18 = vrot.slane %v6011_v2, 5  ;;  %v6362_v21 = vld [vmem:[%s6700_s8 + $0xc0] sm:$0xe]  ;;  %v6269_v2 = vld [vmem:[%s6700_s8 + $0xcc] sm:$0xf] }
 0x231   : > { %v3435_v16 = vpop.f32.mrf.mxu1  ;;  %v4327_v45 = vor.u32 %v4326_v62, %v4323_v41  ;;  %v4462_v24 = vpack.c.b16 %v4444_v6, %v4443_v36  ;;  %v3234_v41 = vrot.slane %v6012_v37, 5  ;;  %v6382_v36 = vrot.slane %v6362_v21, 9 }
 0x232   : > { %v4626_v40 = vadd.f32 %v4558_v20, %v3880_v42  ;;  %v3502_v47 = vadd.f32 %v3435_v16, %v7453_v44  ;;  %v6528_v42 = vld [vmem:[%s6700_s8 + $0xb4] sm:$0xff]  ;;  %v4337_v31 = vor.u32 %v4336_v46, %v7955_v14  ;;  %v4340_v44 = vshll.u32 %v6268_v56, 16 }
 0x233   : > { %v5082_v54 = vpop.f32.mrf.mxu0  ;;  %v6010_v20 = vld [vmem:[%s6700_s8 + $0xb4] sm:$0xe]  ;;  %v3233_v32 = vrot.slane %v3231_v18, 4  ;;  %v4328_v57 = vrot.slane %v4327_v45, 4 }
 0x234   : > { %v5148_v0 = vadd.f32 %v5080_v10, %v4626_v40  ;;  %v6364_v40 = vld [vmem:[%s6700_s8 + $0xc8] sm:$0x1]  ;;  %v4342_v55 = vrot.slane %v4340_v44, 5 }
 0x235   : > { %v4881_v6 = vrot.slane %v6364_v40, 5  ;;  %v4333_v45 = vsel %vm6844_vm4, %v4328_v57, %v7955_v14 }
 0x236   : > { %5244 = vst [vmem:[%s7832_s7 + $0x40] sm:$0xff] %v5148_v0  ;;  %v5275_v48 = vadd.f32 %v5274_v63, %v5148_v0  ;;  %v5314_v22 = vmul.f32 %v5148_v0, %v5148_v0  ;;  %v4984_v63 = vpack.c.b16 %v4966_v5, %v4965_v35  ;;  %v4338_v0 = vrot.slane %v4337_v31, 4 }
 0x237   : > { %v3814_v10 = vpop.f32.mrf.mxu2  ;;  %v4445_v31 = vunpack.c.l.b16 %v4333_v45 }
 0x238   : > { %v5345_v17 = vadd.f32 %v5344_v51, %v5314_v22  ;;  %v3881_v60 = vadd.f32 %v3814_v10, %v3502_v47  ;;  %v4560_v7 = vpop.f32.mrf.mxu3  ;;  %v6030_v51 = vrot.slane %v6010_v20, 9  ;;  %v4880_v22 = vrot.slane %v4878_v23, 4  ;;  %v6270_v47 = vld [vmem:[%s6700_s8 + $0xd0] sm:$0xf] }
 0x239   : > { %v3438_v29 = vpop.f32.mrf.mxu1  ;;  %v3235_v10 = vsel %vm6851_vm5, %v3233_v32, %v3234_v41  ;;  %v4354_v20 = vshll.u32 %v6270_v47, 16  ;;  %v4358_v37 = vshrl.u32 %v6270_v47, 16  ;;  %v6014_v41 = vld [vmem:[%s6700_s8 + $0xc4] sm:$0xf] }
 0x23a   : > { %v4627_v16 = vadd.f32 %v4560_v7, %v3881_v60  ;;  %v3503_v46 = vadd.f32 %v3438_v29, %v7478_v27  ;;  %v4343_v27 = vsel %vm6844_vm4, %v4338_v0, %v4342_v55  ;;  %v4882_v14 = vsel %vm6851_vm5, %v4880_v22, %v4881_v6  ;;  %v6529_v47 = vld [vmem:[%s6700_s8 + $0xc0] sm:$0xff] }
 0x23b   : > { %v5085_v4 = vpop.f32.mrf.mxu0  ;;  %v4968_v32 = vunpack.c.l.b16 %v4882_v14  ;;  %v4356_v57 = vrot.slane %v4354_v20, 5  ;;  %v6367_v20 = vld [vmem:[%s6700_s8 + $0xd4] sm:$0x1] }
 0x23c   : > { %v5149_v62 = vadd.f32 %v5082_v54, %v4627_v16  ;;  %3477 = vmatmul.bf16.gmra.mxu1 %v3337_v49  ;;  %3856 = vmatmul.bf16.gmra.mxu2 %v6528_v42  ;;  %v3232_v54 = vsel %vm6851_vm5, %v6030_v51, %v3231_v18  ;;  %v4348_v49 = vshll.u32 %v6269_v2, 16  ;;  %v4446_v16 = vunpack.c.l.b16 %v4343_v27  ;;  %v6365_v27 = vld [vmem:[%s6700_s8 + $0xcc] sm:$0xe] }
 0x23d   : > { %4602 = vmatmul.bf16.gmra.mxu3 %v4462_v24  ;;  %v4879_v24 = vsel %vm6851_vm5, %v6382_v36, %v4878_v23  ;;  %v6271_v36 = vld [vmem:[%s6700_s8 + $0xd4] sm:$0x1] }
 0x23e   : > { %5124 = vmatmul.bf16.gmra.mxu0 %v4984_v63  ;;  %5245 = vst [vmem:[%s7832_s7 + $0x48] sm:$0xff] %v5149_v62  ;;  %v5276_v35 = vadd.f32 %v5275_v48, %v5149_v62  ;;  %v5315_v5 = vmul.f32 %v5149_v62, %v5149_v62  ;;  %v4345_v48 = vshrl.u32 %v6269_v2, 16  ;;  %v3321_v63 = vunpack.c.l.b16 %v3235_v10  ;;  %v6366_v2 = vld [vmem:[%s6700_s8 + $0xd0] sm:$0xf] }
 0x23f   : > { %v3817_v56 = vpop.f32.mrf.mxu2  ;;  %v4350_v40 = vrot.slane %v4348_v49, 5  ;;  %v4967_v51 = vunpack.c.l.b16 %v4879_v24  ;;  %v4360_v62 = vrot.slane %v4358_v37, 4  ;;  %v4364_v49 = vshll.u32 %v6271_v36, 16 }
 0x240   : > { %v5346_v53 = vadd.f32 %v5345_v17, %v5315_v5  ;;  %v3882_v60 = vadd.f32 %v3817_v56, %v3503_v46  ;;  %v4563_v7 = vpop.f32.mrf.mxu3  ;;  %v3320_v17 = vunpack.c.l.b16 %v3232_v54  ;;  %v4347_v21 = vrot.slane %v4345_v48, 4  ;;  %v6013_v56 = vld [vmem:[%s6700_s8 + $0xc0] sm:$0xe] }
 0x241   : > { %v3440_v42 = vpop.f32.mrf.mxu1  ;;  %v3238_v54 = vrot.slane %v6014_v41, 5  ;;  %v4361_v48 = vor.u32 %v4360_v62, %v4356_v57  ;;  %v4885_v37 = vrot.slane %v6366_v2, 5 }
 0x242   : > { %v4628_v18 = vadd.f32 %v4563_v7, %v3882_v60  ;;  %v3504_v55 = vadd.f32 %v3440_v42, %v7491_v50  ;;  %v4351_v10 = vor.u32 %v4350_v40, %v4347_v21  ;;  %v4463_v60 = vpack.c.b16 %v4446_v16, %v4445_v31  ;;  %v6015_v7 = vld [vmem:[%s6700_s8 + $0xc8] sm:$0x1] }
 0x243   : > { %v5087_v29 = vpop.f32.mrf.mxu0  ;;  %v3240_v24 = vrot.slane %v3238_v54, 4  ;;  %v3241_v14 = vrot.slane %v6015_v7, 5  ;;  %v4366_v31 = vrot.slane %v4364_v49, 5  ;;  %v4888_v16 = vrot.slane %v6367_v20, 5 }
 0x244   : > { %v5150_v44 = vadd.f32 %v5085_v4, %v4628_v18  ;;  %v3338_v4 = vpack.c.b16 %v3321_v63, %v3320_v17  ;;  %v4352_v17 = vrot.slane %v4351_v10, 4  ;;  %v4362_v63 = vrot.slane %v4361_v48, 4 }
 0x246   : > { %5246 = vst [vmem:[%s7832_s7 + $0x50] sm:$0xff] %v5150_v44  ;;  %v5277_v23 = vadd.f32 %v5276_v35, %v5150_v44  ;;  %v5316_v0 = vmul.f32 %v5150_v44, %v5150_v44  ;;  %v4985_v35 = vpack.c.b16 %v4968_v32, %v4967_v51  ;;  %v6383_v44 = vrot.slane %v6365_v27, 9  ;;  %v6530_v27 = vld [vmem:[%s6700_s8 + $0xcc] sm:$0xff]  ;;  %s5519_s8 = sshll.u32 %s8088_s12, 1 }
 0x247   : > { %v3819_v6 = vpop.f32.mrf.mxu2  ;;  %v4887_v32 = vrot.slane %v4885_v37, 4  ;;  %s226_s11 = scalar_lea.vmem %s8064_s3, %s5519_s8 }
 0x248   : > { %v5347_v5 = vadd.f32 %v5346_v53, %v5316_v0  ;;  %v3883_v46 = vadd.f32 %v3819_v6, %v3504_v55  ;;  %v4565_v22 = vpop.f32.mrf.mxu3  ;;  %v6031_v53 = vrot.slane %v6013_v56, 9  ;;  %v3242_v6 = vsel %vm6851_vm5, %v3240_v24, %v3241_v14 }
 0x249   : > { %v3443_v45 = vpop.f32.mrf.mxu1  ;;  %v3323_v56 = vunpack.c.l.b16 %v3242_v6 }
 0x24a   : > { %v4629_v50 = vadd.f32 %v4565_v22, %v3883_v46  ;;  %v3505_v51 = vadd.f32 %v3443_v45, %v7512_v58  ;;  %v3239_v36 = vsel %vm6851_vm5, %v6031_v53, %v3238_v54  ;;  %v4367_v58 = vsel %vm6844_vm4, %v4362_v63, %v4366_v31 }
 0x24b   : > { %v5090_v42 = vpop.f32.mrf.mxu0  ;;  %v4889_v46 = vsel %vm6851_vm5, %v4887_v32, %v4888_v16  ;;  %v4448_v10 = vunpack.c.l.b16 %v4367_v58 }
 0x24c   : > { %v5151_v18 = vadd.f32 %v5087_v29, %v4629_v50  ;;  %3482 = vmatmul.bf16.gmra.mxu1 %v3338_v4  ;;  %3861 = vmatmul.bf16.gmra.mxu2 %v6529_v47  ;;  %v4357_v4 = vsel %vm6844_vm4, %v4352_v17, %v4356_v57  ;;  %v3322_v47 = vunpack.c.l.b16 %v3239_v36 }
 0x24d   : > { %4607 = vmatmul.bf16.gmra.mxu3 %v4463_v60  ;;  %v4447_v54 = vunpack.c.l.b16 %v4357_v4  ;;  %v4970_v60 = vunpack.c.l.b16 %v4889_v46 }
 0x24e   : > { %5129 = vmatmul.bf16.gmra.mxu0 %v4985_v35  ;;  %5247 = vst [vmem:[%s7832_s7 + $0x58] sm:$0xff] %v5151_v18  ;;  %v5278_v21 = vadd.f32 %v5277_v23, %v5151_v18  ;;  %v5317_v40 = vmul.f32 %v5151_v18, %v5151_v18  ;;  %v3339_v38 = vpack.c.b16 %v3323_v56, %v3322_v47 }
 0x24f   : > { %v3822_v41 = vpop.f32.mrf.mxu2  ;;  %v4464_v20 = vpack.c.b16 %v4448_v10, %v4447_v54 }
 0x250   : > { %v5348_v62 = vadd.f32 %v5347_v5, %v5317_v40  ;;  %v3884_v29 = vadd.f32 %v3822_v41, %v3505_v51  ;;  %v4568_v0 = vpop.f32.mrf.mxu3  ;;  %v4886_v5 = vsel %vm6851_vm5, %v6383_v44, %v4885_v37 }
 0x251   : > { %v3445_v55 = vpop.f32.mrf.mxu1  ;;  %v4969_v45 = vunpack.c.l.b16 %v4886_v5 }
 0x252   : > { %v4630_v23 = vadd.f32 %v4568_v0, %v3884_v29  ;;  %v3506_v33 = vadd.f32 %v3445_v55, %v7522_v25 }
 0x253   : > { %v5092_v2 = vpop.f32.mrf.mxu0  ;;  %v4986_v37 = vpack.c.b16 %v4970_v60, %v4969_v45 }
 0x254   : > { %v5152_v22 = vadd.f32 %v5090_v42, %v4630_v23 }
 0x256   : > { %5248 = vst [vmem:[%s7832_s7 + $0x60] sm:$0xff] %v5152_v22  ;;  %v5279_v57 = vadd.f32 %v5278_v21, %v5152_v22  ;;  %v5318_v35 = vmul.f32 %v5152_v22, %v5152_v22 }
 0x257   : > { %v3824_v7 = vpop.f32.mrf.mxu2 }
 0x258   : > { %v5349_v48 = vadd.f32 %v5348_v62, %v5318_v35  ;;  %v3885_v49 = vadd.f32 %v3824_v7, %v3506_v33  ;;  %v4570_v50 = vpop.f32.mrf.mxu3 }
 0x259   : > { %v3448_v42 = vpop.f32.mrf.mxu1 }
 0x25a   : > { %v4631_v53 = vadd.f32 %v4570_v50, %v3885_v49  ;;  %v3507_v17 = vadd.f32 %v3448_v42, %v7540_v15 }
 0x25b   : > { %v5095_v18 = vpop.f32.mrf.mxu0 }
 0x25c   : > { %v5153_v24 = vadd.f32 %v5092_v2, %v4631_v53  ;;  %3487 = vmatmul.bf16.gmra.mxu1 %v3339_v38  ;;  %3866 = vmatmul.bf16.gmra.mxu2 %v6530_v27 }
 0x25d   : > { %4612 = vmatmul.bf16.gmra.mxu3 %v4464_v20 }
 0x25e   : > { %5134 = vmatmul.bf16.gmra.mxu0 %v4986_v37  ;;  %5249 = vst [vmem:[%s7832_s7 + $0x68] sm:$0xff] %v5153_v24  ;;  %v5280_v25 = vadd.f32 %v5279_v57, %v5153_v24  ;;  %v5319_v14 = vmul.f32 %v5153_v24, %v5153_v24 }
 0x25f   : > { %v3827_v63 = vpop.f32.mrf.mxu2 }
 0x260   : > { %v5350_v31 = vadd.f32 %v5349_v48, %v5319_v14  ;;  %v3886_v44 = vadd.f32 %v3827_v63, %v3507_v17  ;;  %v4573_v16 = vpop.f32.mrf.mxu3 }
 0x261   : > { %v3450_v21 = vpop.f32.mrf.mxu1 }
 0x262   : > { %v4632_v40 = vadd.f32 %v4573_v16, %v3886_v44  ;;  %v3508_v29 = vadd.f32 %v3450_v21, %v7556_v52 }
 0x263   : > { %v5097_v51 = vpop.f32.mrf.mxu0 }
 0x264   : > { %v5154_v32 = vadd.f32 %v5095_v18, %v4632_v40 }
 0x266   : > { %5250 = vst [vmem:[%s7832_s7 + $0x70] sm:$0xff] %v5154_v32  ;;  %v5281_v41 = vadd.f32 %v5280_v25, %v5154_v32  ;;  %v5320_v62 = vmul.f32 %v5154_v32, %v5154_v32 }
 0x267   : > { %v3829_v0 = vpop.f32.mrf.mxu2 }
 0x268   : > { %v5351_v55 = vadd.f32 %v5350_v31, %v5320_v62  ;;  %v3887_v36 = vadd.f32 %v3829_v0, %v3508_v29  ;;  %v4575_v6 = vpop.f32.mrf.mxu3 }
 0x269   : > { %v3453_v4 = vpop.f32.mrf.mxu1 }
 0x26a   : > { %v4633_v15 = vadd.f32 %v4575_v6, %v3887_v36  ;;  %v3509_v46 = vadd.f32 %v3453_v4, %v7576_v11 }
 0x26b   : > { %v5100_v23 = vpop.f32.mrf.mxu0 }
 0x26c   : > { %v5155_v2 = vadd.f32 %v5097_v51, %v4633_v15 }
 0x26e   : > { %5251 = vst [vmem:[%s7832_s7 + $0x78] sm:$0xff] %v5155_v2  ;;  %v5282_v58 = vadd.f32 %v5281_v41, %v5155_v2  ;;  %v5321_v5 = vmul.f32 %v5155_v2, %v5155_v2 }
 0x26f   : > { %v3832_v22 = vpop.f32.mrf.mxu2 }
 0x270   : > { %v5352_v47 = vadd.f32 %v5351_v55, %v5321_v5  ;;  %v3888_v56 = vadd.f32 %v3832_v22, %v3509_v46  ;;  %v4578_v54 = vpop.f32.mrf.mxu3 }
 0x271   : > { %v3455_v10 = vpop.f32.mrf.mxu1 }
 0x272   : > { %v4634_v52 = vadd.f32 %v4578_v54, %v3888_v56  ;;  %v3510_v33 = vadd.f32 %v3455_v10, %v7586_v12 }
 0x273   : > { %v5102_v45 = vpop.f32.mrf.mxu0 }
 0x274   : > { %v5156_v60 = vadd.f32 %v5100_v23, %v4634_v52 }
 0x276   : > { %5252 = vst [vmem:[%s7832_s7 + $0x80] sm:$0xff] %v5156_v60  ;;  %v5283_v57 = vadd.f32 %v5282_v58, %v5156_v60  ;;  %v5322_v35 = vmul.f32 %v5156_v60, %v5156_v60 }
 0x277   : > { %v3834_v7 = vpop.f32.mrf.mxu2 }
 0x278   : > { %v5353_v48 = vadd.f32 %v5352_v47, %v5322_v35  ;;  %v3889_v49 = vadd.f32 %v3834_v7, %v3510_v33  ;;  %v4580_v50 = vpop.f32.mrf.mxu3 }
 0x279   : > { %v3458_v38 = vpop.f32.mrf.mxu1 }
 0x27a   : > { %v4635_v11 = vadd.f32 %v4580_v50, %v3889_v49  ;;  %v3511_v53 = vadd.f32 %v3458_v38, %v7604_v28 }
 0x27b   : > { %v5105_v27 = vpop.f32.mrf.mxu0 }
 0x27c   : > { %v5157_v42 = vadd.f32 %v5102_v45, %v4635_v11 }
 0x27e   : > { %5253 = vst [vmem:[%s7832_s7 + $0x88] sm:$0xff] %v5157_v42  ;;  %v5284_v20 = vadd.f32 %v5283_v57, %v5157_v42  ;;  %v5323_v37 = vmul.f32 %v5157_v42, %v5157_v42 }
 0x27f   : > { %v3837_v18 = vpop.f32.mrf.mxu2 }
 0x280   : > { %v5354_v24 = vadd.f32 %v5353_v48, %v5323_v37  ;;  %v3890_v25 = vadd.f32 %v3837_v18, %v3511_v53  ;;  %v4583_v14 = vpop.f32.mrf.mxu3 }
 0x281   : > { %v3460_v17 = vpop.f32.mrf.mxu1 }
 0x282   : > { %v4636_v12 = vadd.f32 %v4583_v14, %v3890_v25  ;;  %v3512_v21 = vadd.f32 %v3460_v17, %v7620_v13 }
 0x283   : > { %v5107_v63 = vpop.f32.mrf.mxu0 }
 0x284   : > { %v5158_v31 = vadd.f32 %v5105_v27, %v4636_v12 }
 0x286   : > { %5254 = vst [vmem:[%s7832_s7 + $0x90] sm:$0xff] %v5158_v31  ;;  %v5285_v44 = vadd.f32 %v5284_v20, %v5158_v31  ;;  %v5324_v16 = vmul.f32 %v5158_v31, %v5158_v31 }
 0x287   : > { %v3839_v40 = vpop.f32.mrf.mxu2 }
 0x288   : > { %v5355_v51 = vadd.f32 %v5354_v24, %v5324_v16  ;;  %v3891_v32 = vadd.f32 %v3839_v40, %v3512_v21  ;;  %v4585_v41 = vpop.f32.mrf.mxu3 }
 0x289   : > { %v3463_v62 = vpop.f32.mrf.mxu1 }
 0x28a   : > { %v4637_v28 = vadd.f32 %v4585_v41, %v3891_v32  ;;  %v3513_v6 = vadd.f32 %v3463_v62, %v7640_v8 }
 0x28b   : > { %v5110_v29 = vpop.f32.mrf.mxu0 }
 0x28c   : > { %v5159_v0 = vadd.f32 %v5107_v63, %v4637_v28 }
 0x28e   : > { %5255 = vst [vmem:[%s7832_s7 + $0x98] sm:$0xff] %v5159_v0  ;;  %v5286_v55 = vadd.f32 %v5285_v44, %v5159_v0  ;;  %v5325_v36 = vmul.f32 %v5159_v0, %v5159_v0 }
 0x28f   : > { %v3842_v4 = vpop.f32.mrf.mxu2 }
 0x290   : > { %v5356_v15 = vadd.f32 %v5355_v51, %v5325_v36  ;;  %v3892_v23 = vadd.f32 %v3842_v4, %v3513_v6  ;;  %v4588_v2 = vpop.f32.mrf.mxu3 }
 0x291   : > { %v3465_v58 = vpop.f32.mrf.mxu1 }
 0x292   : > { %v4638_v13 = vadd.f32 %v4588_v2, %v3892_v23  ;;  %v3514_v56 = vadd.f32 %v3465_v58, %v7650_v61 }
 0x293   : > { %v5112_v5 = vpop.f32.mrf.mxu0 }
 0x294   : > { %v5160_v46 = vadd.f32 %v5110_v29, %v4638_v13 }
 0x296   : > { %5256 = vst [vmem:[%s7832_s7 + $0xa0] sm:$0xff] %v5160_v46  ;;  %v5287_v22 = vadd.f32 %v5286_v55, %v5160_v46  ;;  %v5326_v47 = vmul.f32 %v5160_v46, %v5160_v46 }
 0x297   : > { %v3844_v54 = vpop.f32.mrf.mxu2 }
 0x298   : > { %v5357_v10 = vadd.f32 %v5356_v15, %v5326_v47  ;;  %v3893_v52 = vadd.f32 %v3844_v54, %v3514_v56  ;;  %v4590_v45 = vpop.f32.mrf.mxu3 }
 0x299   : > { %v3468_v60 = vpop.f32.mrf.mxu1 }
 0x29a   : > { %v4639_v8 = vadd.f32 %v4590_v45, %v3893_v52  ;;  %v3515_v48 = vadd.f32 %v3468_v60, %v7668_v30 }
 0x29b   : > { %v5115_v57 = vpop.f32.mrf.mxu0 }
 0x29c   : > { %v5161_v35 = vadd.f32 %v5112_v5, %v4639_v8 }
 0x29e   : > { %5257 = vst [vmem:[%s7832_s7 + $0xa8] sm:$0xff] %v5161_v35  ;;  %v5288_v33 = vadd.f32 %v5287_v22, %v5161_v35  ;;  %v5327_v7 = vmul.f32 %v5161_v35, %v5161_v35 }
 0x29f   : > { %v3847_v49 = vpop.f32.mrf.mxu2 }
 0x2a0   : > { %v5358_v50 = vadd.f32 %v5357_v10, %v5327_v7  ;;  %v3894_v38 = vadd.f32 %v3847_v49, %v3515_v48  ;;  %v4593_v11 = vpop.f32.mrf.mxu3 }
 0x2a1   : > { %v3470_v27 = vpop.f32.mrf.mxu1 }
 0x2a2   : > { %v4640_v61 = vadd.f32 %v4593_v11, %v3894_v38  ;;  %v3516_v18 = vadd.f32 %v3470_v27, %v7684_v9 }
 0x2a3   : > { %v5117_v42 = vpop.f32.mrf.mxu0 }
 0x2a4   : > { %v5162_v20 = vadd.f32 %v5115_v57, %v4640_v61 }
 0x2a6   : > { %5258 = vst [vmem:[%s7832_s7 + $0xb0] sm:$0xff] %v5162_v20  ;;  %v5289_v37 = vadd.f32 %v5288_v33, %v5162_v20  ;;  %v5328_v53 = vmul.f32 %v5162_v20, %v5162_v20 }
 0x2a7   : > { %v3849_v24 = vpop.f32.mrf.mxu2 }
 0x2a8   : > { %v5359_v25 = vadd.f32 %v5358_v50, %v5328_v53  ;;  %v3895_v14 = vadd.f32 %v3849_v24, %v3516_v18  ;;  %v4595_v17 = vpop.f32.mrf.mxu3 }
 0x2a9   : > { %v3473_v12 = vpop.f32.mrf.mxu1 }
 0x2aa   : > { %v4641_v30 = vadd.f32 %v4595_v17, %v3895_v14  ;;  %v3517_v21 = vadd.f32 %v3473_v12, %v7704_v43 }
 0x2ab   : > { %v5120_v63 = vpop.f32.mrf.mxu0 }
 0x2ac   : > { %v5163_v31 = vadd.f32 %v5117_v42, %v4641_v30 }
 0x2ae   : > { %5259 = vst [vmem:[%s7832_s7 + $0xb8] sm:$0xff] %v5163_v31  ;;  %v5290_v44 = vadd.f32 %v5289_v37, %v5163_v31  ;;  %v5329_v16 = vmul.f32 %v5163_v31, %v5163_v31 }
 0x2af   : > { %v3852_v40 = vpop.f32.mrf.mxu2 }
 0x2b0   : > { %v5360_v51 = vadd.f32 %v5359_v25, %v5329_v16  ;;  %v3896_v32 = vadd.f32 %v3852_v40, %v3517_v21  ;;  %v4598_v41 = vpop.f32.mrf.mxu3 }
 0x2b1   : > { %v3475_v62 = vpop.f32.mrf.mxu1 }
 0x2b2   : > { %v4642_v9 = vadd.f32 %v4598_v41, %v3896_v32  ;;  %v3518_v36 = vadd.f32 %v3475_v62, %v7714_v26 }
 0x2b3   : > { %v5122_v28 = vpop.f32.mrf.mxu0 }
 0x2b4   : > { %v5164_v29 = vadd.f32 %v5120_v63, %v4642_v9 }
 0x2b6   : > { %5260 = vst [vmem:[%s7832_s7 + $0xc0] sm:$0xff] %v5164_v29  ;;  %v5291_v0 = vadd.f32 %v5290_v44, %v5164_v29  ;;  %v5330_v55 = vmul.f32 %v5164_v29, %v5164_v29 }
 0x2b7   : > { %v3854_v6 = vpop.f32.mrf.mxu2 }
 0x2b8   : > { %v5361_v4 = vadd.f32 %v5360_v51, %v5330_v55  ;;  %v3897_v15 = vadd.f32 %v3854_v6, %v3518_v36  ;;  %v4600_v23 = vpop.f32.mrf.mxu3 }
 0x2b9   : > { %v3478_v2 = vpop.f32.mrf.mxu1 }
 0x2ba   : > { %v4643_v43 = vadd.f32 %v4600_v23, %v3897_v15  ;;  %v3519_v22 = vadd.f32 %v3478_v2, %v7732_v1 }
 0x2bb   : > { %v5125_v58 = vpop.f32.mrf.mxu0 }
 0x2bc   : > { %v5165_v13 = vadd.f32 %v5122_v28, %v4643_v43 }
 0x2be   : > { %5261 = vst [vmem:[%s7832_s7 + $0xc8] sm:$0xff] %v5165_v13  ;;  %v5292_v5 = vadd.f32 %v5291_v0, %v5165_v13  ;;  %v5331_v46 = vmul.f32 %v5165_v13, %v5165_v13 }
 0x2bf   : > { %v3857_v47 = vpop.f32.mrf.mxu2 }
 0x2c0   : > { %v5362_v56 = vadd.f32 %v5361_v4, %v5331_v46  ;;  %v3898_v54 = vadd.f32 %v3857_v47, %v3519_v22  ;;  %v4603_v10 = vpop.f32.mrf.mxu3 }
 0x2c1   : > { %v3480_v52 = vpop.f32.mrf.mxu1 }
 0x2c2   : > { %v4644_v26 = vadd.f32 %v4603_v10, %v3898_v54  ;;  %v3520_v35 = vadd.f32 %v3480_v52, %v7748_v39 }
 0x2c3   : > { %v5127_v45 = vpop.f32.mrf.mxu0 }
 0x2c4   : > { %v5166_v60 = vadd.f32 %v5125_v58, %v4644_v26 }
 0x2c6   : > { %5262 = vst [vmem:[%s7832_s7 + $0xd0] sm:$0xff] %v5166_v60  ;;  %v5293_v8 = vadd.f32 %v5292_v5, %v5166_v60  ;;  %v5332_v57 = vmul.f32 %v5166_v60, %v5166_v60 }
 0x2c7   : > { %v3859_v33 = vpop.f32.mrf.mxu2 }
 0x2c8   : > { %v5363_v7 = vadd.f32 %v5362_v56, %v5332_v57  ;;  %v3899_v48 = vadd.f32 %v3859_v33, %v3520_v35  ;;  %v4605_v49 = vpop.f32.mrf.mxu3 }
 0x2c9   : > { %v3483_v1 = vpop.f32.mrf.mxu1 }
 0x2ca   : > { %v4645_v50 = vadd.f32 %v4605_v49, %v3899_v48  ;;  %v3521_v42 = vadd.f32 %v3483_v1, %v7768_v19 }
 0x2cb   : > { %v5130_v11 = vpop.f32.mrf.mxu0 }
 0x2cc   : > { %v5167_v38 = vadd.f32 %v5127_v45, %v4645_v50 }
 0x2ce   : > { %5263 = vst [vmem:[%s7832_s7 + $0xd8] sm:$0xff] %v5167_v38  ;;  %v5294_v27 = vadd.f32 %v5293_v8, %v5167_v38  ;;  %v5333_v61 = vmul.f32 %v5167_v38, %v5167_v38 }
 0x2cf   : > { %v3862_v20 = vpop.f32.mrf.mxu2 }
 0x2d0   : > { %v5364_v37 = vadd.f32 %v5363_v7, %v5333_v61  ;;  %v3900_v53 = vadd.f32 %v3862_v20, %v3521_v42  ;;  %v4608_v18 = vpop.f32.mrf.mxu3 }
 0x2d1   : > { %v3485_v39 = vpop.f32.mrf.mxu1 }
 0x2d2   : > { %v4646_v24 = vadd.f32 %v4608_v18, %v3900_v53  ;;  %v3522_v12 = vadd.f32 %v3485_v39, %v7778_v34 }
 0x2d3   : > { %v5132_v30 = vpop.f32.mrf.mxu0 }
 0x2d4   : > { %v5168_v25 = vadd.f32 %v5130_v11, %v4646_v24 }
 0x2d6   : > { %5264 = vst [vmem:[%s7832_s7 + $0xe0] sm:$0xff] %v5168_v25  ;;  %v5295_v14 = vadd.f32 %v5294_v27, %v5168_v25  ;;  %v5334_v17 = vmul.f32 %v5168_v25, %v5168_v25 }
 0x2d7   : > { %v3864_v63 = vpop.f32.mrf.mxu2 }
 0x2d8   : > { %v5365_v31 = vadd.f32 %v5364_v37, %v5334_v17  ;;  %v3901_v44 = vadd.f32 %v3864_v63, %v3522_v12  ;;  %v4610_v16 = vpop.f32.mrf.mxu3 }
 0x2d9   : > { %v3488_v19 = vpop.f32.mrf.mxu1 }
 0x2da   : > { %v4647_v21 = vadd.f32 %v4610_v16, %v3901_v44  ;;  %v3523_v41 = vadd.f32 %v3488_v19, %v7796_v3 }
 0x2db   : > { %v5135_v34 = vpop.f32.mrf.mxu0 }
 0x2dc   : > { %v5169_v40 = vadd.f32 %v5132_v30, %v4647_v21 }
 0x2de   : > { %5265 = vst [vmem:[%s7832_s7 + $0xe8] sm:$0xff] %v5169_v40  ;;  %v5296_v51 = vadd.f32 %v5295_v14, %v5169_v40  ;;  %v5335_v32 = vmul.f32 %v5169_v40, %v5169_v40 }
 0x2df   : > { %v3867_v62 = vpop.f32.mrf.mxu2 }
 0x2e0   : > { %v5366_v9 = vadd.f32 %v5365_v31, %v5335_v32  ;;  %v3902_v28 = vadd.f32 %v3867_v62, %v3523_v41  ;;  %v4613_v29 = vpop.f32.mrf.mxu3 }
 0x2e1   : > { %v3490_v55 = vpop.f32.mrf.mxu1 }
 0x2e2   : > { %v4648_v0 = vadd.f32 %v4613_v29, %v3902_v28  ;;  %v3524_v15 = vadd.f32 %v3490_v55, %v7811_v59 }
 0x2e3   : > { %v5137_v13 = vpop.f32.mrf.mxu0 }
 0x2e4   : > { %v5170_v36 = vadd.f32 %v5135_v34, %v4648_v0 }
 0x2e6   : > { %5266 = vst [vmem:[%s7832_s7 + $0xf0] sm:$0xff] %v5170_v36  ;;  %v5297_v6 = vadd.f32 %v5296_v51, %v5170_v36  ;;  %v5336_v4 = vmul.f32 %v5170_v36, %v5170_v36 }
 0x2e7   : > { %v3869_v23 = vpop.f32.mrf.mxu2 }
 0x2e8   : > { %v5367_v2 = vadd.f32 %v5366_v9, %v5336_v4  ;;  %v3903_v43 = vadd.f32 %v3869_v23, %v3524_v15  ;;  %v4615_v58 = vpop.f32.mrf.mxu3 }
 0x2ea   : > { %v4649_v3 = vadd.f32 %v4615_v58, %v3903_v43 }
 0x2ec   : > { %v5171_v5 = vadd.f32 %v5137_v13, %v4649_v3 }
 0x2ee   : > { %5267 = vst [vmem:[%s7832_s7 + $0xf8] sm:$0xff] %v5171_v5  ;;  %v5298_v46 = vadd.f32 %v5297_v6, %v5171_v5  ;;  %v5337_v22 = vmul.f32 %v5171_v5, %v5171_v5 }
 0x2f0   : > { %v5299_v47 = vrot.slane %v5298_v46, 4  ;;  %v5368_v56 = vadd.f32 %v5367_v2, %v5337_v22 }
 0x2f2   : > { %v5300_v54 = vadd.f32 %v5299_v47, %v5298_v46  ;;  %v5369_v10 = vrot.slane %v5368_v56, 4 }
 0x2f4   : > { %v5301_v52 = vrot.slane %v5300_v54, 2  ;;  %v5370_v26 = vadd.f32 %v5369_v10, %v5368_v56 }
 0x2f6   : > { %v5302_v45 = vadd.f32 %v5301_v52, %v5300_v54  ;;  %v5371_v59 = vrot.slane %v5370_v26, 2 }
 0x2f8   : > { %v5303_v60 = vrot.slane %v5302_v45, 1  ;;  %v5372_v8 = vadd.f32 %v5371_v59, %v5370_v26 }
 0x2fa   : > { %v5304_v57 = vadd.f32 %v5303_v60, %v5302_v45  ;;  %v5373_v35 = vrot.slane %v5372_v8, 1 }
 0x2fc   : > { %5305 = vst [vmem:[%s226_s11] sm:$0x1] %v5304_v57  ;;  %v5374_v33 = vadd.f32 %v5373_v35, %v5372_v8 }
 0x2fe   : > { %5375 = vst [vmem:[%s226_s11 + $0x1] sm:$0x1] %v5374_v33 }
 0x2ff PF: > { %s14_s14 = sadd.s32 1, %s6626_s14   ;;  %s8083_s12 = smov %s6622_s13 }
 0x300   : > { %p11_p5 = scmp.ge.s32.totalorder %s14_s14, 4   ;;  %s8084_s13 = smov %s8086_s15 }
 0x302   :  { %13 = sbr.rel (!%p11_p5) target bundleno = 2 (0x2), region = 83 }

</bundles_post_ra>
